<compile_context>
chip_gen: v5e
topology: v5e:2x2
jax: 0.10.0
libtpu: 0.0.40
codegen_flags: <defaults>
</compile_context>

<pallas_src>
import math
from functools import partial, lru_cache

import jax
import jax.numpy as jnp
from jax.experimental import pallas as pl
from jax.experimental.pallas import tpu as pltpu

MM_DTYPE = jnp.bfloat16        # MXU operand / weight storage / inter-kernel activation dtype
LN_EPS_TRANSFORMER = 1e-5      # nn.LayerNorm / TransformerEncoderLayer default
LN_EPS_BERT = 1e-12            # HuggingFace BERT LayerNorm eps


# ----------------------------- small helpers -------------------------------

@lru_cache(maxsize=None)
def _vmem_limit_bytes():
    """Per-generation scoped-VMEM cap: ~75% of physical (≈96 MiB on v5e/v6e's
    128 MiB, ≈48 MiB on v7x's 64 MiB). Conservative 64 MiB if the query fails."""
    try:
        cap = int(pltpu.get_tpu_info().vmem_capacity_bytes)
        return min(cap * 3 // 4, 100 * 1024 * 1024)
    except Exception:
        return 64 * 1024 * 1024


def _cparams(n_grid_axes):
    """All grid axes used here are embarrassingly parallel (independent tiles)."""
    return pltpu.CompilerParams(
        dimension_semantics=("parallel",) * n_grid_axes,
        vmem_limit_bytes=_vmem_limit_bytes(),
    )


_BUF1 = None   # None = not probed yet, False = unsupported, else pl.Buffered(1)


def _buffered_one():
    """pl.Buffered(1) if this Pallas version supports pipeline_mode on
    pallas_call BlockSpecs (probed once with a tiny kernel), else None."""
    global _BUF1
    if _BUF1 is None:
        try:
            def _probe(x_ref, w_ref, o_ref):
                o_ref[...] = x_ref[...] + w_ref[...]

            out = pl.pallas_call(
                _probe,
                out_shape=jax.ShapeDtypeStruct((16, 128), jnp.float32),
                grid=(2,),
                in_specs=[
                    pl.BlockSpec((8, 128), lambda i: (i, 0)),
                    pl.BlockSpec((8, 128), lambda i: (0, 0),
                                 pipeline_mode=pl.Buffered(1)),
                ],
                out_specs=pl.BlockSpec((8, 128), lambda i: (i, 0)),
                compiler_params=_cparams(1),
            )(jnp.ones((16, 128), jnp.float32), jnp.ones((8, 128), jnp.float32))
            jax.block_until_ready(out)
            _BUF1 = pl.Buffered(1) if bool(jnp.all(out == 2.0)) else False
        except Exception:
            _BUF1 = False
    return _BUF1 if _BUF1 else None


def _const_spec(shape, index_map):
    """Spec for blocks whose block index never changes over the grid (weights,
    biases, LN params): single-buffer them -- no prefetch needed, halves their
    VMEM footprint (matters most on v7x's 64 MiB VMEM)."""
    mode = _buffered_one()
    if mode is None:
        return pl.BlockSpec(shape, index_map)
    return pl.BlockSpec(shape, index_map, pipeline_mode=mode)


def _row_tile(m, max_rows=512):
    """Largest multiple-of-8 divisor of m that is <= max_rows; if none exists,
    return max_rows and let the caller zero-pad the row dimension."""
    if m <= max_rows:
        return m
    for t in range(max_rows, 7, -8):
        if m % t == 0:
            return t
    return max_rows


def _col_tile(n, max_cols=512):
    """Largest lane-dense (multiple of 128) column tile <= max_cols dividing n."""
    if n <= max_cols:
        return n
    for t in range(max_cols, 127, -128):
        if n % t == 0:
            return t
    # TODO(synk): pad awkward widths (e.g. a vocab that is not a multiple of 128).
    return n


def _pad_rows(x2d, tile):
    """Zero-pad rows up to a multiple of the tile (rows are independent)."""
    m = x2d.shape[0]
    pad = (-m) % tile
    if pad:
        x2d = jnp.pad(x2d, ((0, pad), (0, 0)))
    return x2d, m


def _mm(a, b):
    """bf16 MXU matmul with f32 accumulation."""
    return jnp.dot(a.astype(MM_DTYPE), b.astype(MM_DTYPE),
                   preferred_element_type=jnp.float32)


def _act(x, activation):
    if activation == "relu":
        return jnp.maximum(x, 0.0)
    if activation == "gelu":
        # TODO(synk): HF BERT uses exact erf GELU; tanh approximation kept for
        # guaranteed Mosaic lowering (small systematic numeric deviation).
        return jax.nn.gelu(x, approximate=True)
    return x


def _ln(x, g, b, eps):
    mu = jnp.mean(x, axis=-1, keepdims=True)
    var = jnp.mean(jnp.square(x - mu), axis=-1, keepdims=True)
    return (x - mu) * jax.lax.rsqrt(var + eps) * g.astype(jnp.float32) \
        + b.astype(jnp.float32)


# ----------------------------- Pallas kernels ------------------------------

def _linear_kernel(x_ref, w_ref, b_ref, o_ref, *, activation):
    y = _mm(x_ref[...], w_ref[...]) + b_ref[...].astype(jnp.float32)
    o_ref[...] = _act(y, activation).astype(o_ref.dtype)


def linear(x, w, b, activation=None, out_dtype=None):
    """y = act(x @ w + b), tiled over rows (M = prod(leading)) and output cols."""
    orig = x.shape
    K = orig[-1]
    M = int(x.size // K)
    N = w.shape[1]
    out_dtype = out_dtype or x.dtype
    TM = _row_tile(M)
    TN = _col_tile(N)
    x2, m0 = _pad_rows(x.reshape(M, K), TM)
    Mp = x2.shape[0]
    out = pl.pallas_call(
        partial(_linear_kernel, activation=activation),
        out_shape=jax.ShapeDtypeStruct((Mp, N), out_dtype),
        grid=(Mp // TM, N // TN),
        in_specs=[
            pl.BlockSpec((TM, K), lambda i, j: (i, 0)),
            pl.BlockSpec((K, TN), lambda i, j: (0, j)),
            pl.BlockSpec((1, TN), lambda i, j: (0, j)),
        ],
        out_specs=pl.BlockSpec((TM, TN), lambda i, j: (i, j)),
        compiler_params=_cparams(2),
    )(x2, w, b.reshape(1, N))
    if Mp != m0:
        out = out[:m0]
    return out.reshape(orig[:-1] + (N,))


def _linear_act_ln_kernel(x_ref, w_ref, b_ref, g_ref, bln_ref, o_ref, *, activation, eps):
    y = _act(_mm(x_ref[...], w_ref[...]) + b_ref[...].astype(jnp.float32), activation)
    o_ref[...] = _ln(y, g_ref[...], bln_ref[...], eps).astype(o_ref.dtype)


def linear_act_ln(x, w, b, g, bln, activation, eps, out_dtype=None):
    """Fused dense + activation + LayerNorm (BERT MLM-head transform)."""
    orig = x.shape
    K = orig[-1]
    M = int(x.size // K)
    N = w.shape[1]
    out_dtype = out_dtype or x.dtype
    TM = _row_tile(M)
    x2, m0 = _pad_rows(x.reshape(M, K), TM)
    Mp = x2.shape[0]
    out = pl.pallas_call(
        partial(_linear_act_ln_kernel, activation=activation, eps=eps),
        out_shape=jax.ShapeDtypeStruct((Mp, N), out_dtype),
        grid=(Mp // TM,),
        in_specs=[
            pl.BlockSpec((TM, K), lambda i: (i, 0)),
            _const_spec((K, N), lambda i: (0, 0)),
            _const_spec((1, N), lambda i: (0, 0)),
            _const_spec((1, N), lambda i: (0, 0)),
            _const_spec((1, N), lambda i: (0, 0)),
        ],
        out_specs=pl.BlockSpec((TM, N), lambda i: (i, 0)),
        compiler_params=_cparams(1),
    )(x2, w, b.reshape(1, N), g.reshape(1, N), bln.reshape(1, N))
    if Mp != m0:
        out = out[:m0]
    return out.reshape(orig[:-1] + (N,))


def _ln_kernel(x_ref, g_ref, b_ref, o_ref, *, eps):
    o_ref[...] = _ln(x_ref[...].astype(jnp.float32),
                     g_ref[...], b_ref[...], eps).astype(o_ref.dtype)


def layer_norm(x, g, b, eps, out_dtype=None):
    orig = x.shape
    D = orig[-1]
    M = int(x.size // D)
    out_dtype = out_dtype or x.dtype
    TM = _row_tile(M)
    x2, m0 = _pad_rows(x.reshape(M, D), TM)
    Mp = x2.shape[0]
    out = pl.pallas_call(
        partial(_ln_kernel, eps=eps),
        out_shape=jax.ShapeDtypeStruct((Mp, D), out_dtype),
        grid=(Mp // TM,),
        in_specs=[
            pl.BlockSpec((TM, D), lambda i: (i, 0)),
            _const_spec((1, D), lambda i: (0, 0)),
            _const_spec((1, D), lambda i: (0, 0)),
        ],
        out_specs=pl.BlockSpec((TM, D), lambda i: (i, 0)),
        compiler_params=_cparams(1),
    )(x2, g.reshape(1, D), b.reshape(1, D))
    if Mp != m0:
        out = out[:m0]
    return out.reshape(orig)


def _embed_ln_kernel(x_ref, pos_ref, tok_ref, g_ref, b_ref, o_ref, *, eps):
    y = (x_ref[0].astype(jnp.float32) + pos_ref[...].astype(jnp.float32)
         + tok_ref[...].astype(jnp.float32))
    o_ref[0] = _ln(y, g_ref[...], b_ref[...], eps).astype(o_ref.dtype)


def embed_add_ln(x, pos, tok, g, b, eps):
    """Fused BERT embedding: inputs_embeds + pos_emb + token_type_emb -> LayerNorm.
    Avoids materializing the (B, T, H) sum to HBM before the LN kernel."""
    B, T, H = x.shape
    # TODO(synk): add a T-tile grid axis for long sequences.
    return pl.pallas_call(
        partial(_embed_ln_kernel, eps=eps),
        out_shape=jax.ShapeDtypeStruct((B, T, H), MM_DTYPE),
        grid=(B,),
        in_specs=[
            pl.BlockSpec((1, T, H), lambda bi: (bi, 0, 0)),
            _const_spec((T, H), lambda bi: (0, 0)),
            _const_spec((1, H), lambda bi: (0, 0)),
            _const_spec((1, H), lambda bi: (0, 0)),
            _const_spec((1, H), lambda bi: (0, 0)),
        ],
        out_specs=pl.BlockSpec((1, T, H), lambda bi: (bi, 0, 0)),
        compiler_params=_cparams(1),
    )(x, pos, tok.reshape(1, H), g.reshape(1, H), b.reshape(1, H))


def _ffn_res_ln_kernel(x_ref, w1_ref, b1_ref, w2_ref, b2_ref, g_ref, b_ref, o_ref,
                       *, activation, eps):
    """out = LN(x + act(x@w1+b1)@w2 + b2) — FFN + residual + post-LN fused."""
    h = _act(_mm(x_ref[...], w1_ref[...]) + b1_ref[...].astype(jnp.float32), activation)
    y = _mm(h, w2_ref[...]) + b2_ref[...].astype(jnp.float32) \
        + x_ref[...].astype(jnp.float32)
    o_ref[...] = _ln(y, g_ref[...], b_ref[...], eps).astype(o_ref.dtype)


def ffn_residual_ln(x, w1, b1, w2, b2, g, b, activation, eps):
    orig = x.shape
    D = orig[-1]
    M = int(x.size // D)
    F = w1.shape[1]
    TM = _row_tile(M, 256)      # bound the (TM, F) f32 intermediate
    x2, m0 = _pad_rows(x.reshape(M, D), TM)
    Mp = x2.shape[0]
    out = pl.pallas_call(
        partial(_ffn_res_ln_kernel, activation=activation, eps=eps),
        out_shape=jax.ShapeDtypeStruct((Mp, D), x.dtype),
        grid=(Mp // TM,),
        in_specs=[
            pl.BlockSpec((TM, D), lambda i: (i, 0)),
            _const_spec((D, F), lambda i: (0, 0)),
            _const_spec((1, F), lambda i: (0, 0)),
            _const_spec((F, D), lambda i: (0, 0)),
            _const_spec((1, D), lambda i: (0, 0)),
            _const_spec((1, D), lambda i: (0, 0)),
            _const_spec((1, D), lambda i: (0, 0)),
        ],
        out_specs=pl.BlockSpec((TM, D), lambda i: (i, 0)),
        compiler_params=_cparams(1),
    )(x2, w1, b1.reshape(1, F), w2, b2.reshape(1, D),
      g.reshape(1, D), b.reshape(1, D))
    if Mp != m0:
        out = out[:m0]
    return out.reshape(orig)


def _mha_core(q, k, v, wo, bo, n_heads):
    """q:(Tq,D) (pre-scaled), k,v:(Tk,D) f32. Per-head softmax(q k^T) v, heads
    concatenated (plain lane-range writes, no transpose), then ONE full-depth
    (Tq,D)@(D,D) output projection so the MXU sees contraction K=D, not K=dh."""
    D = q.shape[-1]
    dh = D // n_heads
    heads = []
    # TODO(synk): for many heads / long Tk, switch to a fori_loop + flash-style
    # online softmax over Tk tiles to bound vreg live ranges.
    for h in range(n_heads):
        sl = slice(h * dh, (h + 1) * dh)
        qh = q[:, sl].astype(MM_DTYPE)
        kh = k[:, sl].astype(MM_DTYPE)
        vh = v[:, sl].astype(MM_DTYPE)
        s = jax.lax.dot_general(qh, kh, (((1,), (1,)), ((), ())),
                                preferred_element_type=jnp.float32)   # (Tq, Tk)
        s = s - jnp.max(s, axis=-1, keepdims=True)
        p = jnp.exp(s)
        p = p * pl.reciprocal(jnp.sum(p, axis=-1, keepdims=True), approx=True)
        heads.append(jnp.dot(p.astype(MM_DTYPE), vh,
                             preferred_element_type=jnp.float32))
    o = jnp.concatenate(heads, axis=-1)                               # (Tq, D)
    return jnp.dot(o.astype(MM_DTYPE), wo.astype(MM_DTYPE),
                   preferred_element_type=jnp.float32) + bo.astype(jnp.float32)


def _self_mha_res_ln_kernel(x_ref, wqkv_ref, bqkv_ref, wo_ref, bo_ref, g_ref, b_ref,
                            o_ref, *, n_heads, scale, eps):
    """out = LN(x + MHA(x)) with a fused (D,3D) QKV projection."""
    x = x_ref[0]                                                      # (T, D) bf16
    D = x.shape[-1]
    qkv = _mm(x, wqkv_ref[...]) + bqkv_ref[...].astype(jnp.float32)   # (T, 3D) f32
    q = qkv[:, :D] * scale                                            # fold 1/sqrt(dh) once
    a = _mha_core(q, qkv[:, D:2 * D], qkv[:, 2 * D:],
                  wo_ref[...], bo_ref[...], n_heads)
    o_ref[0] = _ln(a + x.astype(jnp.float32),
                   g_ref[...], b_ref[...], eps).astype(o_ref.dtype)


def self_mha_residual_ln(x, p, g, b, n_heads, eps):
    B, T, D = x.shape
    scale = 1.0 / math.sqrt(D // n_heads)
    # TODO(synk): add a Tq-tile grid axis (+ flash-style Tk loop) for long
    # sequences / more pipeline steps; at grid=(B,) every weight stays resident.
    return pl.pallas_call(
        partial(_self_mha_res_ln_kernel, n_heads=n_heads, scale=scale, eps=eps),
        out_shape=jax.ShapeDtypeStruct((B, T, D), x.dtype),
        grid=(B,),
        in_specs=[
            pl.BlockSpec((1, T, D), lambda bi: (bi, 0, 0)),
            _const_spec((D, 3 * D), lambda bi: (0, 0)),
            _const_spec((1, 3 * D), lambda bi: (0, 0)),
            _const_spec((D, D), lambda bi: (0, 0)),
            _const_spec((1, D), lambda bi: (0, 0)),
            _const_spec((1, D), lambda bi: (0, 0)),
            _const_spec((1, D), lambda bi: (0, 0)),
        ],
        out_specs=pl.BlockSpec((1, T, D), lambda bi: (bi, 0, 0)),
        compiler_params=_cparams(1),
    )(x, p["wqkv"], p["bqkv"].reshape(1, 3 * D), p["wo"], p["bo"].reshape(1, D),
      g.reshape(1, D), b.reshape(1, D))


def _cross_mha_kernel(pe_ref, kv_ref, wqkv_ref, bqkv_ref, wo_ref, bo_ref, o_ref,
                      *, n_heads, scale):
    """nn.MultiheadAttention(q=pe, k=v=src) — no residual, no LN (the pds block)."""
    q_in = pe_ref[...]                      # (Tq, D) — shared across the batch grid
    kv_in = kv_ref[0]                       # (Tk, D)
    D = q_in.shape[-1]
    wqkv = wqkv_ref[...]
    bqkv = bqkv_ref[...].astype(jnp.float32)
    q = (_mm(q_in, wqkv[:, :D]) + bqkv[:, :D]) * scale
    kv = _mm(kv_in, wqkv[:, D:]) + bqkv[:, D:]          # fused K/V projection
    o_ref[0] = _mha_core(q, kv[:, :D], kv[:, D:], wo_ref[...], bo_ref[...],
                         n_heads).astype(o_ref.dtype)


def cross_mha(pe, kv_in, p, n_heads):
    B, Tk, D = kv_in.shape
    Tq = pe.shape[0]
    scale = 1.0 / math.sqrt(D // n_heads)
    return pl.pallas_call(
        partial(_cross_mha_kernel, n_heads=n_heads, scale=scale),
        out_shape=jax.ShapeDtypeStruct((B, Tq, D), kv_in.dtype),
        grid=(B,),
        in_specs=[
            _const_spec((Tq, D), lambda bi: (0, 0)),   # pe: no (B,Tq,D) broadcast in HBM
            pl.BlockSpec((1, Tk, D), lambda bi: (bi, 0, 0)),
            _const_spec((D, 3 * D), lambda bi: (0, 0)),
            _const_spec((1, 3 * D), lambda bi: (0, 0)),
            _const_spec((D, D), lambda bi: (0, 0)),
            _const_spec((1, D), lambda bi: (0, 0)),
        ],
        out_specs=pl.BlockSpec((1, Tq, D), lambda bi: (bi, 0, 0)),
        compiler_params=_cparams(1),
    )(pe, kv_in, p["wqkv"], p["bqkv"].reshape(1, 3 * D), p["wo"], p["bo"].reshape(1, D))


# ----------------------------- model blocks --------------------------------

def transformer_layer(x, p, n_heads, activation, eps=LN_EPS_TRANSFORMER):
    """Post-LN transformer encoder layer (dropout = identity in eval). 2 pallas_calls."""
    x = self_mha_residual_ln(x, p["attn"], p["ln1_g"], p["ln1_b"], n_heads, eps)
    x = ffn_residual_ln(x, p["ff_w1"], p["ff_b1"], p["ff_w2"], p["ff_b2"],
                        p["ln2_g"], p["ln2_b"], activation, eps)
    return x


def bert_mlm(inputs_embeds, p, n_heads, label=None):
    """BertForMaskedLM on inputs_embeds: embeddings(+pos,+type) -> layer -> MLM head."""
    B, T, H = inputs_embeds.shape
    # token_type_id = 0 everywhere -> a single (H,) type-embedding row.
    x = embed_add_ln(inputs_embeds, p["pos_emb"][:T], p["tok_type_emb"],
                     p["emb_ln_g"], p["emb_ln_b"], eps=LN_EPS_BERT)
    x = transformer_layer(x, p["layer"], n_heads, "gelu", eps=LN_EPS_BERT)
    h = linear_act_ln(x, p["head_w"], p["head_b"], p["head_ln_g"], p["head_ln_b"],
                      "gelu", eps=LN_EPS_BERT)
    logits = linear(h, p["dec_w"], p["dec_b"], out_dtype=jnp.float32)
    if label is not None:
        # CrossEntropyLoss(ignore_index<0) over the vocab — plain JAX (not a hot path).
        logp = jax.nn.log_softmax(logits, axis=-1)
        valid = label >= 0
        tgt = jnp.where(valid, label, 0)
        nll = -jnp.take_along_axis(logp, tgt[..., None], axis=-1)[..., 0]
        loss = jnp.sum(jnp.where(valid, nll, 0.0)) / jnp.maximum(jnp.sum(valid), 1)
        return loss, logits
    return logits


def encoder_forward(src, p, n_heads):
    x = linear(src, p["embed_w"], p["embed_b"], out_dtype=MM_DTYPE)   # encoder.embed
    # src.transpose(0, 1) in the PyTorch code is layout-only: stay batch-first.
    x = transformer_layer(x, p["enc_layer"], n_heads, "relu")         # encoder.encoder
    x = layer_norm(x, p["enc_norm_g"], p["enc_norm_b"],
                   eps=LN_EPS_TRANSFORMER)                            # encoder.encoder_norm
    # encoder.pe().repeat(1, B, 1): pe passed untiled; no (B,Tq,D) broadcast in HBM.
    x = cross_mha(p["pe"], x, p["pds"], n_heads)                      # encoder.pds(q, src)
    x = transformer_layer(x, p["dec_layer"], n_heads, "relu")         # encoder.decoder
    # src.transpose(0, 1) -> layout only
    x = linear(x, p["mlp_w"], p["mlp_b"], out_dtype=MM_DTYPE)         # encoder.mlp
    return x


def bertasr_forward(src, params, n_heads, label=None):
    emb = encoder_forward(src, params["encoder"], n_heads)
    return bert_mlm(emb, params["bert"], n_heads, label=label)


# ----------------------------- parameters ----------------------------------

def sinusoidal_pe(length, dim):
    pos = jnp.arange(length, dtype=jnp.float32)[:, None]
    i = jnp.arange(0, dim, 2, dtype=jnp.float32)
    angle = pos / jnp.power(10000.0, i / dim)
    pe = jnp.zeros((length, dim), jnp.float32)
    pe = pe.at[:, 0::2].set(jnp.sin(angle))
    pe = pe.at[:, 1::2].set(jnp.cos(angle))
    return pe.astype(MM_DTYPE)


def _dense(key, fan_in, fan_out):
    # Weights stored in bf16: halves weight HBM->VMEM DMA bytes and VMEM residency.
    w = 0.02 * jax.random.normal(key, (fan_in, fan_out), jnp.float32)
    return w.astype(MM_DTYPE)


def init_mha(key, d):
    k = jax.random.split(key, 2)
    return {"wqkv": _dense(k[0], d, 3 * d), "bqkv": jnp.zeros((3 * d,), jnp.float32),
            "wo": _dense(k[1], d, d), "bo": jnp.zeros((d,), jnp.float32)}


def init_layer(key, d, ff):
    k = jax.random.split(key, 3)
    return {"attn": init_mha(k[0], d),
            "ff_w1": _dense(k[1], d, ff), "ff_b1": jnp.zeros((ff,), jnp.float32),
            "ff_w2": _dense(k[2], ff, d), "ff_b2": jnp.zeros((d,), jnp.float32),
            "ln1_g": jnp.ones((d,), jnp.float32), "ln1_b": jnp.zeros((d,), jnp.float32),
            "ln2_g": jnp.ones((d,), jnp.float32), "ln2_b": jnp.zeros((d,), jnp.float32)}


def init_params(key, f_in, d, ff, tq, h_bert, vocab, max_pos=64):
    k = jax.random.split(key, 10)
    encoder = {
        "embed_w": _dense(k[0], f_in, d), "embed_b": jnp.zeros((d,), jnp.float32),
        "enc_layer": init_layer(k[1], d, ff),
        "enc_norm_g": jnp.ones((d,), jnp.float32), "enc_norm_b": jnp.zeros((d,), jnp.float32),
        "pe": sinusoidal_pe(tq, d),
        "pds": init_mha(k[2], d),
        "dec_layer": init_layer(k[3], d, ff),
        "mlp_w": _dense(k[4], d, h_bert), "mlp_b": jnp.zeros((h_bert,), jnp.float32),
    }
    bert = {
        "pos_emb": (0.02 * jax.random.normal(k[5], (max_pos, h_bert), jnp.float32)
                    ).astype(MM_DTYPE),
        "tok_type_emb": (0.02 * jax.random.normal(k[6], (h_bert,), jnp.float32)
                         ).astype(MM_DTYPE),
        "emb_ln_g": jnp.ones((h_bert,), jnp.float32), "emb_ln_b": jnp.zeros((h_bert,), jnp.float32),
        "layer": init_layer(k[7], h_bert, 4 * h_bert),
        "head_w": _dense(k[8], h_bert, h_bert), "head_b": jnp.zeros((h_bert,), jnp.float32),
        "head_ln_g": jnp.ones((h_bert,), jnp.float32), "head_ln_b": jnp.zeros((h_bert,), jnp.float32),
        "dec_w": _dense(k[9], h_bert, vocab), "dec_b": jnp.zeros((vocab,), jnp.float32),
    }
    return {"encoder": encoder, "bert": bert}


# --------------------------------- main -------------------------------------

if __name__ == "__main__":
    B, T, F_IN = 2, 16, 8          # batch, input frames, acoustic feature dim
    D, NH, TQ, FF = 32, 4, 8, 64   # d_model, heads, pe/query length, ffn dim
    H_BERT, VOCAB = 32, 64         # BERT hidden, vocab size

    key = jax.random.PRNGKey(0)
    pkey, xkey = jax.random.split(key)
    params = init_params(pkey, F_IN, D, FF, TQ, H_BERT, VOCAB)

    src = jax.random.normal(xkey, (B, T, F_IN), jnp.float32)

    _buffered_one()   # probe single-buffering support once, outside the jit trace

    logits = jax.jit(lambda s: bertasr_forward(s, params, NH))(src)
    jax.block_until_ready(logits)

    assert logits.shape == (B, TQ, VOCAB), logits.shape
    assert jnp.all(jnp.isfinite(logits))
    print("KERNEL_OK")
</pallas_src>

<mosaic_0001>
module attributes {stable_mosaic.version = 11 : i64} {
  func.func @_probe(%arg0: i32, %arg1: memref<8x128xf32, #tpu.memory_space<vmem>>, %arg2: memref<8x128xf32, #tpu.memory_space<vmem>>, %arg3: memref<8x128xf32, #tpu.memory_space<vmem>>) attributes {dimension_semantics = [#tpu.dimension_semantics<parallel>], iteration_bounds = array<i64: 2>, scalar_prefetch = 0 : i64, scratch_operands = 0 : i64, tpu.core_type = #tpu.core_type<tc>, window_params = [{transform_indices = @transform_0, window_bounds = array<i64: 8, 128>}, {pipeline_mode = #tpu.pipeline_mode<synchronous>, transform_indices = @transform_1, window_bounds = array<i64: 8, 128>}, {transform_indices = @transform_2, window_bounds = array<i64: 8, 128>}]} {
    %c0 = arith.constant 0 : index
    %c0_0 = arith.constant 0 : index
    %0 = vector.load %arg1[%c0, %c0_0] : memref<8x128xf32, #tpu.memory_space<vmem>>, vector<8x128xf32>
    %c0_1 = arith.constant 0 : index
    %c0_2 = arith.constant 0 : index
    %1 = vector.load %arg2[%c0_1, %c0_2] : memref<8x128xf32, #tpu.memory_space<vmem>>, vector<8x128xf32>
    %2 = arith.addf %0, %1 : vector<8x128xf32>
    %c0_3 = arith.constant 0 : index
    %c0_4 = arith.constant 0 : index
    %3 = vector.load %arg3[%c0_3, %c0_4] : memref<8x128xf32, #tpu.memory_space<vmem>>, vector<8x128xf32>
    tpu.vector_store %arg3[%c0_3, %c0_4], %2 {strides = array<i32>} : memref<8x128xf32, #tpu.memory_space<vmem>>, vector<8x128xf32>,
    return
  }
  func.func @transform_0(%arg0: i32) -> (i32, i32) {
    %c0_i32 = arith.constant 0 : i32
    %c0_i32_0 = arith.constant 0 : i32
    return %arg0, %c0_i32 : i32, i32
  }
  func.func @transform_1(%arg0: i32) -> (i32, i32) {
    %c0_i32 = arith.constant 0 : i32
    %c0_i32_0 = arith.constant 0 : i32
    %c0_i32_1 = arith.constant 0 : i32
    return %c0_i32, %c0_i32_0 : i32, i32
  }
  func.func @transform_2(%arg0: i32) -> (i32, i32) {
    %c0_i32 = arith.constant 0 : i32
    %c0_i32_0 = arith.constant 0 : i32
    return %arg0, %c0_i32 : i32, i32
  }
}

module attributes {stable_mosaic.version = 11 : i64} {
  func.func @_self_mha_res_ln_kernel(%arg0: i32, %arg1: memref<1x16x32xbf16, #tpu.memory_space<vmem>>, %arg2: memref<32x96xbf16, #tpu.memory_space<vmem>>, %arg3: memref<1x96xf32, #tpu.memory_space<vmem>>, %arg4: memref<32x32xbf16, #tpu.memory_space<vmem>>, %arg5: memref<1x32xf32, #tpu.memory_space<vmem>>, %arg6: memref<1x32xf32, #tpu.memory_space<vmem>>, %arg7: memref<1x32xf32, #tpu.memory_space<vmem>>, %arg8: memref<1x16x32xbf16, #tpu.memory_space<vmem>>) attributes {dimension_semantics = [#tpu.dimension_semantics<parallel>], iteration_bounds = array<i64: 2>, scalar_prefetch = 0 : i64, scratch_operands = 0 : i64, tpu.core_type = #tpu.core_type<tc>, window_params = [{transform_indices = @transform_0, window_bounds = array<i64: 1, 16, 32>}, {pipeline_mode = #tpu.pipeline_mode<synchronous>, transform_indices = @transform_1, window_bounds = array<i64: 32, 96>}, {pipeline_mode = #tpu.pipeline_mode<synchronous>, transform_indices = @transform_2, window_bounds = array<i64: 1, 96>}, {pipeline_mode = #tpu.pipeline_mode<synchronous>, transform_indices = @transform_3, window_bounds = array<i64: 32, 32>}, {pipeline_mode = #tpu.pipeline_mode<synchronous>, transform_indices = @transform_4, window_bounds = array<i64: 1, 32>}, {pipeline_mode = #tpu.pipeline_mode<synchronous>, transform_indices = @transform_5, window_bounds = array<i64: 1, 32>}, {pipeline_mode = #tpu.pipeline_mode<synchronous>, transform_indices = @transform_6, window_bounds = array<i64: 1, 32>}, {transform_indices = @transform_7, window_bounds = array<i64: 1, 16, 32>}]} {
    %c0 = arith.constant 0 : index
    %c0_0 = arith.constant 0 : index
    %c0_1 = arith.constant 0 : index
    %0 = vector.load %arg1[%c0, %c0_0, %c0_1] : memref<1x16x32xbf16, #tpu.memory_space<vmem>>, vector<1x16x32xbf16>
    %1 = vector.shape_cast %0 : vector<1x16x32xbf16> to vector<16x32xbf16>
    %c0_2 = arith.constant 0 : index
    %c0_3 = arith.constant 0 : index
    %2 = vector.load %arg2[%c0_2, %c0_3] : memref<32x96xbf16, #tpu.memory_space<vmem>>, vector<32x96xbf16>
    %cst = arith.constant dense<0.000000e+00> : vector<16x96xf32>
    %3 = tpu.matmul %1, %2, %cst {dimension_numbers = #tpu.dot_dimension_numbers<[1], [0], [0], [1], [0, 0, 1, 1], [], []>} : vector<16x32xbf16>, vector<32x96xbf16>, vector<16x96xf32> -> vector<16x96xf32>
    %c0_4 = arith.constant 0 : index
    %c0_5 = arith.constant 0 : index
    %4 = vector.load %arg3[%c0_4, %c0_5] : memref<1x96xf32, #tpu.memory_space<vmem>>, vector<1x96xf32>
    %5 = vector.broadcast %4 : vector<1x96xf32> to vector<16x96xf32>
    %6 = arith.addf %3, %5 : vector<16x96xf32>
    %7 = vector.extract_strided_slice %6 {offsets = [0, 0], sizes = [16, 32], strides = [1, 1]} : vector<16x96xf32> to vector<16x32xf32>
    %cst_6 = arith.constant 0.353553385 : f32
    %8 = vector.broadcast %cst_6 : f32 to vector<16x32xf32>
    %9 = arith.mulf %7, %8 : vector<16x32xf32>
    %10 = vector.extract_strided_slice %6 {offsets = [0, 32], sizes = [16, 32], strides = [1, 1]} : vector<16x96xf32> to vector<16x32xf32>
    %11 = vector.extract_strided_slice %6 {offsets = [0, 64], sizes = [16, 32], strides = [1, 1]} : vector<16x96xf32> to vector<16x32xf32>
    %c0_7 = arith.constant 0 : index
    %c0_8 = arith.constant 0 : index
    %12 = vector.load %arg4[%c0_7, %c0_8] : memref<32x32xbf16, #tpu.memory_space<vmem>>, vector<32x32xbf16>
    %c0_9 = arith.constant 0 : index
    %c0_10 = arith.constant 0 : index
    %13 = vector.load %arg5[%c0_9, %c0_10] : memref<1x32xf32, #tpu.memory_space<vmem>>, vector<1x32xf32>
    %14 = vector.extract_strided_slice %9 {offsets = [0, 0], sizes = [16, 8], strides = [1, 1]} : vector<16x32xf32> to vector<16x8xf32>
    %15 = arith.truncf %14 : vector<16x8xf32> to vector<16x8xbf16>
    %16 = vector.extract_strided_slice %10 {offsets = [0, 0], sizes = [16, 8], strides = [1, 1]} : vector<16x32xf32> to vector<16x8xf32>
    %17 = arith.truncf %16 : vector<16x8xf32> to vector<16x8xbf16>
    %18 = vector.extract_strided_slice %11 {offsets = [0, 0], sizes = [16, 8], strides = [1, 1]} : vector<16x32xf32> to vector<16x8xf32>
    %19 = arith.truncf %18 : vector<16x8xf32> to vector<16x8xbf16>
    %cst_11 = arith.constant dense<0.000000e+00> : vector<16x16xf32>
    %20 = tpu.matmul %15, %17, %cst_11 {dimension_numbers = #tpu.dot_dimension_numbers<[1], [1], [0], [0], [0, 0, 1, 0], [], []>} : vector<16x8xbf16>, vector<16x8xbf16>, vector<16x16xf32> -> vector<16x16xf32>
    %cst_12 = arith.constant dense<0xFF800000> : vector<16xf32>
    %21 = vector.multi_reduction <maximumf>, %20, %cst_12 [1] : vector<16x16xf32> to vector<16xf32>
    %22 = vector.shape_cast %21 : vector<16xf32> to vector<16x1xf32>
    %23 = vector.broadcast %22 : vector<16x1xf32> to vector<16x16xf32>
    %24 = arith.subf %20, %23 : vector<16x16xf32>
    %25 = math.exp %24 : vector<16x16xf32>
    %cst_13 = arith.constant dense<0.000000e+00> : vector<16xf32>
    %26 = vector.multi_reduction <add>, %25, %cst_13 [1] : vector<16x16xf32> to vector<16xf32>
    %27 = vector.shape_cast %26 : vector<16xf32> to vector<16x1xf32>
    %28 = tpu.reciprocal %27 {approx = true} : vector<16x1xf32> -> vector<16x1xf32>
    %29 = vector.broadcast %28 : vector<16x1xf32> to vector<16x16xf32>
    %30 = arith.mulf %25, %29 : vector<16x16xf32>
    %31 = arith.truncf %30 : vector<16x16xf32> to vector<16x16xbf16>
    %cst_14 = arith.constant dense<0.000000e+00> : vector<16x8xf32>
    %32 = tpu.matmul %31, %19, %cst_14 {dimension_numbers = #tpu.dot_dimension_numbers<[1], [0], [0], [1], [0, 0, 1, 1], [], []>} : vector<16x16xbf16>, vector<16x8xbf16>, vector<16x8xf32> -> vector<16x8xf32>
    %33 = vector.extract_strided_slice %9 {offsets = [0, 8], sizes = [16, 8], strides = [1, 1]} : vector<16x32xf32> to vector<16x8xf32>
    %34 = arith.truncf %33 : vector<16x8xf32> to vector<16x8xbf16>
    %35 = vector.extract_strided_slice %10 {offsets = [0, 8], sizes = [16, 8], strides = [1, 1]} : vector<16x32xf32> to vector<16x8xf32>
    %36 = arith.truncf %35 : vector<16x8xf32> to vector<16x8xbf16>
    %37 = vector.extract_strided_slice %11 {offsets = [0, 8], sizes = [16, 8], strides = [1, 1]} : vector<16x32xf32> to vector<16x8xf32>
    %38 = arith.truncf %37 : vector<16x8xf32> to vector<16x8xbf16>
    %cst_15 = arith.constant dense<0.000000e+00> : vector<16x16xf32>
    %39 = tpu.matmul %34, %36, %cst_15 {dimension_numbers = #tpu.dot_dimension_numbers<[1], [1], [0], [0], [0, 0, 1, 0], [], []>} : vector<16x8xbf16>, vector<16x8xbf16>, vector<16x16xf32> -> vector<16x16xf32>
    %cst_16 = arith.constant dense<0xFF800000> : vector<16xf32>
    %40 = vector.multi_reduction <maximumf>, %39, %cst_16 [1] : vector<16x16xf32> to vector<16xf32>
    %41 = vector.shape_cast %40 : vector<16xf32> to vector<16x1xf32>
    %42 = vector.broadcast %41 : vector<16x1xf32> to vector<16x16xf32>
    %43 = arith.subf %39, %42 : vector<16x16xf32>
    %44 = math.exp %43 : vector<16x16xf32>
    %cst_17 = arith.constant dense<0.000000e+00> : vector<16xf32>
    %45 = vector.multi_reduction <add>, %44, %cst_17 [1] : vector<16x16xf32> to vector<16xf32>
    %46 = vector.shape_cast %45 : vector<16xf32> to vector<16x1xf32>
    %47 = tpu.reciprocal %46 {approx = true} : vector<16x1xf32> -> vector<16x1xf32>
    %48 = vector.broadcast %47 : vector<16x1xf32> to vector<16x16xf32>
    %49 = arith.mulf %44, %48 : vector<16x16xf32>
    %50 = arith.truncf %49 : vector<16x16xf32> to vector<16x16xbf16>
    %cst_18 = arith.constant dense<0.000000e+00> : vector<16x8xf32>
    %51 = tpu.matmul %50, %38, %cst_18 {dimension_numbers = #tpu.dot_dimension_numbers<[1], [0], [0], [1], [0, 0, 1, 1], [], []>} : vector<16x16xbf16>, vector<16x8xbf16>, vector<16x8xf32> -> vector<16x8xf32>
    %52 = vector.extract_strided_slice %9 {offsets = [0, 16], sizes = [16, 8], strides = [1, 1]} : vector<16x32xf32> to vector<16x8xf32>
    %53 = arith.truncf %52 : vector<16x8xf32> to vector<16x8xbf16>
    %54 = vector.extract_strided_slice %10 {offsets = [0, 16], sizes = [16, 8], strides = [1, 1]} : vector<16x32xf32> to vector<16x8xf32>
    %55 = arith.truncf %54 : vector<16x8xf32> to vector<16x8xbf16>
    %56 = vector.extract_strided_slice %11 {offsets = [0, 16], sizes = [16, 8], strides = [1, 1]} : vector<16x32xf32> to vector<16x8xf32>
    %57 = arith.truncf %56 : vector<16x8xf32> to vector<16x8xbf16>
    %cst_19 = arith.constant dense<0.000000e+00> : vector<16x16xf32>
    %58 = tpu.matmul %53, %55, %cst_19 {dimension_numbers = #tpu.dot_dimension_numbers<[1], [1], [0], [0], [0, 0, 1, 0], [], []>} : vector<16x8xbf16>, vector<16x8xbf16>, vector<16x16xf32> -> vector<16x16xf32>
    %cst_20 = arith.constant dense<0xFF800000> : vector<16xf32>
    %59 = vector.multi_reduction <maximumf>, %58, %cst_20 [1] : vector<16x16xf32> to vector<16xf32>
    %60 = vector.shape_cast %59 : vector<16xf32> to vector<16x1xf32>
    %61 = vector.broadcast %60 : vector<16x1xf32> to vector<16x16xf32>
    %62 = arith.subf %58, %61 : vector<16x16xf32>
    %63 = math.exp %62 : vector<16x16xf32>
    %cst_21 = arith.constant dense<0.000000e+00> : vector<16xf32>
    %64 = vector.multi_reduction <add>, %63, %cst_21 [1] : vector<16x16xf32> to vector<16xf32>
    %65 = vector.shape_cast %64 : vector<16xf32> to vector<16x1xf32>
    %66 = tpu.reciprocal %65 {approx = true} : vector<16x1xf32> -> vector<16x1xf32>
    %67 = vector.broadcast %66 : vector<16x1xf32> to vector<16x16xf32>
    %68 = arith.mulf %63, %67 : vector<16x16xf32>
    %69 = arith.truncf %68 : vector<16x16xf32> to vector<16x16xbf16>
    %cst_22 = arith.constant dense<0.000000e+00> : vector<16x8xf32>
    %70 = tpu.matmul %69, %57, %cst_22 {dimension_numbers = #tpu.dot_dimension_numbers<[1], [0], [0], [1], [0, 0, 1, 1], [], []>} : vector<16x16xbf16>, vector<16x8xbf16>, vector<16x8xf32> -> vector<16x8xf32>
    %71 = vector.extract_strided_slice %9 {offsets = [0, 24], sizes = [16, 8], strides = [1, 1]} : vector<16x32xf32> to vector<16x8xf32>
    %72 = arith.truncf %71 : vector<16x8xf32> to vector<16x8xbf16>
    %73 = vector.extract_strided_slice %10 {offsets = [0, 24], sizes = [16, 8], strides = [1, 1]} : vector<16x32xf32> to vector<16x8xf32>
    %74 = arith.truncf %73 : vector<16x8xf32> to vector<16x8xbf16>
    %75 = vector.extract_strided_slice %11 {offsets = [0, 24], sizes = [16, 8], strides = [1, 1]} : vector<16x32xf32> to vector<16x8xf32>
    %76 = arith.truncf %75 : vector<16x8xf32> to vector<16x8xbf16>
    %cst_23 = arith.constant dense<0.000000e+00> : vector<16x16xf32>
    %77 = tpu.matmul %72, %74, %cst_23 {dimension_numbers = #tpu.dot_dimension_numbers<[1], [1], [0], [0], [0, 0, 1, 0], [], []>} : vector<16x8xbf16>, vector<16x8xbf16>, vector<16x16xf32> -> vector<16x16xf32>
    %cst_24 = arith.constant dense<0xFF800000> : vector<16xf32>
    %78 = vector.multi_reduction <maximumf>, %77, %cst_24 [1] : vector<16x16xf32> to vector<16xf32>
    %79 = vector.shape_cast %78 : vector<16xf32> to vector<16x1xf32>
    %80 = vector.broadcast %79 : vector<16x1xf32> to vector<16x16xf32>
    %81 = arith.subf %77, %80 : vector<16x16xf32>
    %82 = math.exp %81 : vector<16x16xf32>
    %cst_25 = arith.constant dense<0.000000e+00> : vector<16xf32>
    %83 = vector.multi_reduction <add>, %82, %cst_25 [1] : vector<16x16xf32> to vector<16xf32>
    %84 = vector.shape_cast %83 : vector<16xf32> to vector<16x1xf32>
    %85 = tpu.reciprocal %84 {approx = true} : vector<16x1xf32> -> vector<16x1xf32>
    %86 = vector.broadcast %85 : vector<16x1xf32> to vector<16x16xf32>
    %87 = arith.mulf %82, %86 : vector<16x16xf32>
    %88 = arith.truncf %87 : vector<16x16xf32> to vector<16x16xbf16>
    %cst_26 = arith.constant dense<0.000000e+00> : vector<16x8xf32>
    %89 = tpu.matmul %88, %76, %cst_26 {dimension_numbers = #tpu.dot_dimension_numbers<[1], [0], [0], [1], [0, 0, 1, 1], [], []>} : vector<16x16xbf16>, vector<16x8xbf16>, vector<16x8xf32> -> vector<16x8xf32>
    %90 = tpu.concatenate %32, %51, %70, %89 in 1 : vector<16x8xf32>, vector<16x8xf32>, vector<16x8xf32>, vector<16x8xf32> -> vector<16x32xf32>
    %91 = arith.truncf %90 : vector<16x32xf32> to vector<16x32xbf16>
    %cst_27 = arith.constant dense<0.000000e+00> : vector<16x32xf32>
    %92 = tpu.matmul %91, %12, %cst_27 {dimension_numbers = #tpu.dot_dimension_numbers<[1], [0], [0], [1], [0, 0, 1, 1], [], []>} : vector<16x32xbf16>, vector<32x32xbf16>, vector<16x32xf32> -> vector<16x32xf32>
    %93 = vector.broadcast %13 : vector<1x32xf32> to vector<16x32xf32>
    %94 = arith.addf %92, %93 : vector<16x32xf32>
    %95 = arith.extf %1 : vector<16x32xbf16> to vector<16x32xf32>
    %96 = arith.addf %94, %95 : vector<16x32xf32>
    %c0_28 = arith.constant 0 : index
    %c0_29 = arith.constant 0 : index
    %97 = vector.load %arg6[%c0_28, %c0_29] : memref<1x32xf32, #tpu.memory_space<vmem>>, vector<1x32xf32>
    %c0_30 = arith.constant 0 : index
    %c0_31 = arith.constant 0 : index
    %98 = vector.load %arg7[%c0_30, %c0_31] : memref<1x32xf32, #tpu.memory_space<vmem>>, vector<1x32xf32>
    %cst_32 = arith.constant dense<0.000000e+00> : vector<16xf32>
    %99 = vector.multi_reduction <add>, %96, %cst_32 [1] : vector<16x32xf32> to vector<16xf32>
    %100 = vector.shape_cast %99 : vector<16xf32> to vector<16x1xf32>
    %cst_33 = arith.constant 3.200000e+01 : f32
    %101 = vector.broadcast %cst_33 : f32 to vector<16x1xf32>
    %102 = arith.divf %100, %101 : vector<16x1xf32>
    %103 = vector.broadcast %102 : vector<16x1xf32> to vector<16x32xf32>
    %104 = arith.subf %96, %103 : vector<16x32xf32>
    %105 = arith.mulf %104, %104 : vector<16x32xf32>
    %cst_34 = arith.constant dense<0.000000e+00> : vector<16xf32>
    %106 = vector.multi_reduction <add>, %105, %cst_34 [1] : vector<16x32xf32> to vector<16xf32>
    %107 = vector.shape_cast %106 : vector<16xf32> to vector<16x1xf32>
    %cst_35 = arith.constant 3.200000e+01 : f32
    %108 = vector.broadcast %cst_35 : f32 to vector<16x1xf32>
    %109 = arith.divf %107, %108 : vector<16x1xf32>
    %110 = vector.broadcast %102 : vector<16x1xf32> to vector<16x32xf32>
    %111 = arith.subf %96, %110 : vector<16x32xf32>
    %cst_36 = arith.constant 9.99999974E-6 : f32
    %112 = vector.broadcast %cst_36 : f32 to vector<16x1xf32>
    %113 = arith.addf %109, %112 : vector<16x1xf32>
    %114 = math.rsqrt %113 : vector<16x1xf32>
    %115 = vector.broadcast %114 : vector<16x1xf32> to vector<16x32xf32>
    %116 = arith.mulf %111, %115 : vector<16x32xf32>
    %117 = vector.broadcast %97 : vector<1x32xf32> to vector<16x32xf32>
    %118 = arith.mulf %116, %117 : vector<16x32xf32>
    %119 = vector.broadcast %98 : vector<1x32xf32> to vector<16x32xf32>
    %120 = arith.addf %118, %119 : vector<16x32xf32>
    %121 = arith.truncf %120 : vector<16x32xf32> to vector<16x32xbf16>
    %c0_37 = arith.constant 0 : index
    %c0_38 = arith.constant 0 : index
    %c0_39 = arith.constant 0 : index
    %122 = vector.load %arg8[%c0_37, %c0_38, %c0_39] : memref<1x16x32xbf16, #tpu.memory_space<vmem>>, vector<1x16x32xbf16>
    %123 = vector.shape_cast %122 : vector<1x16x32xbf16> to vector<16x32xbf16>
    %124 = vector.shape_cast %121 : vector<16x32xbf16> to vector<1x16x32xbf16>
    tpu.vector_store %arg8[%c0_37, %c0_38, %c0_39], %124 {strides = array<i32>} : memref<1x16x32xbf16, #tpu.memory_space<vmem>>, vector<1x16x32xbf16>,
    return
  }
  func.func @transform_0(%arg0: i32) -> (i32, i32, i32) {
    %c0_i32 = arith.constant 0 : i32
    %c0_i32_0 = arith.constant 0 : i32
    %c0_i32_1 = arith.constant 0 : i32
    return %arg0, %c0_i32, %c0_i32_0 : i32, i32, i32
  }
  func.func @transform_1(%arg0: i32) -> (i32, i32) {
    %c0_i32 = arith.constant 0 : i32
    %c0_i32_0 = arith.constant 0 : i32
    %c0_i32_1 = arith.constant 0 : i32
    return %c0_i32, %c0_i32_0 : i32, i32
  }
  func.func @transform_2(%arg0: i32) -> (i32, i32) {
    %c0_i32 = arith.constant 0 : i32
    %c0_i32_0 = arith.constant 0 : i32
    %c0_i32_1 = arith.constant 0 : i32
    return %c0_i32, %c0_i32_0 : i32, i32
  }
  func.func @transform_3(%arg0: i32) -> (i32, i32) {
    %c0_i32 = arith.constant 0 : i32
    %c0_i32_0 = arith.constant 0 : i32
    %c0_i32_1 = arith.constant 0 : i32
    return %c0_i32, %c0_i32_0 : i32, i32
  }
  func.func @transform_4(%arg0: i32) -> (i32, i32) {
    %c0_i32 = arith.constant 0 : i32
    %c0_i32_0 = arith.constant 0 : i32
    %c0_i32_1 = arith.constant 0 : i32
    return %c0_i32, %c0_i32_0 : i32, i32
  }
  func.func @transform_5(%arg0: i32) -> (i32, i32) {
    %c0_i32 = arith.constant 0 : i32
    %c0_i32_0 = arith.constant 0 : i32
    %c0_i32_1 = arith.constant 0 : i32
    return %c0_i32, %c0_i32_0 : i32, i32
  }
  func.func @transform_6(%arg0: i32) -> (i32, i32) {
    %c0_i32 = arith.constant 0 : i32
    %c0_i32_0 = arith.constant 0 : i32
    %c0_i32_1 = arith.constant 0 : i32
    return %c0_i32, %c0_i32_0 : i32, i32
  }
  func.func @transform_7(%arg0: i32) -> (i32, i32, i32) {
    %c0_i32 = arith.constant 0 : i32
    %c0_i32_0 = arith.constant 0 : i32
    %c0_i32_1 = arith.constant 0 : i32
    return %arg0, %c0_i32, %c0_i32_0 : i32, i32, i32
  }
}

module attributes {stable_mosaic.version = 11 : i64} {
  func.func @_ln_kernel(%arg0: i32, %arg1: memref<32x32xbf16, #tpu.memory_space<vmem>>, %arg2: memref<1x32xf32, #tpu.memory_space<vmem>>, %arg3: memref<1x32xf32, #tpu.memory_space<vmem>>, %arg4: memref<32x32xbf16, #tpu.memory_space<vmem>>) attributes {dimension_semantics = [#tpu.dimension_semantics<parallel>], iteration_bounds = array<i64: 1>, scalar_prefetch = 0 : i64, scratch_operands = 0 : i64, tpu.core_type = #tpu.core_type<tc>, window_params = [{transform_indices = @transform_0, window_bounds = array<i64: 32, 32>}, {pipeline_mode = #tpu.pipeline_mode<synchronous>, transform_indices = @transform_1, window_bounds = array<i64: 1, 32>}, {pipeline_mode = #tpu.pipeline_mode<synchronous>, transform_indices = @transform_2, window_bounds = array<i64: 1, 32>}, {transform_indices = @transform_3, window_bounds = array<i64: 32, 32>}]} {
    %c0 = arith.constant 0 : index
    %c0_0 = arith.constant 0 : index
    %0 = vector.load %arg1[%c0, %c0_0] : memref<32x32xbf16, #tpu.memory_space<vmem>>, vector<32x32xbf16>
    %1 = arith.extf %0 : vector<32x32xbf16> to vector<32x32xf32>
    %c0_1 = arith.constant 0 : index
    %c0_2 = arith.constant 0 : index
    %2 = vector.load %arg2[%c0_1, %c0_2] : memref<1x32xf32, #tpu.memory_space<vmem>>, vector<1x32xf32>
    %c0_3 = arith.constant 0 : index
    %c0_4 = arith.constant 0 : index
    %3 = vector.load %arg3[%c0_3, %c0_4] : memref<1x32xf32, #tpu.memory_space<vmem>>, vector<1x32xf32>
    %cst = arith.constant dense<0.000000e+00> : vector<32xf32>
    %4 = vector.multi_reduction <add>, %1, %cst [1] : vector<32x32xf32> to vector<32xf32>
    %5 = vector.shape_cast %4 : vector<32xf32> to vector<32x1xf32>
    %cst_5 = arith.constant 3.200000e+01 : f32
    %6 = vector.broadcast %cst_5 : f32 to vector<32x1xf32>
    %7 = arith.divf %5, %6 : vector<32x1xf32>
    %8 = vector.broadcast %7 : vector<32x1xf32> to vector<32x32xf32>
    %9 = arith.subf %1, %8 : vector<32x32xf32>
    %10 = arith.mulf %9, %9 : vector<32x32xf32>
    %cst_6 = arith.constant dense<0.000000e+00> : vector<32xf32>
    %11 = vector.multi_reduction <add>, %10, %cst_6 [1] : vector<32x32xf32> to vector<32xf32>
    %12 = vector.shape_cast %11 : vector<32xf32> to vector<32x1xf32>
    %cst_7 = arith.constant 3.200000e+01 : f32
    %13 = vector.broadcast %cst_7 : f32 to vector<32x1xf32>
    %14 = arith.divf %12, %13 : vector<32x1xf32>
    %15 = vector.broadcast %7 : vector<32x1xf32> to vector<32x32xf32>
    %16 = arith.subf %1, %15 : vector<32x32xf32>
    %cst_8 = arith.constant 9.99999974E-6 : f32
    %17 = vector.broadcast %cst_8 : f32 to vector<32x1xf32>
    %18 = arith.addf %14, %17 : vector<32x1xf32>
    %19 = math.rsqrt %18 : vector<32x1xf32>
    %20 = vector.broadcast %19 : vector<32x1xf32> to vector<32x32xf32>
    %21 = arith.mulf %16, %20 : vector<32x32xf32>
    %22 = vector.broadcast %2 : vector<1x32xf32> to vector<32x32xf32>
    %23 = arith.mulf %21, %22 : vector<32x32xf32>
    %24 = vector.broadcast %3 : vector<1x32xf32> to vector<32x32xf32>
    %25 = arith.addf %23, %24 : vector<32x32xf32>
    %26 = arith.truncf %25 : vector<32x32xf32> to vector<32x32xbf16>
    %c0_9 = arith.constant 0 : index
    %c0_10 = arith.constant 0 : index
    %27 = vector.load %arg4[%c0_9, %c0_10] : memref<32x32xbf16, #tpu.memory_space<vmem>>, vector<32x32xbf16>
    tpu.vector_store %arg4[%c0_9, %c0_10], %26 {strides = array<i32>} : memref<32x32xbf16, #tpu.memory_space<vmem>>, vector<32x32xbf16>,
    return
  }
  func.func @transform_0(%arg0: i32) -> (i32, i32) {
    %c0_i32 = arith.constant 0 : i32
    %c0_i32_0 = arith.constant 0 : i32
    return %arg0, %c0_i32 : i32, i32
  }
  func.func @transform_1(%arg0: i32) -> (i32, i32) {
    %c0_i32 = arith.constant 0 : i32
    %c0_i32_0 = arith.constant 0 : i32
    %c0_i32_1 = arith.constant 0 : i32
    return %c0_i32, %c0_i32_0 : i32, i32
  }
  func.func @transform_2(%arg0: i32) -> (i32, i32) {
    %c0_i32 = arith.constant 0 : i32
    %c0_i32_0 = arith.constant 0 : i32
    %c0_i32_1 = arith.constant 0 : i32
    return %c0_i32, %c0_i32_0 : i32, i32
  }
  func.func @transform_3(%arg0: i32) -> (i32, i32) {
    %c0_i32 = arith.constant 0 : i32
    %c0_i32_0 = arith.constant 0 : i32
    return %arg0, %c0_i32 : i32, i32
  }
}

module attributes {stable_mosaic.version = 11 : i64} {
  func.func @_linear_kernel(%arg0: i32, %arg1: i32, %arg2: memref<32x8xf32, #tpu.memory_space<vmem>>, %arg3: memref<8x32xbf16, #tpu.memory_space<vmem>>, %arg4: memref<1x32xf32, #tpu.memory_space<vmem>>, %arg5: memref<32x32xbf16, #tpu.memory_space<vmem>>) attributes {dimension_semantics = [#tpu.dimension_semantics<parallel>, #tpu.dimension_semantics<parallel>], iteration_bounds = array<i64: 1, 1>, scalar_prefetch = 0 : i64, scratch_operands = 0 : i64, tpu.core_type = #tpu.core_type<tc>, window_params = [{transform_indices = @transform_0, window_bounds = array<i64: 32, 8>}, {transform_indices = @transform_1, window_bounds = array<i64: 8, 32>}, {transform_indices = @transform_2, window_bounds = array<i64: 1, 32>}, {transform_indices = @transform_3, window_bounds = array<i64: 32, 32>}]} {
    %c0 = arith.constant 0 : index
    %c0_0 = arith.constant 0 : index
    %0 = vector.load %arg2[%c0, %c0_0] : memref<32x8xf32, #tpu.memory_space<vmem>>, vector<32x8xf32>
    %c0_1 = arith.constant 0 : index
    %c0_2 = arith.constant 0 : index
    %1 = vector.load %arg3[%c0_1, %c0_2] : memref<8x32xbf16, #tpu.memory_space<vmem>>, vector<8x32xbf16>
    %2 = arith.truncf %0 : vector<32x8xf32> to vector<32x8xbf16>
    %cst = arith.constant dense<0.000000e+00> : vector<32x32xf32>
    %3 = tpu.matmul %2, %1, %cst {dimension_numbers = #tpu.dot_dimension_numbers<[1], [0], [0], [1], [0, 0, 1, 1], [], []>} : vector<32x8xbf16>, vector<8x32xbf16>, vector<32x32xf32> -> vector<32x32xf32>
    %c0_3 = arith.constant 0 : index
    %c0_4 = arith.constant 0 : index
    %4 = vector.load %arg4[%c0_3, %c0_4] : memref<1x32xf32, #tpu.memory_space<vmem>>, vector<1x32xf32>
    %5 = vector.broadcast %4 : vector<1x32xf32> to vector<32x32xf32>
    %6 = arith.addf %3, %5 : vector<32x32xf32>
    %7 = arith.truncf %6 : vector<32x32xf32> to vector<32x32xbf16>
    %c0_5 = arith.constant 0 : index
    %c0_6 = arith.constant 0 : index
    %8 = vector.load %arg5[%c0_5, %c0_6] : memref<32x32xbf16, #tpu.memory_space<vmem>>, vector<32x32xbf16>
    tpu.vector_store %arg5[%c0_5, %c0_6], %7 {strides = array<i32>} : memref<32x32xbf16, #tpu.memory_space<vmem>>, vector<32x32xbf16>,
    return
  }
  func.func @transform_0(%arg0: i32, %arg1: i32) -> (i32, i32) {
    %c0_i32 = arith.constant 0 : i32
    %c0_i32_0 = arith.constant 0 : i32
    return %arg0, %c0_i32 : i32, i32
  }
  func.func @transform_1(%arg0: i32, %arg1: i32) -> (i32, i32) {
    %c0_i32 = arith.constant 0 : i32
    %c0_i32_0 = arith.constant 0 : i32
    return %c0_i32, %arg1 : i32, i32
  }
  func.func @transform_2(%arg0: i32, %arg1: i32) -> (i32, i32) {
    %c0_i32 = arith.constant 0 : i32
    %c0_i32_0 = arith.constant 0 : i32
    return %c0_i32, %arg1 : i32, i32
  }
  func.func @transform_3(%arg0: i32, %arg1: i32) -> (i32, i32) {
    %c0_i32 = arith.constant 0 : i32
    return %arg0, %arg1 : i32, i32
  }
}

module attributes {stable_mosaic.version = 11 : i64} {
  func.func @_ffn_res_ln_kernel(%arg0: i32, %arg1: memref<32x32xbf16, #tpu.memory_space<vmem>>, %arg2: memref<32x64xbf16, #tpu.memory_space<vmem>>, %arg3: memref<1x64xf32, #tpu.memory_space<vmem>>, %arg4: memref<64x32xbf16, #tpu.memory_space<vmem>>, %arg5: memref<1x32xf32, #tpu.memory_space<vmem>>, %arg6: memref<1x32xf32, #tpu.memory_space<vmem>>, %arg7: memref<1x32xf32, #tpu.memory_space<vmem>>, %arg8: memref<32x32xbf16, #tpu.memory_space<vmem>>) attributes {dimension_semantics = [#tpu.dimension_semantics<parallel>], iteration_bounds = array<i64: 1>, scalar_prefetch = 0 : i64, scratch_operands = 0 : i64, tpu.core_type = #tpu.core_type<tc>, window_params = [{transform_indices = @transform_0, window_bounds = array<i64: 32, 32>}, {pipeline_mode = #tpu.pipeline_mode<synchronous>, transform_indices = @transform_1, window_bounds = array<i64: 32, 64>}, {pipeline_mode = #tpu.pipeline_mode<synchronous>, transform_indices = @transform_2, window_bounds = array<i64: 1, 64>}, {pipeline_mode = #tpu.pipeline_mode<synchronous>, transform_indices = @transform_3, window_bounds = array<i64: 64, 32>}, {pipeline_mode = #tpu.pipeline_mode<synchronous>, transform_indices = @transform_4, window_bounds = array<i64: 1, 32>}, {pipeline_mode = #tpu.pipeline_mode<synchronous>, transform_indices = @transform_5, window_bounds = array<i64: 1, 32>}, {pipeline_mode = #tpu.pipeline_mode<synchronous>, transform_indices = @transform_6, window_bounds = array<i64: 1, 32>}, {transform_indices = @transform_7, window_bounds = array<i64: 32, 32>}]} {
    %c0 = arith.constant 0 : index
    %c0_0 = arith.constant 0 : index
    %0 = vector.load %arg1[%c0, %c0_0] : memref<32x32xbf16, #tpu.memory_space<vmem>>, vector<32x32xbf16>
    %c0_1 = arith.constant 0 : index
    %c0_2 = arith.constant 0 : index
    %1 = vector.load %arg2[%c0_1, %c0_2] : memref<32x64xbf16, #tpu.memory_space<vmem>>, vector<32x64xbf16>
    %cst = arith.constant dense<0.000000e+00> : vector<32x64xf32>
    %2 = tpu.matmul %0, %1, %cst {dimension_numbers = #tpu.dot_dimension_numbers<[1], [0], [0], [1], [0, 0, 1, 1], [], []>} : vector<32x32xbf16>, vector<32x64xbf16>, vector<32x64xf32> -> vector<32x64xf32>
    %c0_3 = arith.constant 0 : index
    %c0_4 = arith.constant 0 : index
    %3 = vector.load %arg3[%c0_3, %c0_4] : memref<1x64xf32, #tpu.memory_space<vmem>>, vector<1x64xf32>
    %4 = vector.broadcast %3 : vector<1x64xf32> to vector<32x64xf32>
    %5 = arith.addf %2, %4 : vector<32x64xf32>
    %cst_5 = arith.constant 0.000000e+00 : f32
    %6 = vector.broadcast %cst_5 : f32 to vector<32x64xf32>
    %7 = arith.maximumf %5, %6 : vector<32x64xf32>
    %c0_6 = arith.constant 0 : index
    %c0_7 = arith.constant 0 : index
    %8 = vector.load %arg4[%c0_6, %c0_7] : memref<64x32xbf16, #tpu.memory_space<vmem>>, vector<64x32xbf16>
    %9 = arith.truncf %7 : vector<32x64xf32> to vector<32x64xbf16>
    %cst_8 = arith.constant dense<0.000000e+00> : vector<32x32xf32>
    %10 = tpu.matmul %9, %8, %cst_8 {dimension_numbers = #tpu.dot_dimension_numbers<[1], [0], [0], [1], [0, 0, 1, 1], [], []>} : vector<32x64xbf16>, vector<64x32xbf16>, vector<32x32xf32> -> vector<32x32xf32>
    %c0_9 = arith.constant 0 : index
    %c0_10 = arith.constant 0 : index
    %11 = vector.load %arg5[%c0_9, %c0_10] : memref<1x32xf32, #tpu.memory_space<vmem>>, vector<1x32xf32>
    %12 = vector.broadcast %11 : vector<1x32xf32> to vector<32x32xf32>
    %13 = arith.addf %10, %12 : vector<32x32xf32>
    %c0_11 = arith.constant 0 : index
    %c0_12 = arith.constant 0 : index
    %14 = vector.load %arg1[%c0_11, %c0_12] : memref<32x32xbf16, #tpu.memory_space<vmem>>, vector<32x32xbf16>
    %15 = arith.extf %14 : vector<32x32xbf16> to vector<32x32xf32>
    %16 = arith.addf %13, %15 : vector<32x32xf32>
    %c0_13 = arith.constant 0 : index
    %c0_14 = arith.constant 0 : index
    %17 = vector.load %arg6[%c0_13, %c0_14] : memref<1x32xf32, #tpu.memory_space<vmem>>, vector<1x32xf32>
    %c0_15 = arith.constant 0 : index
    %c0_16 = arith.constant 0 : index
    %18 = vector.load %arg7[%c0_15, %c0_16] : memref<1x32xf32, #tpu.memory_space<vmem>>, vector<1x32xf32>
    %cst_17 = arith.constant dense<0.000000e+00> : vector<32xf32>
    %19 = vector.multi_reduction <add>, %16, %cst_17 [1] : vector<32x32xf32> to vector<32xf32>
    %20 = vector.shape_cast %19 : vector<32xf32> to vector<32x1xf32>
    %cst_18 = arith.constant 3.200000e+01 : f32
    %21 = vector.broadcast %cst_18 : f32 to vector<32x1xf32>
    %22 = arith.divf %20, %21 : vector<32x1xf32>
    %23 = vector.broadcast %22 : vector<32x1xf32> to vector<32x32xf32>
    %24 = arith.subf %16, %23 : vector<32x32xf32>
    %25 = arith.mulf %24, %24 : vector<32x32xf32>
    %cst_19 = arith.constant dense<0.000000e+00> : vector<32xf32>
    %26 = vector.multi_reduction <add>, %25, %cst_19 [1] : vector<32x32xf32> to vector<32xf32>
    %27 = vector.shape_cast %26 : vector<32xf32> to vector<32x1xf32>
    %cst_20 = arith.constant 3.200000e+01 : f32
    %28 = vector.broadcast %cst_20 : f32 to vector<32x1xf32>
    %29 = arith.divf %27, %28 : vector<32x1xf32>
    %30 = vector.broadcast %22 : vector<32x1xf32> to vector<32x32xf32>
    %31 = arith.subf %16, %30 : vector<32x32xf32>
    %cst_21 = arith.constant 9.99999974E-6 : f32
    %32 = vector.broadcast %cst_21 : f32 to vector<32x1xf32>
    %33 = arith.addf %29, %32 : vector<32x1xf32>
    %34 = math.rsqrt %33 : vector<32x1xf32>
    %35 = vector.broadcast %34 : vector<32x1xf32> to vector<32x32xf32>
    %36 = arith.mulf %31, %35 : vector<32x32xf32>
    %37 = vector.broadcast %17 : vector<1x32xf32> to vector<32x32xf32>
    %38 = arith.mulf %36, %37 : vector<32x32xf32>
    %39 = vector.broadcast %18 : vector<1x32xf32> to vector<32x32xf32>
    %40 = arith.addf %38, %39 : vector<32x32xf32>
    %41 = arith.truncf %40 : vector<32x32xf32> to vector<32x32xbf16>
    %c0_22 = arith.constant 0 : index
    %c0_23 = arith.constant 0 : index
    %42 = vector.load %arg8[%c0_22, %c0_23] : memref<32x32xbf16, #tpu.memory_space<vmem>>, vector<32x32xbf16>
    tpu.vector_store %arg8[%c0_22, %c0_23], %41 {strides = array<i32>} : memref<32x32xbf16, #tpu.memory_space<vmem>>, vector<32x32xbf16>,
    return
  }
  func.func @transform_0(%arg0: i32) -> (i32, i32) {
    %c0_i32 = arith.constant 0 : i32
    %c0_i32_0 = arith.constant 0 : i32
    return %arg0, %c0_i32 : i32, i32
  }
  func.func @transform_1(%arg0: i32) -> (i32, i32) {
    %c0_i32 = arith.constant 0 : i32
    %c0_i32_0 = arith.constant 0 : i32
    %c0_i32_1 = arith.constant 0 : i32
    return %c0_i32, %c0_i32_0 : i32, i32
  }
  func.func @transform_2(%arg0: i32) -> (i32, i32) {
    %c0_i32 = arith.constant 0 : i32
    %c0_i32_0 = arith.constant 0 : i32
    %c0_i32_1 = arith.constant 0 : i32
    return %c0_i32, %c0_i32_0 : i32, i32
  }
  func.func @transform_3(%arg0: i32) -> (i32, i32) {
    %c0_i32 = arith.constant 0 : i32
    %c0_i32_0 = arith.constant 0 : i32
    %c0_i32_1 = arith.constant 0 : i32
    return %c0_i32, %c0_i32_0 : i32, i32
  }
  func.func @transform_4(%arg0: i32) -> (i32, i32) {
    %c0_i32 = arith.constant 0 : i32
    %c0_i32_0 = arith.constant 0 : i32
    %c0_i32_1 = arith.constant 0 : i32
    return %c0_i32, %c0_i32_0 : i32, i32
  }
  func.func @transform_5(%arg0: i32) -> (i32, i32) {
    %c0_i32 = arith.constant 0 : i32
    %c0_i32_0 = arith.constant 0 : i32
    %c0_i32_1 = arith.constant 0 : i32
    return %c0_i32, %c0_i32_0 : i32, i32
  }
  func.func @transform_6(%arg0: i32) -> (i32, i32) {
    %c0_i32 = arith.constant 0 : i32
    %c0_i32_0 = arith.constant 0 : i32
    %c0_i32_1 = arith.constant 0 : i32
    return %c0_i32, %c0_i32_0 : i32, i32
  }
  func.func @transform_7(%arg0: i32) -> (i32, i32) {
    %c0_i32 = arith.constant 0 : i32
    %c0_i32_0 = arith.constant 0 : i32
    return %arg0, %c0_i32 : i32, i32
  }
}

module attributes {stable_mosaic.version = 11 : i64} {
  func.func @_self_mha_res_ln_kernel(%arg0: i32, %arg1: memref<1x8x32xbf16, #tpu.memory_space<vmem>>, %arg2: memref<32x96xbf16, #tpu.memory_space<vmem>>, %arg3: memref<1x96xf32, #tpu.memory_space<vmem>>, %arg4: memref<32x32xbf16, #tpu.memory_space<vmem>>, %arg5: memref<1x32xf32, #tpu.memory_space<vmem>>, %arg6: memref<1x32xf32, #tpu.memory_space<vmem>>, %arg7: memref<1x32xf32, #tpu.memory_space<vmem>>, %arg8: memref<1x8x32xbf16, #tpu.memory_space<vmem>>) attributes {dimension_semantics = [#tpu.dimension_semantics<parallel>], iteration_bounds = array<i64: 2>, scalar_prefetch = 0 : i64, scratch_operands = 0 : i64, tpu.core_type = #tpu.core_type<tc>, window_params = [{transform_indices = @transform_0, window_bounds = array<i64: 1, 8, 32>}, {pipeline_mode = #tpu.pipeline_mode<synchronous>, transform_indices = @transform_1, window_bounds = array<i64: 32, 96>}, {pipeline_mode = #tpu.pipeline_mode<synchronous>, transform_indices = @transform_2, window_bounds = array<i64: 1, 96>}, {pipeline_mode = #tpu.pipeline_mode<synchronous>, transform_indices = @transform_3, window_bounds = array<i64: 32, 32>}, {pipeline_mode = #tpu.pipeline_mode<synchronous>, transform_indices = @transform_4, window_bounds = array<i64: 1, 32>}, {pipeline_mode = #tpu.pipeline_mode<synchronous>, transform_indices = @transform_5, window_bounds = array<i64: 1, 32>}, {pipeline_mode = #tpu.pipeline_mode<synchronous>, transform_indices = @transform_6, window_bounds = array<i64: 1, 32>}, {transform_indices = @transform_7, window_bounds = array<i64: 1, 8, 32>}]} {
    %c0 = arith.constant 0 : index
    %c0_0 = arith.constant 0 : index
    %c0_1 = arith.constant 0 : index
    %0 = vector.load %arg1[%c0, %c0_0, %c0_1] : memref<1x8x32xbf16, #tpu.memory_space<vmem>>, vector<1x8x32xbf16>
    %1 = vector.shape_cast %0 : vector<1x8x32xbf16> to vector<8x32xbf16>
    %c0_2 = arith.constant 0 : index
    %c0_3 = arith.constant 0 : index
    %2 = vector.load %arg2[%c0_2, %c0_3] : memref<32x96xbf16, #tpu.memory_space<vmem>>, vector<32x96xbf16>
    %cst = arith.constant dense<0.000000e+00> : vector<8x96xf32>
    %3 = tpu.matmul %1, %2, %cst {dimension_numbers = #tpu.dot_dimension_numbers<[1], [0], [0], [1], [0, 0, 1, 1], [], []>} : vector<8x32xbf16>, vector<32x96xbf16>, vector<8x96xf32> -> vector<8x96xf32>
    %c0_4 = arith.constant 0 : index
    %c0_5 = arith.constant 0 : index
    %4 = vector.load %arg3[%c0_4, %c0_5] : memref<1x96xf32, #tpu.memory_space<vmem>>, vector<1x96xf32>
    %5 = vector.broadcast %4 : vector<1x96xf32> to vector<8x96xf32>
    %6 = arith.addf %3, %5 : vector<8x96xf32>
    %7 = vector.extract_strided_slice %6 {offsets = [0, 0], sizes = [8, 32], strides = [1, 1]} : vector<8x96xf32> to vector<8x32xf32>
    %cst_6 = arith.constant 0.353553385 : f32
    %8 = vector.broadcast %cst_6 : f32 to vector<8x32xf32>
    %9 = arith.mulf %7, %8 : vector<8x32xf32>
    %10 = vector.extract_strided_slice %6 {offsets = [0, 32], sizes = [8, 32], strides = [1, 1]} : vector<8x96xf32> to vector<8x32xf32>
    %11 = vector.extract_strided_slice %6 {offsets = [0, 64], sizes = [8, 32], strides = [1, 1]} : vector<8x96xf32> to vector<8x32xf32>
    %c0_7 = arith.constant 0 : index
    %c0_8 = arith.constant 0 : index
    %12 = vector.load %arg4[%c0_7, %c0_8] : memref<32x32xbf16, #tpu.memory_space<vmem>>, vector<32x32xbf16>
    %c0_9 = arith.constant 0 : index
    %c0_10 = arith.constant 0 : index
    %13 = vector.load %arg5[%c0_9, %c0_10] : memref<1x32xf32, #tpu.memory_space<vmem>>, vector<1x32xf32>
    %14 = vector.extract_strided_slice %9 {offsets = [0, 0], sizes = [8, 8], strides = [1, 1]} : vector<8x32xf32> to vector<8x8xf32>
    %15 = arith.truncf %14 : vector<8x8xf32> to vector<8x8xbf16>
    %16 = vector.extract_strided_slice %10 {offsets = [0, 0], sizes = [8, 8], strides = [1, 1]} : vector<8x32xf32> to vector<8x8xf32>
    %17 = arith.truncf %16 : vector<8x8xf32> to vector<8x8xbf16>
    %18 = vector.extract_strided_slice %11 {offsets = [0, 0], sizes = [8, 8], strides = [1, 1]} : vector<8x32xf32> to vector<8x8xf32>
    %19 = arith.truncf %18 : vector<8x8xf32> to vector<8x8xbf16>
    %cst_11 = arith.constant dense<0.000000e+00> : vector<8x8xf32>
    %20 = tpu.matmul %15, %17, %cst_11 {dimension_numbers = #tpu.dot_dimension_numbers<[1], [1], [0], [0], [0, 0, 1, 0], [], []>} : vector<8x8xbf16>, vector<8x8xbf16>, vector<8x8xf32> -> vector<8x8xf32>
    %cst_12 = arith.constant dense<0xFF800000> : vector<8xf32>
    %21 = vector.multi_reduction <maximumf>, %20, %cst_12 [1] : vector<8x8xf32> to vector<8xf32>
    %22 = vector.shape_cast %21 : vector<8xf32> to vector<8x1xf32>
    %23 = vector.broadcast %22 : vector<8x1xf32> to vector<8x8xf32>
    %24 = arith.subf %20, %23 : vector<8x8xf32>
    %25 = math.exp %24 : vector<8x8xf32>
    %cst_13 = arith.constant dense<0.000000e+00> : vector<8xf32>
    %26 = vector.multi_reduction <add>, %25, %cst_13 [1] : vector<8x8xf32> to vector<8xf32>
    %27 = vector.shape_cast %26 : vector<8xf32> to vector<8x1xf32>
    %28 = tpu.reciprocal %27 {approx = true} : vector<8x1xf32> -> vector<8x1xf32>
    %29 = vector.broadcast %28 : vector<8x1xf32> to vector<8x8xf32>
    %30 = arith.mulf %25, %29 : vector<8x8xf32>
    %31 = arith.truncf %30 : vector<8x8xf32> to vector<8x8xbf16>
    %cst_14 = arith.constant dense<0.000000e+00> : vector<8x8xf32>
    %32 = tpu.matmul %31, %19, %cst_14 {dimension_numbers = #tpu.dot_dimension_numbers<[1], [0], [0], [1], [0, 0, 1, 1], [], []>} : vector<8x8xbf16>, vector<8x8xbf16>, vector<8x8xf32> -> vector<8x8xf32>
    %33 = vector.extract_strided_slice %9 {offsets = [0, 8], sizes = [8, 8], strides = [1, 1]} : vector<8x32xf32> to vector<8x8xf32>
    %34 = arith.truncf %33 : vector<8x8xf32> to vector<8x8xbf16>
    %35 = vector.extract_strided_slice %10 {offsets = [0, 8], sizes = [8, 8], strides = [1, 1]} : vector<8x32xf32> to vector<8x8xf32>
    %36 = arith.truncf %35 : vector<8x8xf32> to vector<8x8xbf16>
    %37 = vector.extract_strided_slice %11 {offsets = [0, 8], sizes = [8, 8], strides = [1, 1]} : vector<8x32xf32> to vector<8x8xf32>
    %38 = arith.truncf %37 : vector<8x8xf32> to vector<8x8xbf16>
    %cst_15 = arith.constant dense<0.000000e+00> : vector<8x8xf32>
    %39 = tpu.matmul %34, %36, %cst_15 {dimension_numbers = #tpu.dot_dimension_numbers<[1], [1], [0], [0], [0, 0, 1, 0], [], []>} : vector<8x8xbf16>, vector<8x8xbf16>, vector<8x8xf32> -> vector<8x8xf32>
    %cst_16 = arith.constant dense<0xFF800000> : vector<8xf32>
    %40 = vector.multi_reduction <maximumf>, %39, %cst_16 [1] : vector<8x8xf32> to vector<8xf32>
    %41 = vector.shape_cast %40 : vector<8xf32> to vector<8x1xf32>
    %42 = vector.broadcast %41 : vector<8x1xf32> to vector<8x8xf32>
    %43 = arith.subf %39, %42 : vector<8x8xf32>
    %44 = math.exp %43 : vector<8x8xf32>
    %cst_17 = arith.constant dense<0.000000e+00> : vector<8xf32>
    %45 = vector.multi_reduction <add>, %44, %cst_17 [1] : vector<8x8xf32> to vector<8xf32>
    %46 = vector.shape_cast %45 : vector<8xf32> to vector<8x1xf32>
    %47 = tpu.reciprocal %46 {approx = true} : vector<8x1xf32> -> vector<8x1xf32>
    %48 = vector.broadcast %47 : vector<8x1xf32> to vector<8x8xf32>
    %49 = arith.mulf %44, %48 : vector<8x8xf32>
    %50 = arith.truncf %49 : vector<8x8xf32> to vector<8x8xbf16>
    %cst_18 = arith.constant dense<0.000000e+00> : vector<8x8xf32>
    %51 = tpu.matmul %50, %38, %cst_18 {dimension_numbers = #tpu.dot_dimension_numbers<[1], [0], [0], [1], [0, 0, 1, 1], [], []>} : vector<8x8xbf16>, vector<8x8xbf16>, vector<8x8xf32> -> vector<8x8xf32>
    %52 = vector.extract_strided_slice %9 {offsets = [0, 16], sizes = [8, 8], strides = [1, 1]} : vector<8x32xf32> to vector<8x8xf32>
    %53 = arith.truncf %52 : vector<8x8xf32> to vector<8x8xbf16>
    %54 = vector.extract_strided_slice %10 {offsets = [0, 16], sizes = [8, 8], strides = [1, 1]} : vector<8x32xf32> to vector<8x8xf32>
    %55 = arith.truncf %54 : vector<8x8xf32> to vector<8x8xbf16>
    %56 = vector.extract_strided_slice %11 {offsets = [0, 16], sizes = [8, 8], strides = [1, 1]} : vector<8x32xf32> to vector<8x8xf32>
    %57 = arith.truncf %56 : vector<8x8xf32> to vector<8x8xbf16>
    %cst_19 = arith.constant dense<0.000000e+00> : vector<8x8xf32>
    %58 = tpu.matmul %53, %55, %cst_19 {dimension_numbers = #tpu.dot_dimension_numbers<[1], [1], [0], [0], [0, 0, 1, 0], [], []>} : vector<8x8xbf16>, vector<8x8xbf16>, vector<8x8xf32> -> vector<8x8xf32>
    %cst_20 = arith.constant dense<0xFF800000> : vector<8xf32>
    %59 = vector.multi_reduction <maximumf>, %58, %cst_20 [1] : vector<8x8xf32> to vector<8xf32>
    %60 = vector.shape_cast %59 : vector<8xf32> to vector<8x1xf32>
    %61 = vector.broadcast %60 : vector<8x1xf32> to vector<8x8xf32>
    %62 = arith.subf %58, %61 : vector<8x8xf32>
    %63 = math.exp %62 : vector<8x8xf32>
    %cst_21 = arith.constant dense<0.000000e+00> : vector<8xf32>
    %64 = vector.multi_reduction <add>, %63, %cst_21 [1] : vector<8x8xf32> to vector<8xf32>
    %65 = vector.shape_cast %64 : vector<8xf32> to vector<8x1xf32>
    %66 = tpu.reciprocal %65 {approx = true} : vector<8x1xf32> -> vector<8x1xf32>
    %67 = vector.broadcast %66 : vector<8x1xf32> to vector<8x8xf32>
    %68 = arith.mulf %63, %67 : vector<8x8xf32>
    %69 = arith.truncf %68 : vector<8x8xf32> to vector<8x8xbf16>
    %cst_22 = arith.constant dense<0.000000e+00> : vector<8x8xf32>
    %70 = tpu.matmul %69, %57, %cst_22 {dimension_numbers = #tpu.dot_dimension_numbers<[1], [0], [0], [1], [0, 0, 1, 1], [], []>} : vector<8x8xbf16>, vector<8x8xbf16>, vector<8x8xf32> -> vector<8x8xf32>
    %71 = vector.extract_strided_slice %9 {offsets = [0, 24], sizes = [8, 8], strides = [1, 1]} : vector<8x32xf32> to vector<8x8xf32>
    %72 = arith.truncf %71 : vector<8x8xf32> to vector<8x8xbf16>
    %73 = vector.extract_strided_slice %10 {offsets = [0, 24], sizes = [8, 8], strides = [1, 1]} : vector<8x32xf32> to vector<8x8xf32>
    %74 = arith.truncf %73 : vector<8x8xf32> to vector<8x8xbf16>
    %75 = vector.extract_strided_slice %11 {offsets = [0, 24], sizes = [8, 8], strides = [1, 1]} : vector<8x32xf32> to vector<8x8xf32>
    %76 = arith.truncf %75 : vector<8x8xf32> to vector<8x8xbf16>
    %cst_23 = arith.constant dense<0.000000e+00> : vector<8x8xf32>
    %77 = tpu.matmul %72, %74, %cst_23 {dimension_numbers = #tpu.dot_dimension_numbers<[1], [1], [0], [0], [0, 0, 1, 0], [], []>} : vector<8x8xbf16>, vector<8x8xbf16>, vector<8x8xf32> -> vector<8x8xf32>
    %cst_24 = arith.constant dense<0xFF800000> : vector<8xf32>
    %78 = vector.multi_reduction <maximumf>, %77, %cst_24 [1] : vector<8x8xf32> to vector<8xf32>
    %79 = vector.shape_cast %78 : vector<8xf32> to vector<8x1xf32>
    %80 = vector.broadcast %79 : vector<8x1xf32> to vector<8x8xf32>
    %81 = arith.subf %77, %80 : vector<8x8xf32>
    %82 = math.exp %81 : vector<8x8xf32>
    %cst_25 = arith.constant dense<0.000000e+00> : vector<8xf32>
    %83 = vector.multi_reduction <add>, %82, %cst_25 [1] : vector<8x8xf32> to vector<8xf32>
    %84 = vector.shape_cast %83 : vector<8xf32> to vector<8x1xf32>
    %85 = tpu.reciprocal %84 {approx = true} : vector<8x1xf32> -> vector<8x1xf32>
    %86 = vector.broadcast %85 : vector<8x1xf32> to vector<8x8xf32>
    %87 = arith.mulf %82, %86 : vector<8x8xf32>
    %88 = arith.truncf %87 : vector<8x8xf32> to vector<8x8xbf16>
    %cst_26 = arith.constant dense<0.000000e+00> : vector<8x8xf32>
    %89 = tpu.matmul %88, %76, %cst_26 {dimension_numbers = #tpu.dot_dimension_numbers<[1], [0], [0], [1], [0, 0, 1, 1], [], []>} : vector<8x8xbf16>, vector<8x8xbf16>, vector<8x8xf32> -> vector<8x8xf32>
    %90 = tpu.concatenate %32, %51, %70, %89 in 1 : vector<8x8xf32>, vector<8x8xf32>, vector<8x8xf32>, vector<8x8xf32> -> vector<8x32xf32>
    %91 = arith.truncf %90 : vector<8x32xf32> to vector<8x32xbf16>
    %cst_27 = arith.constant dense<0.000000e+00> : vector<8x32xf32>
    %92 = tpu.matmul %91, %12, %cst_27 {dimension_numbers = #tpu.dot_dimension_numbers<[1], [0], [0], [1], [0, 0, 1, 1], [], []>} : vector<8x32xbf16>, vector<32x32xbf16>, vector<8x32xf32> -> vector<8x32xf32>
    %93 = vector.broadcast %13 : vector<1x32xf32> to vector<8x32xf32>
    %94 = arith.addf %92, %93 : vector<8x32xf32>
    %95 = arith.extf %1 : vector<8x32xbf16> to vector<8x32xf32>
    %96 = arith.addf %94, %95 : vector<8x32xf32>
    %c0_28 = arith.constant 0 : index
    %c0_29 = arith.constant 0 : index
    %97 = vector.load %arg6[%c0_28, %c0_29] : memref<1x32xf32, #tpu.memory_space<vmem>>, vector<1x32xf32>
    %c0_30 = arith.constant 0 : index
    %c0_31 = arith.constant 0 : index
    %98 = vector.load %arg7[%c0_30, %c0_31] : memref<1x32xf32, #tpu.memory_space<vmem>>, vector<1x32xf32>
    %cst_32 = arith.constant dense<0.000000e+00> : vector<8xf32>
    %99 = vector.multi_reduction <add>, %96, %cst_32 [1] : vector<8x32xf32> to vector<8xf32>
    %100 = vector.shape_cast %99 : vector<8xf32> to vector<8x1xf32>
    %cst_33 = arith.constant 3.200000e+01 : f32
    %101 = vector.broadcast %cst_33 : f32 to vector<8x1xf32>
    %102 = arith.divf %100, %101 : vector<8x1xf32>
    %103 = vector.broadcast %102 : vector<8x1xf32> to vector<8x32xf32>
    %104 = arith.subf %96, %103 : vector<8x32xf32>
    %105 = arith.mulf %104, %104 : vector<8x32xf32>
    %cst_34 = arith.constant dense<0.000000e+00> : vector<8xf32>
    %106 = vector.multi_reduction <add>, %105, %cst_34 [1] : vector<8x32xf32> to vector<8xf32>
    %107 = vector.shape_cast %106 : vector<8xf32> to vector<8x1xf32>
    %cst_35 = arith.constant 3.200000e+01 : f32
    %108 = vector.broadcast %cst_35 : f32 to vector<8x1xf32>
    %109 = arith.divf %107, %108 : vector<8x1xf32>
    %110 = vector.broadcast %102 : vector<8x1xf32> to vector<8x32xf32>
    %111 = arith.subf %96, %110 : vector<8x32xf32>
    %cst_36 = arith.constant 9.99999974E-6 : f32
    %112 = vector.broadcast %cst_36 : f32 to vector<8x1xf32>
    %113 = arith.addf %109, %112 : vector<8x1xf32>
    %114 = math.rsqrt %113 : vector<8x1xf32>
    %115 = vector.broadcast %114 : vector<8x1xf32> to vector<8x32xf32>
    %116 = arith.mulf %111, %115 : vector<8x32xf32>
    %117 = vector.broadcast %97 : vector<1x32xf32> to vector<8x32xf32>
    %118 = arith.mulf %116, %117 : vector<8x32xf32>
    %119 = vector.broadcast %98 : vector<1x32xf32> to vector<8x32xf32>
    %120 = arith.addf %118, %119 : vector<8x32xf32>
    %121 = arith.truncf %120 : vector<8x32xf32> to vector<8x32xbf16>
    %c0_37 = arith.constant 0 : index
    %c0_38 = arith.constant 0 : index
    %c0_39 = arith.constant 0 : index
    %122 = vector.load %arg8[%c0_37, %c0_38, %c0_39] : memref<1x8x32xbf16, #tpu.memory_space<vmem>>, vector<1x8x32xbf16>
    %123 = vector.shape_cast %122 : vector<1x8x32xbf16> to vector<8x32xbf16>
    %124 = vector.shape_cast %121 : vector<8x32xbf16> to vector<1x8x32xbf16>
    tpu.vector_store %arg8[%c0_37, %c0_38, %c0_39], %124 {strides = array<i32>} : memref<1x8x32xbf16, #tpu.memory_space<vmem>>, vector<1x8x32xbf16>,
    return
  }
  func.func @transform_0(%arg0: i32) -> (i32, i32, i32) {
    %c0_i32 = arith.constant 0 : i32
    %c0_i32_0 = arith.constant 0 : i32
    %c0_i32_1 = arith.constant 0 : i32
    return %arg0, %c0_i32, %c0_i32_0 : i32, i32, i32
  }
  func.func @transform_1(%arg0: i32) -> (i32, i32) {
    %c0_i32 = arith.constant 0 : i32
    %c0_i32_0 = arith.constant 0 : i32
    %c0_i32_1 = arith.constant 0 : i32
    return %c0_i32, %c0_i32_0 : i32, i32
  }
  func.func @transform_2(%arg0: i32) -> (i32, i32) {
    %c0_i32 = arith.constant 0 : i32
    %c0_i32_0 = arith.constant 0 : i32
    %c0_i32_1 = arith.constant 0 : i32
    return %c0_i32, %c0_i32_0 : i32, i32
  }
  func.func @transform_3(%arg0: i32) -> (i32, i32) {
    %c0_i32 = arith.constant 0 : i32
    %c0_i32_0 = arith.constant 0 : i32
    %c0_i32_1 = arith.constant 0 : i32
    return %c0_i32, %c0_i32_0 : i32, i32
  }
  func.func @transform_4(%arg0: i32) -> (i32, i32) {
    %c0_i32 = arith.constant 0 : i32
    %c0_i32_0 = arith.constant 0 : i32
    %c0_i32_1 = arith.constant 0 : i32
    return %c0_i32, %c0_i32_0 : i32, i32
  }
  func.func @transform_5(%arg0: i32) -> (i32, i32) {
    %c0_i32 = arith.constant 0 : i32
    %c0_i32_0 = arith.constant 0 : i32
    %c0_i32_1 = arith.constant 0 : i32
    return %c0_i32, %c0_i32_0 : i32, i32
  }
  func.func @transform_6(%arg0: i32) -> (i32, i32) {
    %c0_i32 = arith.constant 0 : i32
    %c0_i32_0 = arith.constant 0 : i32
    %c0_i32_1 = arith.constant 0 : i32
    return %c0_i32, %c0_i32_0 : i32, i32
  }
  func.func @transform_7(%arg0: i32) -> (i32, i32, i32) {
    %c0_i32 = arith.constant 0 : i32
    %c0_i32_0 = arith.constant 0 : i32
    %c0_i32_1 = arith.constant 0 : i32
    return %arg0, %c0_i32, %c0_i32_0 : i32, i32, i32
  }
}

module attributes {stable_mosaic.version = 11 : i64} {
  func.func @_ffn_res_ln_kernel(%arg0: i32, %arg1: memref<16x32xbf16, #tpu.memory_space<vmem>>, %arg2: memref<32x64xbf16, #tpu.memory_space<vmem>>, %arg3: memref<1x64xf32, #tpu.memory_space<vmem>>, %arg4: memref<64x32xbf16, #tpu.memory_space<vmem>>, %arg5: memref<1x32xf32, #tpu.memory_space<vmem>>, %arg6: memref<1x32xf32, #tpu.memory_space<vmem>>, %arg7: memref<1x32xf32, #tpu.memory_space<vmem>>, %arg8: memref<16x32xbf16, #tpu.memory_space<vmem>>) attributes {dimension_semantics = [#tpu.dimension_semantics<parallel>], iteration_bounds = array<i64: 1>, scalar_prefetch = 0 : i64, scratch_operands = 0 : i64, tpu.core_type = #tpu.core_type<tc>, window_params = [{transform_indices = @transform_0, window_bounds = array<i64: 16, 32>}, {pipeline_mode = #tpu.pipeline_mode<synchronous>, transform_indices = @transform_1, window_bounds = array<i64: 32, 64>}, {pipeline_mode = #tpu.pipeline_mode<synchronous>, transform_indices = @transform_2, window_bounds = array<i64: 1, 64>}, {pipeline_mode = #tpu.pipeline_mode<synchronous>, transform_indices = @transform_3, window_bounds = array<i64: 64, 32>}, {pipeline_mode = #tpu.pipeline_mode<synchronous>, transform_indices = @transform_4, window_bounds = array<i64: 1, 32>}, {pipeline_mode = #tpu.pipeline_mode<synchronous>, transform_indices = @transform_5, window_bounds = array<i64: 1, 32>}, {pipeline_mode = #tpu.pipeline_mode<synchronous>, transform_indices = @transform_6, window_bounds = array<i64: 1, 32>}, {transform_indices = @transform_7, window_bounds = array<i64: 16, 32>}]} {
    %c0 = arith.constant 0 : index
    %c0_0 = arith.constant 0 : index
    %0 = vector.load %arg1[%c0, %c0_0] : memref<16x32xbf16, #tpu.memory_space<vmem>>, vector<16x32xbf16>
    %c0_1 = arith.constant 0 : index
    %c0_2 = arith.constant 0 : index
    %1 = vector.load %arg2[%c0_1, %c0_2] : memref<32x64xbf16, #tpu.memory_space<vmem>>, vector<32x64xbf16>
    %cst = arith.constant dense<0.000000e+00> : vector<16x64xf32>
    %2 = tpu.matmul %0, %1, %cst {dimension_numbers = #tpu.dot_dimension_numbers<[1], [0], [0], [1], [0, 0, 1, 1], [], []>} : vector<16x32xbf16>, vector<32x64xbf16>, vector<16x64xf32> -> vector<16x64xf32>
    %c0_3 = arith.constant 0 : index
    %c0_4 = arith.constant 0 : index
    %3 = vector.load %arg3[%c0_3, %c0_4] : memref<1x64xf32, #tpu.memory_space<vmem>>, vector<1x64xf32>
    %4 = vector.broadcast %3 : vector<1x64xf32> to vector<16x64xf32>
    %5 = arith.addf %2, %4 : vector<16x64xf32>
    %cst_5 = arith.constant 0.000000e+00 : f32
    %6 = vector.broadcast %cst_5 : f32 to vector<16x64xf32>
    %7 = arith.maximumf %5, %6 : vector<16x64xf32>
    %c0_6 = arith.constant 0 : index
    %c0_7 = arith.constant 0 : index
    %8 = vector.load %arg4[%c0_6, %c0_7] : memref<64x32xbf16, #tpu.memory_space<vmem>>, vector<64x32xbf16>
    %9 = arith.truncf %7 : vector<16x64xf32> to vector<16x64xbf16>
    %cst_8 = arith.constant dense<0.000000e+00> : vector<16x32xf32>
    %10 = tpu.matmul %9, %8, %cst_8 {dimension_numbers = #tpu.dot_dimension_numbers<[1], [0], [0], [1], [0, 0, 1, 1], [], []>} : vector<16x64xbf16>, vector<64x32xbf16>, vector<16x32xf32> -> vector<16x32xf32>
    %c0_9 = arith.constant 0 : index
    %c0_10 = arith.constant 0 : index
    %11 = vector.load %arg5[%c0_9, %c0_10] : memref<1x32xf32, #tpu.memory_space<vmem>>, vector<1x32xf32>
    %12 = vector.broadcast %11 : vector<1x32xf32> to vector<16x32xf32>
    %13 = arith.addf %10, %12 : vector<16x32xf32>
    %c0_11 = arith.constant 0 : index
    %c0_12 = arith.constant 0 : index
    %14 = vector.load %arg1[%c0_11, %c0_12] : memref<16x32xbf16, #tpu.memory_space<vmem>>, vector<16x32xbf16>
    %15 = arith.extf %14 : vector<16x32xbf16> to vector<16x32xf32>
    %16 = arith.addf %13, %15 : vector<16x32xf32>
    %c0_13 = arith.constant 0 : index
    %c0_14 = arith.constant 0 : index
    %17 = vector.load %arg6[%c0_13, %c0_14] : memref<1x32xf32, #tpu.memory_space<vmem>>, vector<1x32xf32>
    %c0_15 = arith.constant 0 : index
    %c0_16 = arith.constant 0 : index
    %18 = vector.load %arg7[%c0_15, %c0_16] : memref<1x32xf32, #tpu.memory_space<vmem>>, vector<1x32xf32>
    %cst_17 = arith.constant dense<0.000000e+00> : vector<16xf32>
    %19 = vector.multi_reduction <add>, %16, %cst_17 [1] : vector<16x32xf32> to vector<16xf32>
    %20 = vector.shape_cast %19 : vector<16xf32> to vector<16x1xf32>
    %cst_18 = arith.constant 3.200000e+01 : f32
    %21 = vector.broadcast %cst_18 : f32 to vector<16x1xf32>
    %22 = arith.divf %20, %21 : vector<16x1xf32>
    %23 = vector.broadcast %22 : vector<16x1xf32> to vector<16x32xf32>
    %24 = arith.subf %16, %23 : vector<16x32xf32>
    %25 = arith.mulf %24, %24 : vector<16x32xf32>
    %cst_19 = arith.constant dense<0.000000e+00> : vector<16xf32>
    %26 = vector.multi_reduction <add>, %25, %cst_19 [1] : vector<16x32xf32> to vector<16xf32>
    %27 = vector.shape_cast %26 : vector<16xf32> to vector<16x1xf32>
    %cst_20 = arith.constant 3.200000e+01 : f32
    %28 = vector.broadcast %cst_20 : f32 to vector<16x1xf32>
    %29 = arith.divf %27, %28 : vector<16x1xf32>
    %30 = vector.broadcast %22 : vector<16x1xf32> to vector<16x32xf32>
    %31 = arith.subf %16, %30 : vector<16x32xf32>
    %cst_21 = arith.constant 9.99999974E-6 : f32
    %32 = vector.broadcast %cst_21 : f32 to vector<16x1xf32>
    %33 = arith.addf %29, %32 : vector<16x1xf32>
    %34 = math.rsqrt %33 : vector<16x1xf32>
    %35 = vector.broadcast %34 : vector<16x1xf32> to vector<16x32xf32>
    %36 = arith.mulf %31, %35 : vector<16x32xf32>
    %37 = vector.broadcast %17 : vector<1x32xf32> to vector<16x32xf32>
    %38 = arith.mulf %36, %37 : vector<16x32xf32>
    %39 = vector.broadcast %18 : vector<1x32xf32> to vector<16x32xf32>
    %40 = arith.addf %38, %39 : vector<16x32xf32>
    %41 = arith.truncf %40 : vector<16x32xf32> to vector<16x32xbf16>
    %c0_22 = arith.constant 0 : index
    %c0_23 = arith.constant 0 : index
    %42 = vector.load %arg8[%c0_22, %c0_23] : memref<16x32xbf16, #tpu.memory_space<vmem>>, vector<16x32xbf16>
    tpu.vector_store %arg8[%c0_22, %c0_23], %41 {strides = array<i32>} : memref<16x32xbf16, #tpu.memory_space<vmem>>, vector<16x32xbf16>,
    return
  }
  func.func @transform_0(%arg0: i32) -> (i32, i32) {
    %c0_i32 = arith.constant 0 : i32
    %c0_i32_0 = arith.constant 0 : i32
    return %arg0, %c0_i32 : i32, i32
  }
  func.func @transform_1(%arg0: i32) -> (i32, i32) {
    %c0_i32 = arith.constant 0 : i32
    %c0_i32_0 = arith.constant 0 : i32
    %c0_i32_1 = arith.constant 0 : i32
    return %c0_i32, %c0_i32_0 : i32, i32
  }
  func.func @transform_2(%arg0: i32) -> (i32, i32) {
    %c0_i32 = arith.constant 0 : i32
    %c0_i32_0 = arith.constant 0 : i32
    %c0_i32_1 = arith.constant 0 : i32
    return %c0_i32, %c0_i32_0 : i32, i32
  }
  func.func @transform_3(%arg0: i32) -> (i32, i32) {
    %c0_i32 = arith.constant 0 : i32
    %c0_i32_0 = arith.constant 0 : i32
    %c0_i32_1 = arith.constant 0 : i32
    return %c0_i32, %c0_i32_0 : i32, i32
  }
  func.func @transform_4(%arg0: i32) -> (i32, i32) {
    %c0_i32 = arith.constant 0 : i32
    %c0_i32_0 = arith.constant 0 : i32
    %c0_i32_1 = arith.constant 0 : i32
    return %c0_i32, %c0_i32_0 : i32, i32
  }
  func.func @transform_5(%arg0: i32) -> (i32, i32) {
    %c0_i32 = arith.constant 0 : i32
    %c0_i32_0 = arith.constant 0 : i32
    %c0_i32_1 = arith.constant 0 : i32
    return %c0_i32, %c0_i32_0 : i32, i32
  }
  func.func @transform_6(%arg0: i32) -> (i32, i32) {
    %c0_i32 = arith.constant 0 : i32
    %c0_i32_0 = arith.constant 0 : i32
    %c0_i32_1 = arith.constant 0 : i32
    return %c0_i32, %c0_i32_0 : i32, i32
  }
  func.func @transform_7(%arg0: i32) -> (i32, i32) {
    %c0_i32 = arith.constant 0 : i32
    %c0_i32_0 = arith.constant 0 : i32
    return %arg0, %c0_i32 : i32, i32
  }
}

module attributes {stable_mosaic.version = 11 : i64} {
  func.func @_cross_mha_kernel(%arg0: i32, %arg1: memref<8x32xbf16, #tpu.memory_space<vmem>>, %arg2: memref<1x16x32xbf16, #tpu.memory_space<vmem>>, %arg3: memref<32x96xbf16, #tpu.memory_space<vmem>>, %arg4: memref<1x96xf32, #tpu.memory_space<vmem>>, %arg5: memref<32x32xbf16, #tpu.memory_space<vmem>>, %arg6: memref<1x32xf32, #tpu.memory_space<vmem>>, %arg7: memref<1x8x32xbf16, #tpu.memory_space<vmem>>) attributes {dimension_semantics = [#tpu.dimension_semantics<parallel>], iteration_bounds = array<i64: 2>, scalar_prefetch = 0 : i64, scratch_operands = 0 : i64, tpu.core_type = #tpu.core_type<tc>, window_params = [{pipeline_mode = #tpu.pipeline_mode<synchronous>, transform_indices = @transform_0, window_bounds = array<i64: 8, 32>}, {transform_indices = @transform_1, window_bounds = array<i64: 1, 16, 32>}, {pipeline_mode = #tpu.pipeline_mode<synchronous>, transform_indices = @transform_2, window_bounds = array<i64: 32, 96>}, {pipeline_mode = #tpu.pipeline_mode<synchronous>, transform_indices = @transform_3, window_bounds = array<i64: 1, 96>}, {pipeline_mode = #tpu.pipeline_mode<synchronous>, transform_indices = @transform_4, window_bounds = array<i64: 32, 32>}, {pipeline_mode = #tpu.pipeline_mode<synchronous>, transform_indices = @transform_5, window_bounds = array<i64: 1, 32>}, {transform_indices = @transform_6, window_bounds = array<i64: 1, 8, 32>}]} {
    %c0 = arith.constant 0 : index
    %c0_0 = arith.constant 0 : index
    %0 = vector.load %arg1[%c0, %c0_0] : memref<8x32xbf16, #tpu.memory_space<vmem>>, vector<8x32xbf16>
    %c0_1 = arith.constant 0 : index
    %c0_2 = arith.constant 0 : index
    %c0_3 = arith.constant 0 : index
    %1 = vector.load %arg2[%c0_1, %c0_2, %c0_3] : memref<1x16x32xbf16, #tpu.memory_space<vmem>>, vector<1x16x32xbf16>
    %2 = vector.shape_cast %1 : vector<1x16x32xbf16> to vector<16x32xbf16>
    %c0_4 = arith.constant 0 : index
    %c0_5 = arith.constant 0 : index
    %3 = vector.load %arg3[%c0_4, %c0_5] : memref<32x96xbf16, #tpu.memory_space<vmem>>, vector<32x96xbf16>
    %c0_6 = arith.constant 0 : index
    %c0_7 = arith.constant 0 : index
    %4 = vector.load %arg4[%c0_6, %c0_7] : memref<1x96xf32, #tpu.memory_space<vmem>>, vector<1x96xf32>
    %5 = vector.extract_strided_slice %3 {offsets = [0, 0], sizes = [32, 32], strides = [1, 1]} : vector<32x96xbf16> to vector<32x32xbf16>
    %cst = arith.constant dense<0.000000e+00> : vector<8x32xf32>
    %6 = tpu.matmul %0, %5, %cst {dimension_numbers = #tpu.dot_dimension_numbers<[1], [0], [0], [1], [0, 0, 1, 1], [], []>} : vector<8x32xbf16>, vector<32x32xbf16>, vector<8x32xf32> -> vector<8x32xf32>
    %7 = vector.extract_strided_slice %4 {offsets = [0, 0], sizes = [1, 32], strides = [1, 1]} : vector<1x96xf32> to vector<1x32xf32>
    %8 = vector.broadcast %7 : vector<1x32xf32> to vector<8x32xf32>
    %9 = arith.addf %6, %8 : vector<8x32xf32>
    %cst_8 = arith.constant 0.353553385 : f32
    %10 = vector.broadcast %cst_8 : f32 to vector<8x32xf32>
    %11 = arith.mulf %9, %10 : vector<8x32xf32>
    %12 = vector.extract_strided_slice %3 {offsets = [0, 32], sizes = [32, 64], strides = [1, 1]} : vector<32x96xbf16> to vector<32x64xbf16>
    %cst_9 = arith.constant dense<0.000000e+00> : vector<16x64xf32>
    %13 = tpu.matmul %2, %12, %cst_9 {dimension_numbers = #tpu.dot_dimension_numbers<[1], [0], [0], [1], [0, 0, 1, 1], [], []>} : vector<16x32xbf16>, vector<32x64xbf16>, vector<16x64xf32> -> vector<16x64xf32>
    %14 = vector.extract_strided_slice %4 {offsets = [0, 32], sizes = [1, 64], strides = [1, 1]} : vector<1x96xf32> to vector<1x64xf32>
    %15 = vector.broadcast %14 : vector<1x64xf32> to vector<16x64xf32>
    %16 = arith.addf %13, %15 : vector<16x64xf32>
    %17 = vector.extract_strided_slice %16 {offsets = [0, 0], sizes = [16, 32], strides = [1, 1]} : vector<16x64xf32> to vector<16x32xf32>
    %18 = vector.extract_strided_slice %16 {offsets = [0, 32], sizes = [16, 32], strides = [1, 1]} : vector<16x64xf32> to vector<16x32xf32>
    %c0_10 = arith.constant 0 : index
    %c0_11 = arith.constant 0 : index
    %19 = vector.load %arg5[%c0_10, %c0_11] : memref<32x32xbf16, #tpu.memory_space<vmem>>, vector<32x32xbf16>
    %c0_12 = arith.constant 0 : index
    %c0_13 = arith.constant 0 : index
    %20 = vector.load %arg6[%c0_12, %c0_13] : memref<1x32xf32, #tpu.memory_space<vmem>>, vector<1x32xf32>
    %21 = vector.extract_strided_slice %11 {offsets = [0, 0], sizes = [8, 8], strides = [1, 1]} : vector<8x32xf32> to vector<8x8xf32>
    %22 = arith.truncf %21 : vector<8x8xf32> to vector<8x8xbf16>
    %23 = vector.extract_strided_slice %17 {offsets = [0, 0], sizes = [16, 8], strides = [1, 1]} : vector<16x32xf32> to vector<16x8xf32>
    %24 = arith.truncf %23 : vector<16x8xf32> to vector<16x8xbf16>
    %25 = vector.extract_strided_slice %18 {offsets = [0, 0], sizes = [16, 8], strides = [1, 1]} : vector<16x32xf32> to vector<16x8xf32>
    %26 = arith.truncf %25 : vector<16x8xf32> to vector<16x8xbf16>
    %cst_14 = arith.constant dense<0.000000e+00> : vector<8x16xf32>
    %27 = tpu.matmul %22, %24, %cst_14 {dimension_numbers = #tpu.dot_dimension_numbers<[1], [1], [0], [0], [0, 0, 1, 0], [], []>} : vector<8x8xbf16>, vector<16x8xbf16>, vector<8x16xf32> -> vector<8x16xf32>
    %cst_15 = arith.constant dense<0xFF800000> : vector<8xf32>
    %28 = vector.multi_reduction <maximumf>, %27, %cst_15 [1] : vector<8x16xf32> to vector<8xf32>
    %29 = vector.shape_cast %28 : vector<8xf32> to vector<8x1xf32>
    %30 = vector.broadcast %29 : vector<8x1xf32> to vector<8x16xf32>
    %31 = arith.subf %27, %30 : vector<8x16xf32>
    %32 = math.exp %31 : vector<8x16xf32>
    %cst_16 = arith.constant dense<0.000000e+00> : vector<8xf32>
    %33 = vector.multi_reduction <add>, %32, %cst_16 [1] : vector<8x16xf32> to vector<8xf32>
    %34 = vector.shape_cast %33 : vector<8xf32> to vector<8x1xf32>
    %35 = tpu.reciprocal %34 {approx = true} : vector<8x1xf32> -> vector<8x1xf32>
    %36 = vector.broadcast %35 : vector<8x1xf32> to vector<8x16xf32>
    %37 = arith.mulf %32, %36 : vector<8x16xf32>
    %38 = arith.truncf %37 : vector<8x16xf32> to vector<8x16xbf16>
    %cst_17 = arith.constant dense<0.000000e+00> : vector<8x8xf32>
    %39 = tpu.matmul %38, %26, %cst_17 {dimension_numbers = #tpu.dot_dimension_numbers<[1], [0], [0], [1], [0, 0, 1, 1], [], []>} : vector<8x16xbf16>, vector<16x8xbf16>, vector<8x8xf32> -> vector<8x8xf32>
    %40 = vector.extract_strided_slice %11 {offsets = [0, 8], sizes = [8, 8], strides = [1, 1]} : vector<8x32xf32> to vector<8x8xf32>
    %41 = arith.truncf %40 : vector<8x8xf32> to vector<8x8xbf16>
    %42 = vector.extract_strided_slice %17 {offsets = [0, 8], sizes = [16, 8], strides = [1, 1]} : vector<16x32xf32> to vector<16x8xf32>
    %43 = arith.truncf %42 : vector<16x8xf32> to vector<16x8xbf16>
    %44 = vector.extract_strided_slice %18 {offsets = [0, 8], sizes = [16, 8], strides = [1, 1]} : vector<16x32xf32> to vector<16x8xf32>
    %45 = arith.truncf %44 : vector<16x8xf32> to vector<16x8xbf16>
    %cst_18 = arith.constant dense<0.000000e+00> : vector<8x16xf32>
    %46 = tpu.matmul %41, %43, %cst_18 {dimension_numbers = #tpu.dot_dimension_numbers<[1], [1], [0], [0], [0, 0, 1, 0], [], []>} : vector<8x8xbf16>, vector<16x8xbf16>, vector<8x16xf32> -> vector<8x16xf32>
    %cst_19 = arith.constant dense<0xFF800000> : vector<8xf32>
    %47 = vector.multi_reduction <maximumf>, %46, %cst_19 [1] : vector<8x16xf32> to vector<8xf32>
    %48 = vector.shape_cast %47 : vector<8xf32> to vector<8x1xf32>
    %49 = vector.broadcast %48 : vector<8x1xf32> to vector<8x16xf32>
    %50 = arith.subf %46, %49 : vector<8x16xf32>
    %51 = math.exp %50 : vector<8x16xf32>
    %cst_20 = arith.constant dense<0.000000e+00> : vector<8xf32>
    %52 = vector.multi_reduction <add>, %51, %cst_20 [1] : vector<8x16xf32> to vector<8xf32>
    %53 = vector.shape_cast %52 : vector<8xf32> to vector<8x1xf32>
    %54 = tpu.reciprocal %53 {approx = true} : vector<8x1xf32> -> vector<8x1xf32>
    %55 = vector.broadcast %54 : vector<8x1xf32> to vector<8x16xf32>
    %56 = arith.mulf %51, %55 : vector<8x16xf32>
    %57 = arith.truncf %56 : vector<8x16xf32> to vector<8x16xbf16>
    %cst_21 = arith.constant dense<0.000000e+00> : vector<8x8xf32>
    %58 = tpu.matmul %57, %45, %cst_21 {dimension_numbers = #tpu.dot_dimension_numbers<[1], [0], [0], [1], [0, 0, 1, 1], [], []>} : vector<8x16xbf16>, vector<16x8xbf16>, vector<8x8xf32> -> vector<8x8xf32>
    %59 = vector.extract_strided_slice %11 {offsets = [0, 16], sizes = [8, 8], strides = [1, 1]} : vector<8x32xf32> to vector<8x8xf32>
    %60 = arith.truncf %59 : vector<8x8xf32> to vector<8x8xbf16>
    %61 = vector.extract_strided_slice %17 {offsets = [0, 16], sizes = [16, 8], strides = [1, 1]} : vector<16x32xf32> to vector<16x8xf32>
    %62 = arith.truncf %61 : vector<16x8xf32> to vector<16x8xbf16>
    %63 = vector.extract_strided_slice %18 {offsets = [0, 16], sizes = [16, 8], strides = [1, 1]} : vector<16x32xf32> to vector<16x8xf32>
    %64 = arith.truncf %63 : vector<16x8xf32> to vector<16x8xbf16>
    %cst_22 = arith.constant dense<0.000000e+00> : vector<8x16xf32>
    %65 = tpu.matmul %60, %62, %cst_22 {dimension_numbers = #tpu.dot_dimension_numbers<[1], [1], [0], [0], [0, 0, 1, 0], [], []>} : vector<8x8xbf16>, vector<16x8xbf16>, vector<8x16xf32> -> vector<8x16xf32>
    %cst_23 = arith.constant dense<0xFF800000> : vector<8xf32>
    %66 = vector.multi_reduction <maximumf>, %65, %cst_23 [1] : vector<8x16xf32> to vector<8xf32>
    %67 = vector.shape_cast %66 : vector<8xf32> to vector<8x1xf32>
    %68 = vector.broadcast %67 : vector<8x1xf32> to vector<8x16xf32>
    %69 = arith.subf %65, %68 : vector<8x16xf32>
    %70 = math.exp %69 : vector<8x16xf32>
    %cst_24 = arith.constant dense<0.000000e+00> : vector<8xf32>
    %71 = vector.multi_reduction <add>, %70, %cst_24 [1] : vector<8x16xf32> to vector<8xf32>
    %72 = vector.shape_cast %71 : vector<8xf32> to vector<8x1xf32>
    %73 = tpu.reciprocal %72 {approx = true} : vector<8x1xf32> -> vector<8x1xf32>
    %74 = vector.broadcast %73 : vector<8x1xf32> to vector<8x16xf32>
    %75 = arith.mulf %70, %74 : vector<8x16xf32>
    %76 = arith.truncf %75 : vector<8x16xf32> to vector<8x16xbf16>
    %cst_25 = arith.constant dense<0.000000e+00> : vector<8x8xf32>
    %77 = tpu.matmul %76, %64, %cst_25 {dimension_numbers = #tpu.dot_dimension_numbers<[1], [0], [0], [1], [0, 0, 1, 1], [], []>} : vector<8x16xbf16>, vector<16x8xbf16>, vector<8x8xf32> -> vector<8x8xf32>
    %78 = vector.extract_strided_slice %11 {offsets = [0, 24], sizes = [8, 8], strides = [1, 1]} : vector<8x32xf32> to vector<8x8xf32>
    %79 = arith.truncf %78 : vector<8x8xf32> to vector<8x8xbf16>
    %80 = vector.extract_strided_slice %17 {offsets = [0, 24], sizes = [16, 8], strides = [1, 1]} : vector<16x32xf32> to vector<16x8xf32>
    %81 = arith.truncf %80 : vector<16x8xf32> to vector<16x8xbf16>
    %82 = vector.extract_strided_slice %18 {offsets = [0, 24], sizes = [16, 8], strides = [1, 1]} : vector<16x32xf32> to vector<16x8xf32>
    %83 = arith.truncf %82 : vector<16x8xf32> to vector<16x8xbf16>
    %cst_26 = arith.constant dense<0.000000e+00> : vector<8x16xf32>
    %84 = tpu.matmul %79, %81, %cst_26 {dimension_numbers = #tpu.dot_dimension_numbers<[1], [1], [0], [0], [0, 0, 1, 0], [], []>} : vector<8x8xbf16>, vector<16x8xbf16>, vector<8x16xf32> -> vector<8x16xf32>
    %cst_27 = arith.constant dense<0xFF800000> : vector<8xf32>
    %85 = vector.multi_reduction <maximumf>, %84, %cst_27 [1] : vector<8x16xf32> to vector<8xf32>
    %86 = vector.shape_cast %85 : vector<8xf32> to vector<8x1xf32>
    %87 = vector.broadcast %86 : vector<8x1xf32> to vector<8x16xf32>
    %88 = arith.subf %84, %87 : vector<8x16xf32>
    %89 = math.exp %88 : vector<8x16xf32>
    %cst_28 = arith.constant dense<0.000000e+00> : vector<8xf32>
    %90 = vector.multi_reduction <add>, %89, %cst_28 [1] : vector<8x16xf32> to vector<8xf32>
    %91 = vector.shape_cast %90 : vector<8xf32> to vector<8x1xf32>
    %92 = tpu.reciprocal %91 {approx = true} : vector<8x1xf32> -> vector<8x1xf32>
    %93 = vector.broadcast %92 : vector<8x1xf32> to vector<8x16xf32>
    %94 = arith.mulf %89, %93 : vector<8x16xf32>
    %95 = arith.truncf %94 : vector<8x16xf32> to vector<8x16xbf16>
    %cst_29 = arith.constant dense<0.000000e+00> : vector<8x8xf32>
    %96 = tpu.matmul %95, %83, %cst_29 {dimension_numbers = #tpu.dot_dimension_numbers<[1], [0], [0], [1], [0, 0, 1, 1], [], []>} : vector<8x16xbf16>, vector<16x8xbf16>, vector<8x8xf32> -> vector<8x8xf32>
    %97 = tpu.concatenate %39, %58, %77, %96 in 1 : vector<8x8xf32>, vector<8x8xf32>, vector<8x8xf32>, vector<8x8xf32> -> vector<8x32xf32>
    %98 = arith.truncf %97 : vector<8x32xf32> to vector<8x32xbf16>
    %cst_30 = arith.constant dense<0.000000e+00> : vector<8x32xf32>
    %99 = tpu.matmul %98, %19, %cst_30 {dimension_numbers = #tpu.dot_dimension_numbers<[1], [0], [0], [1], [0, 0, 1, 1], [], []>} : vector<8x32xbf16>, vector<32x32xbf16>, vector<8x32xf32> -> vector<8x32xf32>
    %100 = vector.broadcast %20 : vector<1x32xf32> to vector<8x32xf32>
    %101 = arith.addf %99, %100 : vector<8x32xf32>
    %102 = arith.truncf %101 : vector<8x32xf32> to vector<8x32xbf16>
    %c0_31 = arith.constant 0 : index
    %c0_32 = arith.constant 0 : index
    %c0_33 = arith.constant 0 : index
    %103 = vector.load %arg7[%c0_31, %c0_32, %c0_33] : memref<1x8x32xbf16, #tpu.memory_space<vmem>>, vector<1x8x32xbf16>
    %104 = vector.shape_cast %103 : vector<1x8x32xbf16> to vector<8x32xbf16>
    %105 = vector.shape_cast %102 : vector<8x32xbf16> to vector<1x8x32xbf16>
    tpu.vector_store %arg7[%c0_31, %c0_32, %c0_33], %105 {strides = array<i32>} : memref<1x8x32xbf16, #tpu.memory_space<vmem>>, vector<1x8x32xbf16>,
    return
  }
  func.func @transform_0(%arg0: i32) -> (i32, i32) {
    %c0_i32 = arith.constant 0 : i32
    %c0_i32_0 = arith.constant 0 : i32
    %c0_i32_1 = arith.constant 0 : i32
    return %c0_i32, %c0_i32_0 : i32, i32
  }
  func.func @transform_1(%arg0: i32) -> (i32, i32, i32) {
    %c0_i32 = arith.constant 0 : i32
    %c0_i32_0 = arith.constant 0 : i32
    %c0_i32_1 = arith.constant 0 : i32
    return %arg0, %c0_i32, %c0_i32_0 : i32, i32, i32
  }
  func.func @transform_2(%arg0: i32) -> (i32, i32) {
    %c0_i32 = arith.constant 0 : i32
    %c0_i32_0 = arith.constant 0 : i32
    %c0_i32_1 = arith.constant 0 : i32
    return %c0_i32, %c0_i32_0 : i32, i32
  }
  func.func @transform_3(%arg0: i32) -> (i32, i32) {
    %c0_i32 = arith.constant 0 : i32
    %c0_i32_0 = arith.constant 0 : i32
    %c0_i32_1 = arith.constant 0 : i32
    return %c0_i32, %c0_i32_0 : i32, i32
  }
  func.func @transform_4(%arg0: i32) -> (i32, i32) {
    %c0_i32 = arith.constant 0 : i32
    %c0_i32_0 = arith.constant 0 : i32
    %c0_i32_1 = arith.constant 0 : i32
    return %c0_i32, %c0_i32_0 : i32, i32
  }
  func.func @transform_5(%arg0: i32) -> (i32, i32) {
    %c0_i32 = arith.constant 0 : i32
    %c0_i32_0 = arith.constant 0 : i32
    %c0_i32_1 = arith.constant 0 : i32
    return %c0_i32, %c0_i32_0 : i32, i32
  }
  func.func @transform_6(%arg0: i32) -> (i32, i32, i32) {
    %c0_i32 = arith.constant 0 : i32
    %c0_i32_0 = arith.constant 0 : i32
    %c0_i32_1 = arith.constant 0 : i32
    return %arg0, %c0_i32, %c0_i32_0 : i32, i32, i32
  }
}

module attributes {stable_mosaic.version = 11 : i64} {
  func.func @_linear_kernel(%arg0: i32, %arg1: i32, %arg2: memref<16x32xbf16, #tpu.memory_space<vmem>>, %arg3: memref<32x32xbf16, #tpu.memory_space<vmem>>, %arg4: memref<1x32xf32, #tpu.memory_space<vmem>>, %arg5: memref<16x32xbf16, #tpu.memory_space<vmem>>) attributes {dimension_semantics = [#tpu.dimension_semantics<parallel>, #tpu.dimension_semantics<parallel>], iteration_bounds = array<i64: 1, 1>, scalar_prefetch = 0 : i64, scratch_operands = 0 : i64, tpu.core_type = #tpu.core_type<tc>, window_params = [{transform_indices = @transform_0, window_bounds = array<i64: 16, 32>}, {transform_indices = @transform_1, window_bounds = array<i64: 32, 32>}, {transform_indices = @transform_2, window_bounds = array<i64: 1, 32>}, {transform_indices = @transform_3, window_bounds = array<i64: 16, 32>}]} {
    %c0 = arith.constant 0 : index
    %c0_0 = arith.constant 0 : index
    %0 = vector.load %arg2[%c0, %c0_0] : memref<16x32xbf16, #tpu.memory_space<vmem>>, vector<16x32xbf16>
    %c0_1 = arith.constant 0 : index
    %c0_2 = arith.constant 0 : index
    %1 = vector.load %arg3[%c0_1, %c0_2] : memref<32x32xbf16, #tpu.memory_space<vmem>>, vector<32x32xbf16>
    %cst = arith.constant dense<0.000000e+00> : vector<16x32xf32>
    %2 = tpu.matmul %0, %1, %cst {dimension_numbers = #tpu.dot_dimension_numbers<[1], [0], [0], [1], [0, 0, 1, 1], [], []>} : vector<16x32xbf16>, vector<32x32xbf16>, vector<16x32xf32> -> vector<16x32xf32>
    %c0_3 = arith.constant 0 : index
    %c0_4 = arith.constant 0 : index
    %3 = vector.load %arg4[%c0_3, %c0_4] : memref<1x32xf32, #tpu.memory_space<vmem>>, vector<1x32xf32>
    %4 = vector.broadcast %3 : vector<1x32xf32> to vector<16x32xf32>
    %5 = arith.addf %2, %4 : vector<16x32xf32>
    %6 = arith.truncf %5 : vector<16x32xf32> to vector<16x32xbf16>
    %c0_5 = arith.constant 0 : index
    %c0_6 = arith.constant 0 : index
    %7 = vector.load %arg5[%c0_5, %c0_6] : memref<16x32xbf16, #tpu.memory_space<vmem>>, vector<16x32xbf16>
    tpu.vector_store %arg5[%c0_5, %c0_6], %6 {strides = array<i32>} : memref<16x32xbf16, #tpu.memory_space<vmem>>, vector<16x32xbf16>,
    return
  }
  func.func @transform_0(%arg0: i32, %arg1: i32) -> (i32, i32) {
    %c0_i32 = arith.constant 0 : i32
    %c0_i32_0 = arith.constant 0 : i32
    return %arg0, %c0_i32 : i32, i32
  }
  func.func @transform_1(%arg0: i32, %arg1: i32) -> (i32, i32) {
    %c0_i32 = arith.constant 0 : i32
    %c0_i32_0 = arith.constant 0 : i32
    return %c0_i32, %arg1 : i32, i32
  }
  func.func @transform_2(%arg0: i32, %arg1: i32) -> (i32, i32) {
    %c0_i32 = arith.constant 0 : i32
    %c0_i32_0 = arith.constant 0 : i32
    return %c0_i32, %arg1 : i32, i32
  }
  func.func @transform_3(%arg0: i32, %arg1: i32) -> (i32, i32) {
    %c0_i32 = arith.constant 0 : i32
    return %arg0, %arg1 : i32, i32
  }
}

module attributes {stable_mosaic.version = 11 : i64} {
  func.func @_embed_ln_kernel(%arg0: i32, %arg1: memref<1x8x32xbf16, #tpu.memory_space<vmem>>, %arg2: memref<8x32xbf16, #tpu.memory_space<vmem>>, %arg3: memref<1x32xbf16, #tpu.memory_space<vmem>>, %arg4: memref<1x32xf32, #tpu.memory_space<vmem>>, %arg5: memref<1x32xf32, #tpu.memory_space<vmem>>, %arg6: memref<1x8x32xbf16, #tpu.memory_space<vmem>>) attributes {dimension_semantics = [#tpu.dimension_semantics<parallel>], iteration_bounds = array<i64: 2>, scalar_prefetch = 0 : i64, scratch_operands = 0 : i64, tpu.core_type = #tpu.core_type<tc>, window_params = [{transform_indices = @transform_0, window_bounds = array<i64: 1, 8, 32>}, {pipeline_mode = #tpu.pipeline_mode<synchronous>, transform_indices = @transform_1, window_bounds = array<i64: 8, 32>}, {pipeline_mode = #tpu.pipeline_mode<synchronous>, transform_indices = @transform_2, window_bounds = array<i64: 1, 32>}, {pipeline_mode = #tpu.pipeline_mode<synchronous>, transform_indices = @transform_3, window_bounds = array<i64: 1, 32>}, {pipeline_mode = #tpu.pipeline_mode<synchronous>, transform_indices = @transform_4, window_bounds = array<i64: 1, 32>}, {transform_indices = @transform_5, window_bounds = array<i64: 1, 8, 32>}]} {
    %c0 = arith.constant 0 : index
    %c0_0 = arith.constant 0 : index
    %c0_1 = arith.constant 0 : index
    %0 = vector.load %arg1[%c0, %c0_0, %c0_1] : memref<1x8x32xbf16, #tpu.memory_space<vmem>>, vector<1x8x32xbf16>
    %1 = vector.shape_cast %0 : vector<1x8x32xbf16> to vector<8x32xbf16>
    %2 = arith.extf %1 : vector<8x32xbf16> to vector<8x32xf32>
    %c0_2 = arith.constant 0 : index
    %c0_3 = arith.constant 0 : index
    %3 = vector.load %arg2[%c0_2, %c0_3] : memref<8x32xbf16, #tpu.memory_space<vmem>>, vector<8x32xbf16>
    %4 = arith.extf %3 : vector<8x32xbf16> to vector<8x32xf32>
    %5 = arith.addf %2, %4 : vector<8x32xf32>
    %c0_4 = arith.constant 0 : index
    %c0_5 = arith.constant 0 : index
    %6 = vector.load %arg3[%c0_4, %c0_5] : memref<1x32xbf16, #tpu.memory_space<vmem>>, vector<1x32xbf16>
    %7 = arith.extf %6 : vector<1x32xbf16> to vector<1x32xf32>
    %8 = vector.broadcast %7 : vector<1x32xf32> to vector<8x32xf32>
    %9 = arith.addf %5, %8 : vector<8x32xf32>
    %c0_6 = arith.constant 0 : index
    %c0_7 = arith.constant 0 : index
    %10 = vector.load %arg4[%c0_6, %c0_7] : memref<1x32xf32, #tpu.memory_space<vmem>>, vector<1x32xf32>
    %c0_8 = arith.constant 0 : index
    %c0_9 = arith.constant 0 : index
    %11 = vector.load %arg5[%c0_8, %c0_9] : memref<1x32xf32, #tpu.memory_space<vmem>>, vector<1x32xf32>
    %cst = arith.constant dense<0.000000e+00> : vector<8xf32>
    %12 = vector.multi_reduction <add>, %9, %cst [1] : vector<8x32xf32> to vector<8xf32>
    %13 = vector.shape_cast %12 : vector<8xf32> to vector<8x1xf32>
    %cst_10 = arith.constant 3.200000e+01 : f32
    %14 = vector.broadcast %cst_10 : f32 to vector<8x1xf32>
    %15 = arith.divf %13, %14 : vector<8x1xf32>
    %16 = vector.broadcast %15 : vector<8x1xf32> to vector<8x32xf32>
    %17 = arith.subf %9, %16 : vector<8x32xf32>
    %18 = arith.mulf %17, %17 : vector<8x32xf32>
    %cst_11 = arith.constant dense<0.000000e+00> : vector<8xf32>
    %19 = vector.multi_reduction <add>, %18, %cst_11 [1] : vector<8x32xf32> to vector<8xf32>
    %20 = vector.shape_cast %19 : vector<8xf32> to vector<8x1xf32>
    %cst_12 = arith.constant 3.200000e+01 : f32
    %21 = vector.broadcast %cst_12 : f32 to vector<8x1xf32>
    %22 = arith.divf %20, %21 : vector<8x1xf32>
    %23 = vector.broadcast %15 : vector<8x1xf32> to vector<8x32xf32>
    %24 = arith.subf %9, %23 : vector<8x32xf32>
    %cst_13 = arith.constant 9.99999996E-13 : f32
    %25 = vector.broadcast %cst_13 : f32 to vector<8x1xf32>
    %26 = arith.addf %22, %25 : vector<8x1xf32>
    %27 = math.rsqrt %26 : vector<8x1xf32>
    %28 = vector.broadcast %27 : vector<8x1xf32> to vector<8x32xf32>
    %29 = arith.mulf %24, %28 : vector<8x32xf32>
    %30 = vector.broadcast %10 : vector<1x32xf32> to vector<8x32xf32>
    %31 = arith.mulf %29, %30 : vector<8x32xf32>
    %32 = vector.broadcast %11 : vector<1x32xf32> to vector<8x32xf32>
    %33 = arith.addf %31, %32 : vector<8x32xf32>
    %34 = arith.truncf %33 : vector<8x32xf32> to vector<8x32xbf16>
    %c0_14 = arith.constant 0 : index
    %c0_15 = arith.constant 0 : index
    %c0_16 = arith.constant 0 : index
    %35 = vector.load %arg6[%c0_14, %c0_15, %c0_16] : memref<1x8x32xbf16, #tpu.memory_space<vmem>>, vector<1x8x32xbf16>
    %36 = vector.shape_cast %35 : vector<1x8x32xbf16> to vector<8x32xbf16>
    %37 = vector.shape_cast %34 : vector<8x32xbf16> to vector<1x8x32xbf16>
    tpu.vector_store %arg6[%c0_14, %c0_15, %c0_16], %37 {strides = array<i32>} : memref<1x8x32xbf16, #tpu.memory_space<vmem>>, vector<1x8x32xbf16>,
    return
  }
  func.func @transform_0(%arg0: i32) -> (i32, i32, i32) {
    %c0_i32 = arith.constant 0 : i32
    %c0_i32_0 = arith.constant 0 : i32
    %c0_i32_1 = arith.constant 0 : i32
    return %arg0, %c0_i32, %c0_i32_0 : i32, i32, i32
  }
  func.func @transform_1(%arg0: i32) -> (i32, i32) {
    %c0_i32 = arith.constant 0 : i32
    %c0_i32_0 = arith.constant 0 : i32
    %c0_i32_1 = arith.constant 0 : i32
    return %c0_i32, %c0_i32_0 : i32, i32
  }
  func.func @transform_2(%arg0: i32) -> (i32, i32) {
    %c0_i32 = arith.constant 0 : i32
    %c0_i32_0 = arith.constant 0 : i32
    %c0_i32_1 = arith.constant 0 : i32
    return %c0_i32, %c0_i32_0 : i32, i32
  }
  func.func @transform_3(%arg0: i32) -> (i32, i32) {
    %c0_i32 = arith.constant 0 : i32
    %c0_i32_0 = arith.constant 0 : i32
    %c0_i32_1 = arith.constant 0 : i32
    return %c0_i32, %c0_i32_0 : i32, i32
  }
  func.func @transform_4(%arg0: i32) -> (i32, i32) {
    %c0_i32 = arith.constant 0 : i32
    %c0_i32_0 = arith.constant 0 : i32
    %c0_i32_1 = arith.constant 0 : i32
    return %c0_i32, %c0_i32_0 : i32, i32
  }
  func.func @transform_5(%arg0: i32) -> (i32, i32, i32) {
    %c0_i32 = arith.constant 0 : i32
    %c0_i32_0 = arith.constant 0 : i32
    %c0_i32_1 = arith.constant 0 : i32
    return %arg0, %c0_i32, %c0_i32_0 : i32, i32, i32
  }
}

module attributes {stable_mosaic.version = 11 : i64} {
  func.func @_self_mha_res_ln_kernel(%arg0: i32, %arg1: memref<1x8x32xbf16, #tpu.memory_space<vmem>>, %arg2: memref<32x96xbf16, #tpu.memory_space<vmem>>, %arg3: memref<1x96xf32, #tpu.memory_space<vmem>>, %arg4: memref<32x32xbf16, #tpu.memory_space<vmem>>, %arg5: memref<1x32xf32, #tpu.memory_space<vmem>>, %arg6: memref<1x32xf32, #tpu.memory_space<vmem>>, %arg7: memref<1x32xf32, #tpu.memory_space<vmem>>, %arg8: memref<1x8x32xbf16, #tpu.memory_space<vmem>>) attributes {dimension_semantics = [#tpu.dimension_semantics<parallel>], iteration_bounds = array<i64: 2>, scalar_prefetch = 0 : i64, scratch_operands = 0 : i64, tpu.core_type = #tpu.core_type<tc>, window_params = [{transform_indices = @transform_0, window_bounds = array<i64: 1, 8, 32>}, {pipeline_mode = #tpu.pipeline_mode<synchronous>, transform_indices = @transform_1, window_bounds = array<i64: 32, 96>}, {pipeline_mode = #tpu.pipeline_mode<synchronous>, transform_indices = @transform_2, window_bounds = array<i64: 1, 96>}, {pipeline_mode = #tpu.pipeline_mode<synchronous>, transform_indices = @transform_3, window_bounds = array<i64: 32, 32>}, {pipeline_mode = #tpu.pipeline_mode<synchronous>, transform_indices = @transform_4, window_bounds = array<i64: 1, 32>}, {pipeline_mode = #tpu.pipeline_mode<synchronous>, transform_indices = @transform_5, window_bounds = array<i64: 1, 32>}, {pipeline_mode = #tpu.pipeline_mode<synchronous>, transform_indices = @transform_6, window_bounds = array<i64: 1, 32>}, {transform_indices = @transform_7, window_bounds = array<i64: 1, 8, 32>}]} {
    %c0 = arith.constant 0 : index
    %c0_0 = arith.constant 0 : index
    %c0_1 = arith.constant 0 : index
    %0 = vector.load %arg1[%c0, %c0_0, %c0_1] : memref<1x8x32xbf16, #tpu.memory_space<vmem>>, vector<1x8x32xbf16>
    %1 = vector.shape_cast %0 : vector<1x8x32xbf16> to vector<8x32xbf16>
    %c0_2 = arith.constant 0 : index
    %c0_3 = arith.constant 0 : index
    %2 = vector.load %arg2[%c0_2, %c0_3] : memref<32x96xbf16, #tpu.memory_space<vmem>>, vector<32x96xbf16>
    %cst = arith.constant dense<0.000000e+00> : vector<8x96xf32>
    %3 = tpu.matmul %1, %2, %cst {dimension_numbers = #tpu.dot_dimension_numbers<[1], [0], [0], [1], [0, 0, 1, 1], [], []>} : vector<8x32xbf16>, vector<32x96xbf16>, vector<8x96xf32> -> vector<8x96xf32>
    %c0_4 = arith.constant 0 : index
    %c0_5 = arith.constant 0 : index
    %4 = vector.load %arg3[%c0_4, %c0_5] : memref<1x96xf32, #tpu.memory_space<vmem>>, vector<1x96xf32>
    %5 = vector.broadcast %4 : vector<1x96xf32> to vector<8x96xf32>
    %6 = arith.addf %3, %5 : vector<8x96xf32>
    %7 = vector.extract_strided_slice %6 {offsets = [0, 0], sizes = [8, 32], strides = [1, 1]} : vector<8x96xf32> to vector<8x32xf32>
    %cst_6 = arith.constant 0.353553385 : f32
    %8 = vector.broadcast %cst_6 : f32 to vector<8x32xf32>
    %9 = arith.mulf %7, %8 : vector<8x32xf32>
    %10 = vector.extract_strided_slice %6 {offsets = [0, 32], sizes = [8, 32], strides = [1, 1]} : vector<8x96xf32> to vector<8x32xf32>
    %11 = vector.extract_strided_slice %6 {offsets = [0, 64], sizes = [8, 32], strides = [1, 1]} : vector<8x96xf32> to vector<8x32xf32>
    %c0_7 = arith.constant 0 : index
    %c0_8 = arith.constant 0 : index
    %12 = vector.load %arg4[%c0_7, %c0_8] : memref<32x32xbf16, #tpu.memory_space<vmem>>, vector<32x32xbf16>
    %c0_9 = arith.constant 0 : index
    %c0_10 = arith.constant 0 : index
    %13 = vector.load %arg5[%c0_9, %c0_10] : memref<1x32xf32, #tpu.memory_space<vmem>>, vector<1x32xf32>
    %14 = vector.extract_strided_slice %9 {offsets = [0, 0], sizes = [8, 8], strides = [1, 1]} : vector<8x32xf32> to vector<8x8xf32>
    %15 = arith.truncf %14 : vector<8x8xf32> to vector<8x8xbf16>
    %16 = vector.extract_strided_slice %10 {offsets = [0, 0], sizes = [8, 8], strides = [1, 1]} : vector<8x32xf32> to vector<8x8xf32>
    %17 = arith.truncf %16 : vector<8x8xf32> to vector<8x8xbf16>
    %18 = vector.extract_strided_slice %11 {offsets = [0, 0], sizes = [8, 8], strides = [1, 1]} : vector<8x32xf32> to vector<8x8xf32>
    %19 = arith.truncf %18 : vector<8x8xf32> to vector<8x8xbf16>
    %cst_11 = arith.constant dense<0.000000e+00> : vector<8x8xf32>
    %20 = tpu.matmul %15, %17, %cst_11 {dimension_numbers = #tpu.dot_dimension_numbers<[1], [1], [0], [0], [0, 0, 1, 0], [], []>} : vector<8x8xbf16>, vector<8x8xbf16>, vector<8x8xf32> -> vector<8x8xf32>
    %cst_12 = arith.constant dense<0xFF800000> : vector<8xf32>
    %21 = vector.multi_reduction <maximumf>, %20, %cst_12 [1] : vector<8x8xf32> to vector<8xf32>
    %22 = vector.shape_cast %21 : vector<8xf32> to vector<8x1xf32>
    %23 = vector.broadcast %22 : vector<8x1xf32> to vector<8x8xf32>
    %24 = arith.subf %20, %23 : vector<8x8xf32>
    %25 = math.exp %24 : vector<8x8xf32>
    %cst_13 = arith.constant dense<0.000000e+00> : vector<8xf32>
    %26 = vector.multi_reduction <add>, %25, %cst_13 [1] : vector<8x8xf32> to vector<8xf32>
    %27 = vector.shape_cast %26 : vector<8xf32> to vector<8x1xf32>
    %28 = tpu.reciprocal %27 {approx = true} : vector<8x1xf32> -> vector<8x1xf32>
    %29 = vector.broadcast %28 : vector<8x1xf32> to vector<8x8xf32>
    %30 = arith.mulf %25, %29 : vector<8x8xf32>
    %31 = arith.truncf %30 : vector<8x8xf32> to vector<8x8xbf16>
    %cst_14 = arith.constant dense<0.000000e+00> : vector<8x8xf32>
    %32 = tpu.matmul %31, %19, %cst_14 {dimension_numbers = #tpu.dot_dimension_numbers<[1], [0], [0], [1], [0, 0, 1, 1], [], []>} : vector<8x8xbf16>, vector<8x8xbf16>, vector<8x8xf32> -> vector<8x8xf32>
    %33 = vector.extract_strided_slice %9 {offsets = [0, 8], sizes = [8, 8], strides = [1, 1]} : vector<8x32xf32> to vector<8x8xf32>
    %34 = arith.truncf %33 : vector<8x8xf32> to vector<8x8xbf16>
    %35 = vector.extract_strided_slice %10 {offsets = [0, 8], sizes = [8, 8], strides = [1, 1]} : vector<8x32xf32> to vector<8x8xf32>
    %36 = arith.truncf %35 : vector<8x8xf32> to vector<8x8xbf16>
    %37 = vector.extract_strided_slice %11 {offsets = [0, 8], sizes = [8, 8], strides = [1, 1]} : vector<8x32xf32> to vector<8x8xf32>
    %38 = arith.truncf %37 : vector<8x8xf32> to vector<8x8xbf16>
    %cst_15 = arith.constant dense<0.000000e+00> : vector<8x8xf32>
    %39 = tpu.matmul %34, %36, %cst_15 {dimension_numbers = #tpu.dot_dimension_numbers<[1], [1], [0], [0], [0, 0, 1, 0], [], []>} : vector<8x8xbf16>, vector<8x8xbf16>, vector<8x8xf32> -> vector<8x8xf32>
    %cst_16 = arith.constant dense<0xFF800000> : vector<8xf32>
    %40 = vector.multi_reduction <maximumf>, %39, %cst_16 [1] : vector<8x8xf32> to vector<8xf32>
    %41 = vector.shape_cast %40 : vector<8xf32> to vector<8x1xf32>
    %42 = vector.broadcast %41 : vector<8x1xf32> to vector<8x8xf32>
    %43 = arith.subf %39, %42 : vector<8x8xf32>
    %44 = math.exp %43 : vector<8x8xf32>
    %cst_17 = arith.constant dense<0.000000e+00> : vector<8xf32>
    %45 = vector.multi_reduction <add>, %44, %cst_17 [1] : vector<8x8xf32> to vector<8xf32>
    %46 = vector.shape_cast %45 : vector<8xf32> to vector<8x1xf32>
    %47 = tpu.reciprocal %46 {approx = true} : vector<8x1xf32> -> vector<8x1xf32>
    %48 = vector.broadcast %47 : vector<8x1xf32> to vector<8x8xf32>
    %49 = arith.mulf %44, %48 : vector<8x8xf32>
    %50 = arith.truncf %49 : vector<8x8xf32> to vector<8x8xbf16>
    %cst_18 = arith.constant dense<0.000000e+00> : vector<8x8xf32>
    %51 = tpu.matmul %50, %38, %cst_18 {dimension_numbers = #tpu.dot_dimension_numbers<[1], [0], [0], [1], [0, 0, 1, 1], [], []>} : vector<8x8xbf16>, vector<8x8xbf16>, vector<8x8xf32> -> vector<8x8xf32>
    %52 = vector.extract_strided_slice %9 {offsets = [0, 16], sizes = [8, 8], strides = [1, 1]} : vector<8x32xf32> to vector<8x8xf32>
    %53 = arith.truncf %52 : vector<8x8xf32> to vector<8x8xbf16>
    %54 = vector.extract_strided_slice %10 {offsets = [0, 16], sizes = [8, 8], strides = [1, 1]} : vector<8x32xf32> to vector<8x8xf32>
    %55 = arith.truncf %54 : vector<8x8xf32> to vector<8x8xbf16>
    %56 = vector.extract_strided_slice %11 {offsets = [0, 16], sizes = [8, 8], strides = [1, 1]} : vector<8x32xf32> to vector<8x8xf32>
    %57 = arith.truncf %56 : vector<8x8xf32> to vector<8x8xbf16>
    %cst_19 = arith.constant dense<0.000000e+00> : vector<8x8xf32>
    %58 = tpu.matmul %53, %55, %cst_19 {dimension_numbers = #tpu.dot_dimension_numbers<[1], [1], [0], [0], [0, 0, 1, 0], [], []>} : vector<8x8xbf16>, vector<8x8xbf16>, vector<8x8xf32> -> vector<8x8xf32>
    %cst_20 = arith.constant dense<0xFF800000> : vector<8xf32>
    %59 = vector.multi_reduction <maximumf>, %58, %cst_20 [1] : vector<8x8xf32> to vector<8xf32>
    %60 = vector.shape_cast %59 : vector<8xf32> to vector<8x1xf32>
    %61 = vector.broadcast %60 : vector<8x1xf32> to vector<8x8xf32>
    %62 = arith.subf %58, %61 : vector<8x8xf32>
    %63 = math.exp %62 : vector<8x8xf32>
    %cst_21 = arith.constant dense<0.000000e+00> : vector<8xf32>
    %64 = vector.multi_reduction <add>, %63, %cst_21 [1] : vector<8x8xf32> to vector<8xf32>
    %65 = vector.shape_cast %64 : vector<8xf32> to vector<8x1xf32>
    %66 = tpu.reciprocal %65 {approx = true} : vector<8x1xf32> -> vector<8x1xf32>
    %67 = vector.broadcast %66 : vector<8x1xf32> to vector<8x8xf32>
    %68 = arith.mulf %63, %67 : vector<8x8xf32>
    %69 = arith.truncf %68 : vector<8x8xf32> to vector<8x8xbf16>
    %cst_22 = arith.constant dense<0.000000e+00> : vector<8x8xf32>
    %70 = tpu.matmul %69, %57, %cst_22 {dimension_numbers = #tpu.dot_dimension_numbers<[1], [0], [0], [1], [0, 0, 1, 1], [], []>} : vector<8x8xbf16>, vector<8x8xbf16>, vector<8x8xf32> -> vector<8x8xf32>
    %71 = vector.extract_strided_slice %9 {offsets = [0, 24], sizes = [8, 8], strides = [1, 1]} : vector<8x32xf32> to vector<8x8xf32>
    %72 = arith.truncf %71 : vector<8x8xf32> to vector<8x8xbf16>
    %73 = vector.extract_strided_slice %10 {offsets = [0, 24], sizes = [8, 8], strides = [1, 1]} : vector<8x32xf32> to vector<8x8xf32>
    %74 = arith.truncf %73 : vector<8x8xf32> to vector<8x8xbf16>
    %75 = vector.extract_strided_slice %11 {offsets = [0, 24], sizes = [8, 8], strides = [1, 1]} : vector<8x32xf32> to vector<8x8xf32>
    %76 = arith.truncf %75 : vector<8x8xf32> to vector<8x8xbf16>
    %cst_23 = arith.constant dense<0.000000e+00> : vector<8x8xf32>
    %77 = tpu.matmul %72, %74, %cst_23 {dimension_numbers = #tpu.dot_dimension_numbers<[1], [1], [0], [0], [0, 0, 1, 0], [], []>} : vector<8x8xbf16>, vector<8x8xbf16>, vector<8x8xf32> -> vector<8x8xf32>
    %cst_24 = arith.constant dense<0xFF800000> : vector<8xf32>
    %78 = vector.multi_reduction <maximumf>, %77, %cst_24 [1] : vector<8x8xf32> to vector<8xf32>
    %79 = vector.shape_cast %78 : vector<8xf32> to vector<8x1xf32>
    %80 = vector.broadcast %79 : vector<8x1xf32> to vector<8x8xf32>
    %81 = arith.subf %77, %80 : vector<8x8xf32>
    %82 = math.exp %81 : vector<8x8xf32>
    %cst_25 = arith.constant dense<0.000000e+00> : vector<8xf32>
    %83 = vector.multi_reduction <add>, %82, %cst_25 [1] : vector<8x8xf32> to vector<8xf32>
    %84 = vector.shape_cast %83 : vector<8xf32> to vector<8x1xf32>
    %85 = tpu.reciprocal %84 {approx = true} : vector<8x1xf32> -> vector<8x1xf32>
    %86 = vector.broadcast %85 : vector<8x1xf32> to vector<8x8xf32>
    %87 = arith.mulf %82, %86 : vector<8x8xf32>
    %88 = arith.truncf %87 : vector<8x8xf32> to vector<8x8xbf16>
    %cst_26 = arith.constant dense<0.000000e+00> : vector<8x8xf32>
    %89 = tpu.matmul %88, %76, %cst_26 {dimension_numbers = #tpu.dot_dimension_numbers<[1], [0], [0], [1], [0, 0, 1, 1], [], []>} : vector<8x8xbf16>, vector<8x8xbf16>, vector<8x8xf32> -> vector<8x8xf32>
    %90 = tpu.concatenate %32, %51, %70, %89 in 1 : vector<8x8xf32>, vector<8x8xf32>, vector<8x8xf32>, vector<8x8xf32> -> vector<8x32xf32>
    %91 = arith.truncf %90 : vector<8x32xf32> to vector<8x32xbf16>
    %cst_27 = arith.constant dense<0.000000e+00> : vector<8x32xf32>
    %92 = tpu.matmul %91, %12, %cst_27 {dimension_numbers = #tpu.dot_dimension_numbers<[1], [0], [0], [1], [0, 0, 1, 1], [], []>} : vector<8x32xbf16>, vector<32x32xbf16>, vector<8x32xf32> -> vector<8x32xf32>
    %93 = vector.broadcast %13 : vector<1x32xf32> to vector<8x32xf32>
    %94 = arith.addf %92, %93 : vector<8x32xf32>
    %95 = arith.extf %1 : vector<8x32xbf16> to vector<8x32xf32>
    %96 = arith.addf %94, %95 : vector<8x32xf32>
    %c0_28 = arith.constant 0 : index
    %c0_29 = arith.constant 0 : index
    %97 = vector.load %arg6[%c0_28, %c0_29] : memref<1x32xf32, #tpu.memory_space<vmem>>, vector<1x32xf32>
    %c0_30 = arith.constant 0 : index
    %c0_31 = arith.constant 0 : index
    %98 = vector.load %arg7[%c0_30, %c0_31] : memref<1x32xf32, #tpu.memory_space<vmem>>, vector<1x32xf32>
    %cst_32 = arith.constant dense<0.000000e+00> : vector<8xf32>
    %99 = vector.multi_reduction <add>, %96, %cst_32 [1] : vector<8x32xf32> to vector<8xf32>
    %100 = vector.shape_cast %99 : vector<8xf32> to vector<8x1xf32>
    %cst_33 = arith.constant 3.200000e+01 : f32
    %101 = vector.broadcast %cst_33 : f32 to vector<8x1xf32>
    %102 = arith.divf %100, %101 : vector<8x1xf32>
    %103 = vector.broadcast %102 : vector<8x1xf32> to vector<8x32xf32>
    %104 = arith.subf %96, %103 : vector<8x32xf32>
    %105 = arith.mulf %104, %104 : vector<8x32xf32>
    %cst_34 = arith.constant dense<0.000000e+00> : vector<8xf32>
    %106 = vector.multi_reduction <add>, %105, %cst_34 [1] : vector<8x32xf32> to vector<8xf32>
    %107 = vector.shape_cast %106 : vector<8xf32> to vector<8x1xf32>
    %cst_35 = arith.constant 3.200000e+01 : f32
    %108 = vector.broadcast %cst_35 : f32 to vector<8x1xf32>
    %109 = arith.divf %107, %108 : vector<8x1xf32>
    %110 = vector.broadcast %102 : vector<8x1xf32> to vector<8x32xf32>
    %111 = arith.subf %96, %110 : vector<8x32xf32>
    %cst_36 = arith.constant 9.99999996E-13 : f32
    %112 = vector.broadcast %cst_36 : f32 to vector<8x1xf32>
    %113 = arith.addf %109, %112 : vector<8x1xf32>
    %114 = math.rsqrt %113 : vector<8x1xf32>
    %115 = vector.broadcast %114 : vector<8x1xf32> to vector<8x32xf32>
    %116 = arith.mulf %111, %115 : vector<8x32xf32>
    %117 = vector.broadcast %97 : vector<1x32xf32> to vector<8x32xf32>
    %118 = arith.mulf %116, %117 : vector<8x32xf32>
    %119 = vector.broadcast %98 : vector<1x32xf32> to vector<8x32xf32>
    %120 = arith.addf %118, %119 : vector<8x32xf32>
    %121 = arith.truncf %120 : vector<8x32xf32> to vector<8x32xbf16>
    %c0_37 = arith.constant 0 : index
    %c0_38 = arith.constant 0 : index
    %c0_39 = arith.constant 0 : index
    %122 = vector.load %arg8[%c0_37, %c0_38, %c0_39] : memref<1x8x32xbf16, #tpu.memory_space<vmem>>, vector<1x8x32xbf16>
    %123 = vector.shape_cast %122 : vector<1x8x32xbf16> to vector<8x32xbf16>
    %124 = vector.shape_cast %121 : vector<8x32xbf16> to vector<1x8x32xbf16>
    tpu.vector_store %arg8[%c0_37, %c0_38, %c0_39], %124 {strides = array<i32>} : memref<1x8x32xbf16, #tpu.memory_space<vmem>>, vector<1x8x32xbf16>,
    return
  }
  func.func @transform_0(%arg0: i32) -> (i32, i32, i32) {
    %c0_i32 = arith.constant 0 : i32
    %c0_i32_0 = arith.constant 0 : i32
    %c0_i32_1 = arith.constant 0 : i32
    return %arg0, %c0_i32, %c0_i32_0 : i32, i32, i32
  }
  func.func @transform_1(%arg0: i32) -> (i32, i32) {
    %c0_i32 = arith.constant 0 : i32
    %c0_i32_0 = arith.constant 0 : i32
    %c0_i32_1 = arith.constant 0 : i32
    return %c0_i32, %c0_i32_0 : i32, i32
  }
  func.func @transform_2(%arg0: i32) -> (i32, i32) {
    %c0_i32 = arith.constant 0 : i32
    %c0_i32_0 = arith.constant 0 : i32
    %c0_i32_1 = arith.constant 0 : i32
    return %c0_i32, %c0_i32_0 : i32, i32
  }
  func.func @transform_3(%arg0: i32) -> (i32, i32) {
    %c0_i32 = arith.constant 0 : i32
    %c0_i32_0 = arith.constant 0 : i32
    %c0_i32_1 = arith.constant 0 : i32
    return %c0_i32, %c0_i32_0 : i32, i32
  }
  func.func @transform_4(%arg0: i32) -> (i32, i32) {
    %c0_i32 = arith.constant 0 : i32
    %c0_i32_0 = arith.constant 0 : i32
    %c0_i32_1 = arith.constant 0 : i32
    return %c0_i32, %c0_i32_0 : i32, i32
  }
  func.func @transform_5(%arg0: i32) -> (i32, i32) {
    %c0_i32 = arith.constant 0 : i32
    %c0_i32_0 = arith.constant 0 : i32
    %c0_i32_1 = arith.constant 0 : i32
    return %c0_i32, %c0_i32_0 : i32, i32
  }
  func.func @transform_6(%arg0: i32) -> (i32, i32) {
    %c0_i32 = arith.constant 0 : i32
    %c0_i32_0 = arith.constant 0 : i32
    %c0_i32_1 = arith.constant 0 : i32
    return %c0_i32, %c0_i32_0 : i32, i32
  }
  func.func @transform_7(%arg0: i32) -> (i32, i32, i32) {
    %c0_i32 = arith.constant 0 : i32
    %c0_i32_0 = arith.constant 0 : i32
    %c0_i32_1 = arith.constant 0 : i32
    return %arg0, %c0_i32, %c0_i32_0 : i32, i32, i32
  }
}

module attributes {stable_mosaic.version = 11 : i64} {
  func.func @_ffn_res_ln_kernel(%arg0: i32, %arg1: memref<16x32xbf16, #tpu.memory_space<vmem>>, %arg2: memref<32x128xbf16, #tpu.memory_space<vmem>>, %arg3: memref<1x128xf32, #tpu.memory_space<vmem>>, %arg4: memref<128x32xbf16, #tpu.memory_space<vmem>>, %arg5: memref<1x32xf32, #tpu.memory_space<vmem>>, %arg6: memref<1x32xf32, #tpu.memory_space<vmem>>, %arg7: memref<1x32xf32, #tpu.memory_space<vmem>>, %arg8: memref<16x32xbf16, #tpu.memory_space<vmem>>) attributes {dimension_semantics = [#tpu.dimension_semantics<parallel>], iteration_bounds = array<i64: 1>, scalar_prefetch = 0 : i64, scratch_operands = 0 : i64, tpu.core_type = #tpu.core_type<tc>, window_params = [{transform_indices = @transform_0, window_bounds = array<i64: 16, 32>}, {pipeline_mode = #tpu.pipeline_mode<synchronous>, transform_indices = @transform_1, window_bounds = array<i64: 32, 128>}, {pipeline_mode = #tpu.pipeline_mode<synchronous>, transform_indices = @transform_2, window_bounds = array<i64: 1, 128>}, {pipeline_mode = #tpu.pipeline_mode<synchronous>, transform_indices = @transform_3, window_bounds = array<i64: 128, 32>}, {pipeline_mode = #tpu.pipeline_mode<synchronous>, transform_indices = @transform_4, window_bounds = array<i64: 1, 32>}, {pipeline_mode = #tpu.pipeline_mode<synchronous>, transform_indices = @transform_5, window_bounds = array<i64: 1, 32>}, {pipeline_mode = #tpu.pipeline_mode<synchronous>, transform_indices = @transform_6, window_bounds = array<i64: 1, 32>}, {transform_indices = @transform_7, window_bounds = array<i64: 16, 32>}]} {
    %c0 = arith.constant 0 : index
    %c0_0 = arith.constant 0 : index
    %0 = vector.load %arg1[%c0, %c0_0] : memref<16x32xbf16, #tpu.memory_space<vmem>>, vector<16x32xbf16>
    %c0_1 = arith.constant 0 : index
    %c0_2 = arith.constant 0 : index
    %1 = vector.load %arg2[%c0_1, %c0_2] : memref<32x128xbf16, #tpu.memory_space<vmem>>, vector<32x128xbf16>
    %cst = arith.constant dense<0.000000e+00> : vector<16x128xf32>
    %2 = tpu.matmul %0, %1, %cst {dimension_numbers = #tpu.dot_dimension_numbers<[1], [0], [0], [1], [0, 0, 1, 1], [], []>} : vector<16x32xbf16>, vector<32x128xbf16>, vector<16x128xf32> -> vector<16x128xf32>
    %c0_3 = arith.constant 0 : index
    %c0_4 = arith.constant 0 : index
    %3 = vector.load %arg3[%c0_3, %c0_4] : memref<1x128xf32, #tpu.memory_space<vmem>>, vector<1x128xf32>
    %4 = vector.broadcast %3 : vector<1x128xf32> to vector<16x128xf32>
    %5 = arith.addf %2, %4 : vector<16x128xf32>
    %6 = arith.mulf %5, %5 : vector<16x128xf32>
    %7 = arith.mulf %5, %6 : vector<16x128xf32>
    %cst_5 = arith.constant 4.471500e-02 : f32
    %8 = vector.broadcast %cst_5 : f32 to vector<16x128xf32>
    %9 = arith.mulf %8, %7 : vector<16x128xf32>
    %10 = arith.addf %5, %9 : vector<16x128xf32>
    %cst_6 = arith.constant 0.797884583 : f32
    %11 = vector.broadcast %cst_6 : f32 to vector<16x128xf32>
    %12 = arith.mulf %11, %10 : vector<16x128xf32>
    %13 = math.tanh %12 : vector<16x128xf32>
    %cst_7 = arith.constant 1.000000e+00 : f32
    %14 = vector.broadcast %cst_7 : f32 to vector<16x128xf32>
    %15 = arith.addf %14, %13 : vector<16x128xf32>
    %cst_8 = arith.constant 5.000000e-01 : f32
    %16 = vector.broadcast %cst_8 : f32 to vector<16x128xf32>
    %17 = arith.mulf %16, %15 : vector<16x128xf32>
    %18 = arith.mulf %5, %17 : vector<16x128xf32>
    %c0_9 = arith.constant 0 : index
    %c0_10 = arith.constant 0 : index
    %19 = vector.load %arg4[%c0_9, %c0_10] : memref<128x32xbf16, #tpu.memory_space<vmem>>, vector<128x32xbf16>
    %20 = arith.truncf %18 : vector<16x128xf32> to vector<16x128xbf16>
    %cst_11 = arith.constant dense<0.000000e+00> : vector<16x32xf32>
    %21 = tpu.matmul %20, %19, %cst_11 {dimension_numbers = #tpu.dot_dimension_numbers<[1], [0], [0], [1], [0, 0, 1, 1], [], []>} : vector<16x128xbf16>, vector<128x32xbf16>, vector<16x32xf32> -> vector<16x32xf32>
    %c0_12 = arith.constant 0 : index
    %c0_13 = arith.constant 0 : index
    %22 = vector.load %arg5[%c0_12, %c0_13] : memref<1x32xf32, #tpu.memory_space<vmem>>, vector<1x32xf32>
    %23 = vector.broadcast %22 : vector<1x32xf32> to vector<16x32xf32>
    %24 = arith.addf %21, %23 : vector<16x32xf32>
    %c0_14 = arith.constant 0 : index
    %c0_15 = arith.constant 0 : index
    %25 = vector.load %arg1[%c0_14, %c0_15] : memref<16x32xbf16, #tpu.memory_space<vmem>>, vector<16x32xbf16>
    %26 = arith.extf %25 : vector<16x32xbf16> to vector<16x32xf32>
    %27 = arith.addf %24, %26 : vector<16x32xf32>
    %c0_16 = arith.constant 0 : index
    %c0_17 = arith.constant 0 : index
    %28 = vector.load %arg6[%c0_16, %c0_17] : memref<1x32xf32, #tpu.memory_space<vmem>>, vector<1x32xf32>
    %c0_18 = arith.constant 0 : index
    %c0_19 = arith.constant 0 : index
    %29 = vector.load %arg7[%c0_18, %c0_19] : memref<1x32xf32, #tpu.memory_space<vmem>>, vector<1x32xf32>
    %cst_20 = arith.constant dense<0.000000e+00> : vector<16xf32>
    %30 = vector.multi_reduction <add>, %27, %cst_20 [1] : vector<16x32xf32> to vector<16xf32>
    %31 = vector.shape_cast %30 : vector<16xf32> to vector<16x1xf32>
    %cst_21 = arith.constant 3.200000e+01 : f32
    %32 = vector.broadcast %cst_21 : f32 to vector<16x1xf32>
    %33 = arith.divf %31, %32 : vector<16x1xf32>
    %34 = vector.broadcast %33 : vector<16x1xf32> to vector<16x32xf32>
    %35 = arith.subf %27, %34 : vector<16x32xf32>
    %36 = arith.mulf %35, %35 : vector<16x32xf32>
    %cst_22 = arith.constant dense<0.000000e+00> : vector<16xf32>
    %37 = vector.multi_reduction <add>, %36, %cst_22 [1] : vector<16x32xf32> to vector<16xf32>
    %38 = vector.shape_cast %37 : vector<16xf32> to vector<16x1xf32>
    %cst_23 = arith.constant 3.200000e+01 : f32
    %39 = vector.broadcast %cst_23 : f32 to vector<16x1xf32>
    %40 = arith.divf %38, %39 : vector<16x1xf32>
    %41 = vector.broadcast %33 : vector<16x1xf32> to vector<16x32xf32>
    %42 = arith.subf %27, %41 : vector<16x32xf32>
    %cst_24 = arith.constant 9.99999996E-13 : f32
    %43 = vector.broadcast %cst_24 : f32 to vector<16x1xf32>
    %44 = arith.addf %40, %43 : vector<16x1xf32>
    %45 = math.rsqrt %44 : vector<16x1xf32>
    %46 = vector.broadcast %45 : vector<16x1xf32> to vector<16x32xf32>
    %47 = arith.mulf %42, %46 : vector<16x32xf32>
    %48 = vector.broadcast %28 : vector<1x32xf32> to vector<16x32xf32>
    %49 = arith.mulf %47, %48 : vector<16x32xf32>
    %50 = vector.broadcast %29 : vector<1x32xf32> to vector<16x32xf32>
    %51 = arith.addf %49, %50 : vector<16x32xf32>
    %52 = arith.truncf %51 : vector<16x32xf32> to vector<16x32xbf16>
    %c0_25 = arith.constant 0 : index
    %c0_26 = arith.constant 0 : index
    %53 = vector.load %arg8[%c0_25, %c0_26] : memref<16x32xbf16, #tpu.memory_space<vmem>>, vector<16x32xbf16>
    tpu.vector_store %arg8[%c0_25, %c0_26], %52 {strides = array<i32>} : memref<16x32xbf16, #tpu.memory_space<vmem>>, vector<16x32xbf16>,
    return
  }
  func.func @transform_0(%arg0: i32) -> (i32, i32) {
    %c0_i32 = arith.constant 0 : i32
    %c0_i32_0 = arith.constant 0 : i32
    return %arg0, %c0_i32 : i32, i32
  }
  func.func @transform_1(%arg0: i32) -> (i32, i32) {
    %c0_i32 = arith.constant 0 : i32
    %c0_i32_0 = arith.constant 0 : i32
    %c0_i32_1 = arith.constant 0 : i32
    return %c0_i32, %c0_i32_0 : i32, i32
  }
  func.func @transform_2(%arg0: i32) -> (i32, i32) {
    %c0_i32 = arith.constant 0 : i32
    %c0_i32_0 = arith.constant 0 : i32
    %c0_i32_1 = arith.constant 0 : i32
    return %c0_i32, %c0_i32_0 : i32, i32
  }
  func.func @transform_3(%arg0: i32) -> (i32, i32) {
    %c0_i32 = arith.constant 0 : i32
    %c0_i32_0 = arith.constant 0 : i32
    %c0_i32_1 = arith.constant 0 : i32
    return %c0_i32, %c0_i32_0 : i32, i32
  }
  func.func @transform_4(%arg0: i32) -> (i32, i32) {
    %c0_i32 = arith.constant 0 : i32
    %c0_i32_0 = arith.constant 0 : i32
    %c0_i32_1 = arith.constant 0 : i32
    return %c0_i32, %c0_i32_0 : i32, i32
  }
  func.func @transform_5(%arg0: i32) -> (i32, i32) {
    %c0_i32 = arith.constant 0 : i32
    %c0_i32_0 = arith.constant 0 : i32
    %c0_i32_1 = arith.constant 0 : i32
    return %c0_i32, %c0_i32_0 : i32, i32
  }
  func.func @transform_6(%arg0: i32) -> (i32, i32) {
    %c0_i32 = arith.constant 0 : i32
    %c0_i32_0 = arith.constant 0 : i32
    %c0_i32_1 = arith.constant 0 : i32
    return %c0_i32, %c0_i32_0 : i32, i32
  }
  func.func @transform_7(%arg0: i32) -> (i32, i32) {
    %c0_i32 = arith.constant 0 : i32
    %c0_i32_0 = arith.constant 0 : i32
    return %arg0, %c0_i32 : i32, i32
  }
}

module attributes {stable_mosaic.version = 11 : i64} {
  func.func @_linear_act_ln_kernel(%arg0: i32, %arg1: memref<16x32xbf16, #tpu.memory_space<vmem>>, %arg2: memref<32x32xbf16, #tpu.memory_space<vmem>>, %arg3: memref<1x32xf32, #tpu.memory_space<vmem>>, %arg4: memref<1x32xf32, #tpu.memory_space<vmem>>, %arg5: memref<1x32xf32, #tpu.memory_space<vmem>>, %arg6: memref<16x32xbf16, #tpu.memory_space<vmem>>) attributes {dimension_semantics = [#tpu.dimension_semantics<parallel>], iteration_bounds = array<i64: 1>, scalar_prefetch = 0 : i64, scratch_operands = 0 : i64, tpu.core_type = #tpu.core_type<tc>, window_params = [{transform_indices = @transform_0, window_bounds = array<i64: 16, 32>}, {pipeline_mode = #tpu.pipeline_mode<synchronous>, transform_indices = @transform_1, window_bounds = array<i64: 32, 32>}, {pipeline_mode = #tpu.pipeline_mode<synchronous>, transform_indices = @transform_2, window_bounds = array<i64: 1, 32>}, {pipeline_mode = #tpu.pipeline_mode<synchronous>, transform_indices = @transform_3, window_bounds = array<i64: 1, 32>}, {pipeline_mode = #tpu.pipeline_mode<synchronous>, transform_indices = @transform_4, window_bounds = array<i64: 1, 32>}, {transform_indices = @transform_5, window_bounds = array<i64: 16, 32>}]} {
    %c0 = arith.constant 0 : index
    %c0_0 = arith.constant 0 : index
    %0 = vector.load %arg1[%c0, %c0_0] : memref<16x32xbf16, #tpu.memory_space<vmem>>, vector<16x32xbf16>
    %c0_1 = arith.constant 0 : index
    %c0_2 = arith.constant 0 : index
    %1 = vector.load %arg2[%c0_1, %c0_2] : memref<32x32xbf16, #tpu.memory_space<vmem>>, vector<32x32xbf16>
    %cst = arith.constant dense<0.000000e+00> : vector<16x32xf32>
    %2 = tpu.matmul %0, %1, %cst {dimension_numbers = #tpu.dot_dimension_numbers<[1], [0], [0], [1], [0, 0, 1, 1], [], []>} : vector<16x32xbf16>, vector<32x32xbf16>, vector<16x32xf32> -> vector<16x32xf32>
    %c0_3 = arith.constant 0 : index
    %c0_4 = arith.constant 0 : index
    %3 = vector.load %arg3[%c0_3, %c0_4] : memref<1x32xf32, #tpu.memory_space<vmem>>, vector<1x32xf32>
    %4 = vector.broadcast %3 : vector<1x32xf32> to vector<16x32xf32>
    %5 = arith.addf %2, %4 : vector<16x32xf32>
    %6 = arith.mulf %5, %5 : vector<16x32xf32>
    %7 = arith.mulf %5, %6 : vector<16x32xf32>
    %cst_5 = arith.constant 4.471500e-02 : f32
    %8 = vector.broadcast %cst_5 : f32 to vector<16x32xf32>
    %9 = arith.mulf %8, %7 : vector<16x32xf32>
    %10 = arith.addf %5, %9 : vector<16x32xf32>
    %cst_6 = arith.constant 0.797884583 : f32
    %11 = vector.broadcast %cst_6 : f32 to vector<16x32xf32>
    %12 = arith.mulf %11, %10 : vector<16x32xf32>
    %13 = math.tanh %12 : vector<16x32xf32>
    %cst_7 = arith.constant 1.000000e+00 : f32
    %14 = vector.broadcast %cst_7 : f32 to vector<16x32xf32>
    %15 = arith.addf %14, %13 : vector<16x32xf32>
    %cst_8 = arith.constant 5.000000e-01 : f32
    %16 = vector.broadcast %cst_8 : f32 to vector<16x32xf32>
    %17 = arith.mulf %16, %15 : vector<16x32xf32>
    %18 = arith.mulf %5, %17 : vector<16x32xf32>
    %c0_9 = arith.constant 0 : index
    %c0_10 = arith.constant 0 : index
    %19 = vector.load %arg4[%c0_9, %c0_10] : memref<1x32xf32, #tpu.memory_space<vmem>>, vector<1x32xf32>
    %c0_11 = arith.constant 0 : index
    %c0_12 = arith.constant 0 : index
    %20 = vector.load %arg5[%c0_11, %c0_12] : memref<1x32xf32, #tpu.memory_space<vmem>>, vector<1x32xf32>
    %cst_13 = arith.constant dense<0.000000e+00> : vector<16xf32>
    %21 = vector.multi_reduction <add>, %18, %cst_13 [1] : vector<16x32xf32> to vector<16xf32>
    %22 = vector.shape_cast %21 : vector<16xf32> to vector<16x1xf32>
    %cst_14 = arith.constant 3.200000e+01 : f32
    %23 = vector.broadcast %cst_14 : f32 to vector<16x1xf32>
    %24 = arith.divf %22, %23 : vector<16x1xf32>
    %25 = vector.broadcast %24 : vector<16x1xf32> to vector<16x32xf32>
    %26 = arith.subf %18, %25 : vector<16x32xf32>
    %27 = arith.mulf %26, %26 : vector<16x32xf32>
    %cst_15 = arith.constant dense<0.000000e+00> : vector<16xf32>
    %28 = vector.multi_reduction <add>, %27, %cst_15 [1] : vector<16x32xf32> to vector<16xf32>
    %29 = vector.shape_cast %28 : vector<16xf32> to vector<16x1xf32>
    %cst_16 = arith.constant 3.200000e+01 : f32
    %30 = vector.broadcast %cst_16 : f32 to vector<16x1xf32>
    %31 = arith.divf %29, %30 : vector<16x1xf32>
    %32 = vector.broadcast %24 : vector<16x1xf32> to vector<16x32xf32>
    %33 = arith.subf %18, %32 : vector<16x32xf32>
    %cst_17 = arith.constant 9.99999996E-13 : f32
    %34 = vector.broadcast %cst_17 : f32 to vector<16x1xf32>
    %35 = arith.addf %31, %34 : vector<16x1xf32>
    %36 = math.rsqrt %35 : vector<16x1xf32>
    %37 = vector.broadcast %36 : vector<16x1xf32> to vector<16x32xf32>
    %38 = arith.mulf %33, %37 : vector<16x32xf32>
    %39 = vector.broadcast %19 : vector<1x32xf32> to vector<16x32xf32>
    %40 = arith.mulf %38, %39 : vector<16x32xf32>
    %41 = vector.broadcast %20 : vector<1x32xf32> to vector<16x32xf32>
    %42 = arith.addf %40, %41 : vector<16x32xf32>
    %43 = arith.truncf %42 : vector<16x32xf32> to vector<16x32xbf16>
    %c0_18 = arith.constant 0 : index
    %c0_19 = arith.constant 0 : index
    %44 = vector.load %arg6[%c0_18, %c0_19] : memref<16x32xbf16, #tpu.memory_space<vmem>>, vector<16x32xbf16>
    tpu.vector_store %arg6[%c0_18, %c0_19], %43 {strides = array<i32>} : memref<16x32xbf16, #tpu.memory_space<vmem>>, vector<16x32xbf16>,
    return
  }
  func.func @transform_0(%arg0: i32) -> (i32, i32) {
    %c0_i32 = arith.constant 0 : i32
    %c0_i32_0 = arith.constant 0 : i32
    return %arg0, %c0_i32 : i32, i32
  }
  func.func @transform_1(%arg0: i32) -> (i32, i32) {
    %c0_i32 = arith.constant 0 : i32
    %c0_i32_0 = arith.constant 0 : i32
    %c0_i32_1 = arith.constant 0 : i32
    return %c0_i32, %c0_i32_0 : i32, i32
  }
  func.func @transform_2(%arg0: i32) -> (i32, i32) {
    %c0_i32 = arith.constant 0 : i32
    %c0_i32_0 = arith.constant 0 : i32
    %c0_i32_1 = arith.constant 0 : i32
    return %c0_i32, %c0_i32_0 : i32, i32
  }
  func.func @transform_3(%arg0: i32) -> (i32, i32) {
    %c0_i32 = arith.constant 0 : i32
    %c0_i32_0 = arith.constant 0 : i32
    %c0_i32_1 = arith.constant 0 : i32
    return %c0_i32, %c0_i32_0 : i32, i32
  }
  func.func @transform_4(%arg0: i32) -> (i32, i32) {
    %c0_i32 = arith.constant 0 : i32
    %c0_i32_0 = arith.constant 0 : i32
    %c0_i32_1 = arith.constant 0 : i32
    return %c0_i32, %c0_i32_0 : i32, i32
  }
  func.func @transform_5(%arg0: i32) -> (i32, i32) {
    %c0_i32 = arith.constant 0 : i32
    %c0_i32_0 = arith.constant 0 : i32
    return %arg0, %c0_i32 : i32, i32
  }
}

module attributes {stable_mosaic.version = 11 : i64} {
  func.func @_linear_kernel(%arg0: i32, %arg1: i32, %arg2: memref<16x32xbf16, #tpu.memory_space<vmem>>, %arg3: memref<32x64xbf16, #tpu.memory_space<vmem>>, %arg4: memref<1x64xf32, #tpu.memory_space<vmem>>, %arg5: memref<16x64xf32, #tpu.memory_space<vmem>>) attributes {dimension_semantics = [#tpu.dimension_semantics<parallel>, #tpu.dimension_semantics<parallel>], iteration_bounds = array<i64: 1, 1>, scalar_prefetch = 0 : i64, scratch_operands = 0 : i64, tpu.core_type = #tpu.core_type<tc>, window_params = [{transform_indices = @transform_0, window_bounds = array<i64: 16, 32>}, {transform_indices = @transform_1, window_bounds = array<i64: 32, 64>}, {transform_indices = @transform_2, window_bounds = array<i64: 1, 64>}, {transform_indices = @transform_3, window_bounds = array<i64: 16, 64>}]} {
    %c0 = arith.constant 0 : index
    %c0_0 = arith.constant 0 : index
    %0 = vector.load %arg2[%c0, %c0_0] : memref<16x32xbf16, #tpu.memory_space<vmem>>, vector<16x32xbf16>
    %c0_1 = arith.constant 0 : index
    %c0_2 = arith.constant 0 : index
    %1 = vector.load %arg3[%c0_1, %c0_2] : memref<32x64xbf16, #tpu.memory_space<vmem>>, vector<32x64xbf16>
    %cst = arith.constant dense<0.000000e+00> : vector<16x64xf32>
    %2 = tpu.matmul %0, %1, %cst {dimension_numbers = #tpu.dot_dimension_numbers<[1], [0], [0], [1], [0, 0, 1, 1], [], []>} : vector<16x32xbf16>, vector<32x64xbf16>, vector<16x64xf32> -> vector<16x64xf32>
    %c0_3 = arith.constant 0 : index
    %c0_4 = arith.constant 0 : index
    %3 = vector.load %arg4[%c0_3, %c0_4] : memref<1x64xf32, #tpu.memory_space<vmem>>, vector<1x64xf32>
    %4 = vector.broadcast %3 : vector<1x64xf32> to vector<16x64xf32>
    %5 = arith.addf %2, %4 : vector<16x64xf32>
    %c0_5 = arith.constant 0 : index
    %c0_6 = arith.constant 0 : index
    %6 = vector.load %arg5[%c0_5, %c0_6] : memref<16x64xf32, #tpu.memory_space<vmem>>, vector<16x64xf32>
    tpu.vector_store %arg5[%c0_5, %c0_6], %5 {strides = array<i32>} : memref<16x64xf32, #tpu.memory_space<vmem>>, vector<16x64xf32>,
    return
  }
  func.func @transform_0(%arg0: i32, %arg1: i32) -> (i32, i32) {
    %c0_i32 = arith.constant 0 : i32
    %c0_i32_0 = arith.constant 0 : i32
    return %arg0, %c0_i32 : i32, i32
  }
  func.func @transform_1(%arg0: i32, %arg1: i32) -> (i32, i32) {
    %c0_i32 = arith.constant 0 : i32
    %c0_i32_0 = arith.constant 0 : i32
    return %c0_i32, %arg1 : i32, i32
  }
  func.func @transform_2(%arg0: i32, %arg1: i32) -> (i32, i32) {
    %c0_i32 = arith.constant 0 : i32
    %c0_i32_0 = arith.constant 0 : i32
    return %c0_i32, %arg1 : i32, i32
  }
  func.func @transform_3(%arg0: i32, %arg1: i32) -> (i32, i32) {
    %c0_i32 = arith.constant 0 : i32
    return %arg0, %arg1 : i32, i32
  }
}

</mosaic_0001>

<bundles_post_ra>
// kernel: tpu_custom_call.1
= control target key start
LH: loop header
LB: loop body
LE: loop exit
PB: predicated region body
PF: predicated region fallthrough
CT: control target
= control target key end

     0   :  { %7 = vsyncpa [#allocation3], 0  ;;  %s633_s0 = inlined_call_operand.hbm [shape: f32[16,128], index: 0, kind: input, shape index: {}]   ;;  %s634_s1 = inlined_call_operand.hbm [shape: f32[8,128], index: 1, kind: input, shape index: {}]   ;;  %s635_s2 = inlined_call_operand.hbm [shape: f32[16,128], index: 2, kind: output, shape index: {}]  }
   0x1   :  { %9 = vsyncpa [#allocation3 + $0x1], 0 }
   0x2   :  { %10 = vsyncpa [#allocation6], 0 }
   0x3   :  { %11 = vsyncpa [#allocation4], 0 }
   0x4   :  { %13 = vsyncpa [#allocation4 + $0x1], 0  ;;  %s495_s9 = smov 0   ;;  %s497_s10 = smov 0  }
   0x5   :  { %s499_s11 = smov 0   ;;  %s501_s12 = smov 0  }
   0x6 LB: > { %s516_s13 = sadd.s32 4294967295, %s477_s12   ;;  %s276_s14 = sadd.s32 4294967294, %s477_s12   ;;  %s477_s12 = sphi %s501_s12, %s645_s12   ;;  %s473_s11 = sphi %s499_s11, %s644_s11   ;;  %s469_s10 = sphi %s497_s10, %s643_s10   ;;  %s465_s9 = sphi %s495_s9, %s642_s9  }
   0x7   : > { %p39_p0 = scmp.ne.s32.totalorder %s469_s10, %s465_s9  ;;  %p40_p1 = scmp.eq.s32.totalorder %s516_s13, 0 }
   0x8   : > { %p84_p2 = scmp.eq.s32.totalorder %s516_s13, 1  ;;  %p90_p3 = scmp.eq.s32.totalorder %s276_s14, 1 }
   0x9   : > { %p525_p4 = por %p40_p1, %p39_p0  ;;  %p277_p5 = scmp.ge.s32.totalorder %s477_s12, 1 }
   0xa   : > { %p530_p6 = por %p90_p3, %p39_p0  ;;  %p97_p7 = scmp.lt.s32.totalorder %s477_s12, 3 }
   0xb   : > { %s109_s19 = sshll.u32 %s634_s1, 4  ;;  %s479_s21 = smov [#allocation5]   ;;  %s110_s19 = int_to_ptr.hbm [resolvable:$true] %s109_s19 }
   0xc   : > { %p538_p8 = pnand %p277_p5, %p97_p7  ;;  %s111_s22 = sshll.u32 %s479_s21, 4  ;;  %s112_s22 = int_to_ptr.vmem [resolvable:$true] %s111_s22 }
   0xd   : > { %s548_s23 = sadd.s32 1, %s477_s12   ;;  %s26_s24 = sadd.s32 1, %s473_s11 }
   0xe   : > { %p298_p10 = pneg %p538_p8  ;;  %s23_s25 = ssub.s32 %s477_s12, %s548_s23 }
   0xf   : > { %p24_p12 = scmp.eq.s32.totalorder %s23_s25, 0  ;;  %p33_p13 = scmp.ne.s32.totalorder %s473_s11, %s469_s10 }
  0x10   : > { %p299_p11 = pnand %p298_p10, %p40_p1  ;;  %p34_p0 = scmp.eq.s32.totalorder %s477_s12, 0 }
  0x11   : > { %s557_s26 = scalar_select %p24_p12, %s473_s11, %s26_s24  }
  0x12   : > { %301 = dma.hbm_to_vmem [thread:$0]  (!%p299_p11), %s110_s19, 128, %s112_s22, [#allocation6]  }
  0x13   : > { %p561_p3 = por %p84_p2, %p33_p13  ;;  %p311_p5 = scmp.lt.s32.totalorder %s477_s12, 2 }
  0x14   : > { %s122_s28 = sand.u32 1, %s473_s11   ;;  %s281_s29 = sshll.u32 %s477_s12, 3 }
  0x15   : > { %p35_p7 = por %p34_p0, %p33_p13  ;;  %s280_s30 = sshll.u32 %s122_s28, 3 }
  0x16   : > { %s130_s5 = scalar_lea.hbm %s633_s0, %s281_s29  ;;  %s126_s7 = scalar_lea.vmem [#allocation2], %s280_s30 }
  0x17   : > { %s132_s6 = sshll.u32 %s130_s5, 4  ;;  %s134_s8 = sshll.u32 %s126_s7, 4  ;;  %s133_s6 = int_to_ptr.hbm [resolvable:$true] %s132_s6  ;;  %s135_s8 = int_to_ptr.vmem [resolvable:$true] %s134_s8 }
  0x18   : > { %p571_p10 = pnand %p311_p5, %p35_p7  ;;  %s123_s17 = scalar_lea.sflag [#allocation3], %s122_s28 }
  0x19   : > { %s377_s18 = sshra.s32 %s133_s6, 4  ;;  %s384_s24 = scalar_lea.hbm %s633_s0, 16  ;;  %s378_s18 = int_to_ptr.hbm [resolvable:$true] %s377_s18 }
  0x1a   : > { %s379_s19 = scalar_lea.hbm %s378_s18, 8  ;;  %p381_p11 = pneg %p571_p10 }
  0x1b   : > { %p380_p2 = scmp.ne.s32.totalorder %s378_s18, %s379_s19  ;;  %p385_p0 = scmp.lt.s32.totalorder %s378_s18, %s633_s0 }
  0x1c   : > { %p386_p5 = scmp.lt.s32.totalorder %s384_s24, %s379_s19 }
  0x1d   : > { %p382_p12 = pnand %p381_p11, %p380_p2 }
  0x1e   : > { %p387_p7 = por %p386_p5, %p385_p0 }
  0x1f   : > { %p383_p13 = pneg %p382_p12 }
  0x21   : > { %p388_p9 = pnand %p387_p7, %p383_p13 }
  0x23   : > { %391 = shalt.err (!%p388_p9)
}
  0x24   : > { %305 = dma.hbm_to_vmem [thread:$0]  (!%p571_p10), %s133_s6, 128, %s135_s8, %s123_s17  }
  0x25   : > { %143 = sbr.rel (%p538_p8) target bundleno = 60 (0x3c), region = 28  ;;  %s588_s28 = sand.u32 (!%p538_p8), 1, %s469_s10  }
  0x26   : > { %s283_s30 = sshll.u32 (!%p538_p8), %s588_s28, 3  ;;  %s146_s3 = scalar_lea.sflag (!%p538_p8), [#allocation3], %s588_s28 }
  0x27   : > { %s149_s4 = scalar_lea.vmem (!%p538_p8), [#allocation2], %s283_s30 }
  0x2a   : > { %452 = dma.done.wait (%p525_p4), %s146_s3, 128  }
  0x2b   : > { %454 = vsyncadd (%p525_p4), %s146_s3, 4294967168 }
  0x2c   : > { %456 = dma.done.wait (%p40_p1), [#allocation6], 128  }
  0x2d   : > { %458 = vsyncadd (%p40_p1), [#allocation6], 4294967168  ;;  %s287_s20 = sshll.u32 %s516_s13, 3  ;;  %s175_s8 = scalar_lea.vmem [#allocation7], %s283_s30  ;;  %v176_v0 = vld [vmem:[%s149_s4] sm:$0xff]  ;;  %v177_v1 = vld [vmem:[#allocation5] sm:$0xff] }
  0x2e   : > { %s191_s7 = scalar_lea.hbm %s635_s2, %s287_s20  ;;  %s193_s14 = sshll.u32 %s175_s8, 4  ;;  %v178_v2 = vadd.f32 %v177_v1, %v176_v0  ;;  %s194_s14 = int_to_ptr.vmem [resolvable:$true] %s193_s14 }
  0x2f   : > { %s195_s17 = sshll.u32 %s191_s7, 4  ;;  %s181_s15 = scalar_lea.sflag [#allocation4], %s588_s28  ;;  %s196_s17 = int_to_ptr.hbm [resolvable:$true] %s195_s17 }
  0x30   : > { %179 = vst [vmem:[%s175_s8] sm:$0xff] %v178_v2  ;;  %s421_s18 = sshra.s32 %s196_s17, 4  ;;  %s427_s22 = scalar_lea.hbm %s635_s2, 16  ;;  %s422_s18 = int_to_ptr.hbm [resolvable:$true] %s421_s18 }
  0x31   : > { %s423_s19 = scalar_lea.hbm %s422_s18, 8  ;;  %p428_p9 = scmp.lt.s32.totalorder %s422_s18, %s635_s2 }
  0x32   : > { %p424_p1 = scmp.ne.s32.totalorder %s422_s18, %s423_s19  ;;  %p429_p10 = scmp.lt.s32.totalorder %s427_s22, %s423_s19 }
  0x34   : > { %p425_p4 = pnand %p424_p1, %p561_p3  ;;  %p430_p2 = por %p429_p10, %p428_p9 }
  0x36   : > { %p426_p8 = pneg %p425_p4 }
  0x38   : > { %p431_p11 = pnand %p430_p2, %p426_p8 }
  0x3a   : > { %434 = shalt.err (!%p431_p11)
}
  0x3b   : > { %296 = dma.vmem_to_hbm [thread:$0]  (%p561_p3), %s194_s14, 128, %s196_s17, %s181_s15  }
  0x3c PF: > { %s207_s29 = sand.u32 1, %s465_s9   ;;  %p641_p12 = scmp.ge.s32.totalorder %s477_s12, 2 }
  0x3d   : > { %s208_s28 = scalar_lea.sflag [#allocation4], %s207_s29 }
  0x3e   : > { %p307_p13 = pnand %p641_p12, %p530_p6 }
  0x40   : > { %p308_p0 = pneg %p307_p13 }
  0x42   : > { %460 = dma.done.wait (%p308_p0), %s208_s28, 128  }
  0x43   : > { %462 = vsyncadd (%p308_p0), %s208_s28, 4294967168  ;;  %p16_p5 = scmp.ge.s32.totalorder %s548_s23, 4   ;;  %s642_s9 = smov %s469_s10 }
  0x44   : > { %s643_s10 = smov %s473_s11  ;;  %s644_s11 = smov %s557_s26 }
  0x45   : > { %s645_s12 = smov %s548_s23  ;;  %18 = sbr.rel (!%p16_p5) target bundleno = 6 (0x6), region = 77 }
  0x4a   :  { %214 = vsyncpa [#allocation3], 1 }
  0x4b   :  { %216 = vsyncpa [#allocation3 + $0x1], 1 }
  0x4c   :  { %217 = vsyncpa [#allocation6], 1 }
  0x4d   :  { %218 = vsyncpa [#allocation4], 1 }
  0x4e   :  { %220 = vsyncpa [#allocation4 + $0x1], 1 }

// kernel: _lambda_.16
= control target key start
LH: loop header
LB: loop body
LE: loop exit
PB: predicated region body
PF: predicated region fallthrough
CT: control target
= control target key end

     0   :  { %vm24_vm0 = vcmask 261120   ;;  %v169_v10 = vmov 32.0   ;;  %vm138_vm10 = vcmask 257024   ;;  %s241_s0 = inlined_call_operand.vmem [shape: bf16[32,32], index: 0, kind: input, shape index: {}]   ;;  %s242_s1 = inlined_call_operand.vmem [shape: f32[1,32], index: 1, kind: input, shape index: {}]   ;;  %s243_s2 = inlined_call_operand.vmem [shape: f32[1,32], index: 2, kind: input, shape index: {}]   ;;  %s244_s3 = inlined_call_operand.vmem [shape: bf16[32,32], index: 3, kind: output, shape index: {}]  }
   0x1   :  { %v155_v0 = vld [vmem:[%s241_s0 + $0x8] sm:$0xff]   ;;  %v148_v1 = vld [vmem:[%s241_s0] sm:$0xff]   ;;  %159 = vrcp.f32 %v169_v10 }
   0x2   :  { %v153_v2 = vunpack.c.l.bf16 %v155_v0  ;;  %v149_v3 = vunpack.c.l.bf16 %v148_v1  ;;  %v154_v6 = vunpack.c.h.bf16 %v155_v0  ;;  %v150_v7 = vunpack.c.h.bf16 %v148_v1  ;;  %v157_v63 = vld [vmem:[%s242_s1] ss:$0 sm:$0xff] }
   0x4   :  { %v31_v4 = vsel %vm24_vm0, %v153_v2, 0.0  ;;  %v25_v5 = vsel %vm24_vm0, %v149_v3, 0.0  ;;  %v34_v8 = vsel %vm24_vm0, %v154_v6, 0.0  ;;  %v28_v9 = vsel %vm24_vm0, %v150_v7, 0.0 }
   0x5   :  { %32 = vadd.xlane.f32.xlu1 %v31_v4  ;;  %26 = vadd.xlane.f32.xlu0 %v25_v5  ;;  %v158_v4 = vld [vmem:[%s243_s2] ss:$0 sm:$0xff] }
   0x7   :  { %v160_v11 = vpop.eup %159 }
   0x8   :  { %v38_v12 = vmul.f32 32.0, %v160_v11  ;;  %vm42_vm1 = vweird.f32 %v160_v11 }
   0xa   :  { %v39_v13 = vsub.f32 1.0, %v38_v12 }
   0xc   :  { %v40_v14 = vmul.f32 %v160_v11, %v39_v13 }
   0xd   :  { %35 = vadd.xlane.f32.xlu1 %v34_v8  ;;  %29 = vadd.xlane.f32.xlu0 %v28_v9 }
   0xe   :  { %v41_v15 = vadd.f32 %v160_v11, %v40_v14 }
  0x10   :  { %v43_v16 = vsel %vm42_vm1, %v160_v11, %v41_v15 }
  0x78   :  { %v33_v17 = vpop.xlane.xlu1 %32  ;;  %v27_v18 = vpop.xlane.xlu0 %26 }
  0x79   :  { %v46_v19 = vmul.f32 %v43_v16, %v33_v17  ;;  %v44_v20 = vmul.f32 %v43_v16, %v27_v18 }
  0x7b   :  { %v200_v21 = vsub.f32 %v153_v2, %v46_v19  ;;  %v48_v22 = vsub.f32 %v149_v3, %v44_v20 }
  0x7d   :  { %v54_v23 = vmul.f32 %v200_v21, %v200_v21  ;;  %v52_v24 = vmul.f32 %v48_v22, %v48_v22 }
  0x7f   :  { %v62_v25 = vsel %vm24_vm0, %v54_v23, 0.0  ;;  %v56_v26 = vsel %vm24_vm0, %v52_v24, 0.0 }
  0x80   :  { %v36_v27 = vpop.xlane.xlu1 %35  ;;  %63 = vadd.xlane.f32.xlu0 %v62_v25  ;;  %57 = vadd.xlane.f32.xlu2 %v56_v26  ;;  %v30_v28 = vpop.xlane.xlu0 %29 }
  0x81   :  { %v47_v29 = vmul.f32 %v43_v16, %v36_v27  ;;  %v45_v30 = vmul.f32 %v43_v16, %v30_v28 }
  0x83   :  { %v206_v31 = vsub.f32 %v154_v6, %v47_v29  ;;  %v208_v32 = vsub.f32 %v150_v7, %v45_v30 }
  0x85   :  { %v55_v33 = vmul.f32 %v206_v31, %v206_v31  ;;  %v53_v34 = vmul.f32 %v208_v32, %v208_v32 }
  0x87   :  { %v65_v35 = vsel %vm24_vm0, %v55_v33, 0.0  ;;  %v59_v36 = vsel %vm24_vm0, %v53_v34, 0.0 }
  0x88   :  { %66 = vadd.xlane.f32.xlu1 %v65_v35  ;;  %60 = vadd.xlane.f32.xlu2 %v59_v36 }
  0xf3   :  { %v58_v37 = vpop.xlane.xlu2 %57  ;;  %v64_v38 = vpop.xlane.xlu0 %63 }
  0xf4   :  { %v68_v39 = vmul.f32 %v58_v37, %v43_v16  ;;  %v70_v40 = vmul.f32 %v64_v38, %v43_v16 }
  0xf6   :  { %v72_v41 = vadd.f32 1e-05, %v68_v39  ;;  %v74_v42 = vadd.f32 1e-05, %v70_v40 }
  0xf8   :  { %161 = vrsqrt.f32 %v72_v41  ;;  %vm82_vm4 = vweird.f32 %v72_v41  ;;  %vm102_vm6 = vweird.f32 %v74_v42 }
  0xf9   :  { %163 = vrsqrt.f32 %v74_v42 }
  0xfb   :  { %v67_v43 = vpop.xlane.xlu1 %66  ;;  %v61_v44 = vpop.xlane.xlu2 %60 }
  0xfc   :  { %v71_v45 = vmul.f32 %v67_v43, %v43_v16  ;;  %v69_v46 = vmul.f32 %v61_v44, %v43_v16 }
  0xfe   :  { %v162_v47 = vpop.eup %161  ;;  %v75_v48 = vadd.f32 1e-05, %v71_v45  ;;  %v73_v49 = vadd.f32 1e-05, %v69_v46 }
  0xff   :  { %v164_v50 = vpop.eup %163  ;;  %v77_v51 = vmul.f32 %v162_v47, %v72_v41  ;;  %vm83_vm2 = vweird.f32 %v162_v47 }
 0x100   :  { %v97_v52 = vmul.f32 %v164_v50, %v74_v42  ;;  %165 = vrsqrt.f32 %v75_v48  ;;  %vm103_vm3 = vweird.f32 %v164_v50  ;;  %vm84_vm5 = vmor %vm82_vm4, %vm83_vm2  ;;  %vm112_vm11 = vweird.f32 %v75_v48 }
 0x101   :  { %v78_v53 = vmul.f32 %v162_v47, %v77_v51  ;;  %167 = vrsqrt.f32 %v73_v49  ;;  %vm104_vm7 = vmor %vm102_vm6, %vm103_vm3  ;;  %vm92_vm13 = vweird.f32 %v73_v49 }
 0x102   :  { %v98_v54 = vmul.f32 %v164_v50, %v97_v52 }
 0x103   :  { %v79_v55 = vmul.f32 0.5, %v78_v53 }
 0x104   :  { %v99_v56 = vmul.f32 0.5, %v98_v54 }
 0x105   :  { %v80_v57 = vsub.f32 1.5, %v79_v55 }
 0x106   :  { %v166_v58 = vpop.eup %165  ;;  %v100_v59 = vsub.f32 1.5, %v99_v56 }
 0x107   :  { %v168_v60 = vpop.eup %167  ;;  %v81_v61 = vmul.f32 %v162_v47, %v80_v57  ;;  %v107_v62 = vmul.f32 %v166_v58, %v75_v48  ;;  %vm113_vm8 = vweird.f32 %v166_v58 }
 0x108   :  { %v101_v0 = vmul.f32 %v164_v50, %v100_v59  ;;  %v87_v1 = vmul.f32 %v168_v60, %v73_v49  ;;  %vm93_vm9 = vweird.f32 %v168_v60  ;;  %vm114_vm12 = vmor %vm112_vm11, %vm113_vm8 }
 0x109   :  { %v85_v2 = vsel %vm84_vm5, %v162_v47, %v81_v61  ;;  %v108_v3 = vmul.f32 %v166_v58, %v107_v62  ;;  %vm94_vm14 = vmor %vm92_vm13, %vm93_vm9 }
 0x10a   :  { %v116_v5 = vmul.f32 %v85_v2, %v48_v22  ;;  %v105_v6 = vsel %vm104_vm7, %v164_v50, %v101_v0  ;;  %v88_v7 = vmul.f32 %v168_v60, %v87_v1 }
 0x10b   :  { %v118_v8 = vmul.f32 %v105_v6, %v200_v21  ;;  %v109_v9 = vmul.f32 0.5, %v108_v3 }
 0x10c   :  { %v123_v10 = vmul.f32 %v157_v63, %v116_v5  ;;  %v89_v11 = vmul.f32 0.5, %v88_v7 }
 0x10d   :  { %v125_v12 = vmul.f32 %v157_v63, %v118_v8  ;;  %v110_v13 = vsub.f32 1.5, %v109_v9 }
 0x10e   :  { %v130_v14 = vadd.f32 %v158_v4, %v123_v10  ;;  %v90_v15 = vsub.f32 1.5, %v89_v11 }
 0x10f   :  { %v132_v16 = vadd.f32 %v158_v4, %v125_v12  ;;  %v111_v17 = vmul.f32 %v166_v58, %v110_v13 }
 0x110   :  { %v134_v18 = vpack.c.bf16 %v130_v14, %v130_v14  ;;  %v91_v19 = vmul.f32 %v168_v60, %v90_v15 }
 0x111   :  { %v136_v20 = vpack.c.bf16 %v132_v16, %v132_v16  ;;  %v115_v22 = vsel %vm114_vm12, %v166_v58, %v111_v17 }
 0x112   :  { %139 = vst.msk [vmem:[%s244_s3] sm:$0xf] %vm138_vm10, %v134_v18  ;;  %v119_v21 = vmul.f32 %v115_v22, %v206_v31  ;;  %v95_v23 = vsel %vm94_vm14, %v168_v60, %v91_v19 }
 0x113   :  { %141 = vst.msk [vmem:[%s244_s3 + $0x8] sm:$0xf] %vm138_vm10, %v136_v20  ;;  %v117_v24 = vmul.f32 %v95_v23, %v208_v32 }
 0x114   :  { %v126_v25 = vmul.f32 %v157_v63, %v119_v21 }
 0x115   :  { %v124_v26 = vmul.f32 %v157_v63, %v117_v24 }
 0x116   :  { %v133_v27 = vadd.f32 %v158_v4, %v126_v25 }
 0x117   :  { %v131_v28 = vadd.f32 %v158_v4, %v124_v26 }
 0x118   :  { %v137_v29 = vpack.c.bf16 %v133_v27, %v133_v27 }
 0x119   :  { %v135_v30 = vpack.c.bf16 %v131_v28, %v131_v28 }
 0x11a   :  { %142 = vst.msk [vmem:[%s244_s3 + $0xc] sm:$0xf] %vm138_vm10, %v137_v29 }
 0x11b   :  { %140 = vst.msk [vmem:[%s244_s3 + $0x4] sm:$0xf] %vm138_vm10, %v135_v30 }

// kernel: _lambda_.13
= control target key start
LH: loop header
LB: loop body
LE: loop exit
PB: predicated region body
PF: predicated region fallthrough
CT: control target
= control target key end

     0   :  { %vm33_vm0 = vcmask 1043456   ;;  %vm26_vm1 = vcmask 64512   ;;  %vm60_vm2 = vcmask 257024   ;;  %s123_s1 = inlined_call_operand.vmem [shape: bf16[8,32], index: 1, kind: input, shape index: {}]   ;;  %s124_s0 = inlined_call_operand.vmem [shape: f32[32,8], index: 0, kind: input, shape index: {}]   ;;  %s125_s2 = inlined_call_operand.vmem [shape: f32[1,32], index: 2, kind: input, shape index: {}]   ;;  %s126_s3 = inlined_call_operand.vmem [shape: bf16[32,32], index: 3, kind: output, shape index: {}]  }
   0x1   :  { %v19_v0 = vld [vmem:[%s123_s1] sm:$0xf]  ;;  %v16_v2 = vld [vmem:[%s124_s0 + $0x8] sm:$0xff]  ;;  %v17_v5 = vld [vmem:[%s124_s0 + $0x10] sm:$0xff] }
   0x2   :  { %v15_v1 = vld [vmem:[%s124_s0] sm:$0xff]  ;;  %v35_v3 = vsel %vm33_vm0, %v19_v0, 0  ;;  %v18_v6 = vld [vmem:[%s124_s0 + $0x18] sm:$0xff] }
   0x3   :  { %v20_v4 = vpack.c.bf16 %v16_v2, %v15_v1  ;;  %44 = vmatpush.bf16.msra.mxu0 %v35_v3  ;;  %71 = vmatpush.bf16.msra.mxu1 %v35_v3  ;;  %v21_v7 = vpack.c.bf16 %v18_v6, %v17_v5  ;;  %v72_v8 = vld [vmem:[%s125_s2] ss:$0 sm:$0xff] }
   0x6   :  { %69 = vmatmul.msk.bf16.vlgmr.msra.gmra.mxu0 %vm26_vm1, %v20_v4  ;;  %70 = vmatmul.msk.bf16.vlgmr.msra.gmra.mxu1 %vm26_vm1, %v21_v7 }
  0x83   :  { %v46_v9 = vpop.f32.mrf.mxu0  ;;  %v51_v10 = vpop.f32.mrf.mxu1 }
  0x84   :  { %v47_v11 = vadd.f32 %v72_v8, %v46_v9  ;;  %v52_v12 = vadd.f32 %v72_v8, %v51_v10 }
  0x86   :  { %v56_v13 = vpack.c.bf16 %v47_v11, %v47_v11  ;;  %v58_v14 = vpack.c.bf16 %v52_v12, %v52_v12 }
  0x88   :  { %61 = vst.msk [vmem:[%s126_s3] sm:$0xf] %vm60_vm2, %v56_v13 }
  0x89   :  { %63 = vst.msk [vmem:[%s126_s3 + $0x8] sm:$0xf] %vm60_vm2, %v58_v14 }
  0x8b   :  { %v48_v15 = vpop.f32.mrf.mxu0  ;;  %v53_v16 = vpop.f32.mrf.mxu1 }
  0x8c   :  { %v49_v17 = vadd.f32 %v72_v8, %v48_v15  ;;  %v54_v18 = vadd.f32 %v72_v8, %v53_v16 }
  0x8e   :  { %v57_v19 = vpack.c.bf16 %v49_v17, %v49_v17  ;;  %v59_v20 = vpack.c.bf16 %v54_v18, %v54_v18 }
  0x90   :  { %62 = vst.msk [vmem:[%s126_s3 + $0x4] sm:$0xf] %vm60_vm2, %v57_v19 }
  0x91   :  { %64 = vst.msk [vmem:[%s126_s3 + $0xc] sm:$0xf] %vm60_vm2, %v59_v20 }

// kernel: _lambda_.14
= control target key start
LH: loop header
LB: loop body
LE: loop exit
PB: predicated region body
PF: predicated region fallthrough
CT: control target
= control target key end

     0   :  { %12 = vsyncpa [#allocation3], 0  ;;  %s1260_s0 = inlined_call_operand.vmem [shape: bf16[2,16,32], index: 0, kind: input, shape index: {}]   ;;  %s1261_s1 = inlined_call_operand.hbm [shape: bf16[32,96], index: 1, kind: input, shape index: {}]   ;;  %s1262_s2 = inlined_call_operand.vmem [shape: f32[1,96], index: 2, kind: input, shape index: {}]   ;;  %s1263_s3 = inlined_call_operand.hbm [shape: bf16[32,32], index: 3, kind: input, shape index: {}]   ;;  %s1264_s4 = inlined_call_operand.vmem [shape: f32[1,32], index: 4, kind: input, shape index: {}, may-alias: {4,6}]   ;;  %s1265_s5 = inlined_call_operand.vmem [shape: f32[1,32], index: 5, kind: input, shape index: {}]   ;;  %s1266_s6 = inlined_call_operand.vmem [shape: f32[1,32], index: 6, kind: input, shape index: {}, may-alias: {4,6}]   ;;  %s1267_s7 = inlined_call_operand.vmem [shape: bf16[2,16,32], index: 7, kind: output, shape index: {}]  }
   0x1   :  { %13 = vsyncpa [#allocation5], 0  ;;  %s1141_s24 = smov 0  }
   0x2 LB: > { %s213_s27 = sshll.u32 %s1261_s1, 4  ;;  %s851_s28 = sadd.s32 4294967295, %s1080_s24   ;;  %s1080_s24 = sphi %s1141_s24, %s19_s24   ;;  %s214_s27 = int_to_ptr.hbm [resolvable:$true] %s213_s27 }
   0x3   : > { %p853_p0 = scmp.ge.s32.totalorder %s1080_s24, 1  ;;  %p202_p1 = scmp.lt.s32.totalorder %s1080_s24, 3 }
   0x4   : > { %p918_p2 = scmp.eq.s32.totalorder %s851_s28, 0  ;;  %s1082_s30 = smov [#allocation2]  }
   0x5   : > { %p1152_p3 = pnand %p853_p0, %p202_p1  ;;  %s215_s8 = sshll.u32 %s1082_s30, 4  ;;  %s216_s8 = int_to_ptr.vmem [resolvable:$true] %s215_s8 }
   0x6   : > { %s230_s11 = sshll.u32 %s1263_s3, 4  ;;  %s1083_s12 = smov [#allocation4]   ;;  %s231_s11 = int_to_ptr.hbm [resolvable:$true] %s230_s11 }
   0x7   : > { %p911_p4 = pneg %p1152_p3  ;;  %s232_s13 = sshll.u32 %s1083_s12, 4  ;;  %s233_s13 = int_to_ptr.vmem [resolvable:$true] %s232_s13 }
   0x8   : > { %s1084_s14 = smov 64   ;;  %s1085_s15 = smov 4  }
   0x9   : > { %p912_p5 = pnand %p918_p2, %p911_p4  ;;  %265 = sbr.rel (%p1152_p3) target bundleno = 1380 (0x564), region = 48 }
   0xb   : > { %914 = dma.hbm_to_vmem [thread:$0]  (!%p912_p5), %s214_s27, 256, %s216_s8, [#allocation3], %s1084_s14, %s1084_s14, %s1085_s15  }
   0xc   : > { %917 = dma.hbm_to_vmem [thread:$0]  (!%p912_p5), %s231_s11, 256, %s233_s13, [#allocation5], %s1084_s14, %s1084_s14, %s1085_s15  }
   0xe   : > { %1071 = dma.done.wait (%p918_p2), [#allocation3], 256  }
   0xf   : > { %1073 = vsyncadd (%p918_p2), [#allocation3], 4294967040 }
  0x10   : > { %1075 = dma.done.wait (%p918_p2), [#allocation5], 256  }
  0x11   : > { %1077 = vsyncadd (%p918_p2), [#allocation5], 4294967040  ;;  %p303_p6 = scmp.lt.s32.totalorder %s851_s28, 1  ;;  %v900_v0 = vld [vmem:[#allocation2 + $0x8] sm:$0xff]  ;;  %v899_v1 = vld [vmem:[#allocation2] sm:$0xff]  ;;  %vm341_vm0 = vcmask 261120  }
  0x12   : > { %351 = vmatpush.bf16.msra.mxu0 %v900_v0  ;;  %v964_v4 = vld [vmem:[%s1262_s2] ss:$0 sm:$0xff]  ;;  %s1086_s22 = smov 96   ;;  %s1087_s23 = smov 104   ;;  %vm371_vm1 = vcmask 64512   ;;  %vm392_vm2 = vcmask 130048  }
  0x13   : > { %s1270_s28 = smov (!%p303_p6, %s851_s28), 1  ;;  %s1088_s25 = smov 120   ;;  %vm666_vm3 = vcmask 195584   ;;  %vm771_vm9 = vcmask 257024  }
  0x14   : > { %s896_s16 = sshll.u32 %s1270_s28, 3  ;;  %s1089_s26 = smov 88  }
  0x15   : > { %s1176_s19 = scalar_lea.vmem %s1260_s0, %s896_s16  ;;  %s1090_s27 = smov 80  }
  0x16   : > { %v898_v2 = vld [vmem:[%s1176_s19] sm:$0xff]  ;;  %352 = vmatpush.bf16.msra.mxu0 %v899_v1  ;;  %s1091_s29 = smov 72   ;;  %s1092_s30 = smov 112  }
  0x17   : > { %s1093_s8 = smov 64   ;;  %s1094_s9 = smov 56  }
  0x18   : > { %s1095_s10 = smov 40   ;;  %s1096_s11 = smov 48  }
  0x19   : > { %876 = vmatmul.msk.bf16.vlgmr.msra.gmra.mxu0 %vm341_vm0, %v898_v2  ;;  %s1097_s12 = smov 8   ;;  %s1098_s13 = smov 24  }
  0x1a   : > { %s1099_s14 = smov 16  }
  0x96   : > { %v354_v3 = vpop.f32.mrf.mxu0 }
  0x97   : > { %v355_v5 = vadd.f32 %v964_v4, %v354_v3 }
  0x99   : > { %v359_v8 = vmul.f32 0.35355338, %v355_v5 }
  0x9e   : > { %v356_v6 = vpop.f32.mrf.mxu0 }
  0x9f   : > { %v357_v7 = vadd.f32 %v964_v4, %v356_v6 }
  0xa1   : > { %v360_v9 = vmul.f32 0.35355338, %v357_v7  ;;  %v1183_v10 = vpack.c.bf16 %v357_v7, %v355_v5 }
  0xa3   : > { %v366_v11 = vpack.c.bf16 %v360_v9, %v359_v8  ;;  %369 = vrot.lane.b32.xlu0 %v1183_v10, %s1086_s22 }
  0xa5   : > { %571 = vrot.lane.b32.xlu2 %v366_v11, %s1087_s23  ;;  %437 = vrot.lane.b32.xlu1 %v366_v11, %s1088_s25  ;;  %s312_s25 = scalar_lea.vmem %s1267_s7, %s896_s16 }
  0xab   : > { %439 = vrot.lane.b32.xlu0 %v1183_v10, %s1089_s26 }
  0xad   : > { %506 = vrot.lane.b32.xlu2 %v1183_v10, %s1090_s27  ;;  %573 = vrot.lane.b32.xlu1 %v1183_v10, %s1091_s29 }
  0xb3   : > { %504 = vrot.lane.b32.xlu0 %v366_v11, %s1092_s30 }
  0xff   : > { %v572_v12 = vpop.permute.xlu2 %571 }
 0x107   : > { %v507_v13 = vpop.permute.xlu2 %506 }
 0x108   : > { %v512_v14 = vsel %vm371_vm1, %v507_v13, 0 }
 0x109   : > { %521 = vmatpush.bf16.xpose.msrb.mxu0 %v512_v14 }
 0x115   : > { %v370_v15 = vpop.permute.xlu0 %369 }
 0x116   : > { %v376_v16 = vsel %vm371_vm1, %v370_v15, 0 }
 0x117   : > { %385 = vmatpush.bf16.xpose.msra.mxu1 %v376_v16  ;;  %v438_v17 = vpop.permute.xlu1 %437 }
 0x11d   : > { %v440_v18 = vpop.permute.xlu0 %439 }
 0x11e   : > { %877 = vmatmul.msk.bf16.vlgmr.msra.gmra.mxu1 %vm371_vm1, %v366_v11  ;;  %v445_v19 = vsel %vm371_vm1, %v440_v18, 0 }
 0x11f   : > { %454 = vmatpush.bf16.xpose.msra.mxu3 %v445_v19  ;;  %v574_v20 = vpop.permute.xlu1 %573 }
 0x120   : > { %v579_v21 = vsel %vm371_vm1, %v574_v20, 0 }
 0x125   : > { %v505_v22 = vpop.permute.xlu0 %504 }
 0x126   : > { %879 = vmatmul.msk.bf16.vlgmr.msra.gmra.mxu3 %vm371_vm1, %v438_v17  ;;  %881 = vmatmul.msk.bf16.vlgmr.msrb.gmra.mxu0 %vm371_vm1, %v505_v22 }
 0x127   : > { %588 = vmatpush.bf16.xpose.msrb.mxu3 %v579_v21 }
 0x136   : > { %883 = vmatmul.msk.bf16.vlgmr.msrb.gmra.mxu3 %vm371_vm1, %v572_v12 }
 0x19b   : > { %v387_v23 = vpop.f32.mrf.mxu1 }
 0x19c   : > { %v393_v24 = vsel %vm392_vm2, %v387_v23, -inf }
 0x19d   : > { %394 = vmax.xlane.f32.xlu1 %v393_v24 }
 0x1a3   : > { %v389_v25 = vpop.f32.mrf.mxu1  ;;  %v523_v26 = vpop.f32.mrf.mxu0 }
 0x1a4   : > { %v528_v27 = vsel %vm392_vm2, %v523_v26, -inf  ;;  %v396_v28 = vsel %vm392_vm2, %v389_v25, -inf }
 0x1a5   : > { %529 = vmax.xlane.f32.xlu0 %v528_v27  ;;  %397 = vmax.xlane.f32.xlu2 %v396_v28 }
 0x1a9   : > { %v456_v29 = vpop.f32.mrf.mxu3 }
 0x1aa   : > { %v461_v31 = vsel %vm392_vm2, %v456_v29, -inf }
 0x1ab   : > { %v525_v30 = vpop.f32.mrf.mxu0 }
 0x1ac   : > { %v531_v32 = vsel %vm392_vm2, %v525_v30, -inf }
 0x1ad   : > { %462 = vmax.xlane.f32.xlu0 %v461_v31  ;;  %532 = vmax.xlane.f32.xlu1 %v531_v32 }
 0x1b1   : > { %v458_v33 = vpop.f32.mrf.mxu3 }
 0x1b2   : > { %v464_v34 = vsel %vm392_vm2, %v458_v33, -inf }
 0x1b3   : > { %465 = vmax.xlane.f32.xlu2 %v464_v34 }
 0x1b9   : > { %v590_v35 = vpop.f32.mrf.mxu3 }
 0x1ba   : > { %v595_v36 = vsel %vm392_vm2, %v590_v35, -inf }
 0x1bb   : > { %596 = vmax.xlane.f32.xlu1 %v595_v36 }
 0x1c1   : > { %v592_v37 = vpop.f32.mrf.mxu3 }
 0x1c2   : > { %v598_v38 = vsel %vm392_vm2, %v592_v37, -inf }
 0x1c3   : > { %599 = vmax.xlane.f32.xlu2 %v598_v38 }
 0x1d4   : > { %416 = vrot.lane.b32.xlu1 %v1183_v10, %s1093_s8 }
 0x1db   : > { %484 = vrot.lane.b32.xlu2 %v1183_v10, %s1094_s9 }
 0x210   : > { %v395_v39 = vpop.xlane.xlu1 %394 }
 0x211   : > { %v399_v40 = vsub.f32 %v387_v23, %v395_v39 }
 0x213   : > { %v401_v41 = vmul.f32 1.442695, %v399_v40 }
 0x215   : > { %968 = vpow2.f32 %v401_v41 }
 0x218   : > { %v530_v42 = vpop.xlane.xlu0 %529  ;;  %v398_v43 = vpop.xlane.xlu2 %397 }
 0x219   : > { %v534_v44 = vsub.f32 %v523_v26, %v530_v42  ;;  %v400_v45 = vsub.f32 %v389_v25, %v398_v43 }
 0x21b   : > { %v1207_v46 = vpop.eup %968  ;;  %v536_v47 = vmul.f32 1.442695, %v534_v44  ;;  %v403_v48 = vmul.f32 1.442695, %v400_v45 }
 0x21c   : > { %v405_v49 = vsel %vm392_vm2, %v1207_v46, 0.0 }
 0x21d   : > { %970 = vpow2.f32 %v536_v47  ;;  %406 = vadd.xlane.f32.xlu2 %v405_v49 }
 0x21e   : > { %972 = vpow2.f32 %v403_v48 }
 0x220   : > { %v463_v50 = vpop.xlane.xlu0 %462  ;;  %v533_v51 = vpop.xlane.xlu1 %532 }
 0x221   : > { %v467_v52 = vsub.f32 %v456_v29, %v463_v50  ;;  %v535_v53 = vsub.f32 %v525_v30, %v533_v51 }
 0x223   : > { %v1211_v54 = vpop.eup %970  ;;  %v469_v55 = vmul.f32 1.442695, %v467_v52  ;;  %v538_v56 = vmul.f32 1.442695, %v535_v53 }
 0x224   : > { %v973_v57 = vpop.eup %972  ;;  %v540_v58 = vsel %vm392_vm2, %v1211_v54, 0.0 }
 0x225   : > { %974 = vpow2.f32 %v469_v55  ;;  %541 = vadd.xlane.f32.xlu1 %v540_v58  ;;  %v408_v59 = vsel %vm392_vm2, %v973_v57, 0.0  ;;  %v902_v58 = vld [vmem:[#allocation4 + $0x8] sm:$0xff] }
 0x226   : > { %976 = vpow2.f32 %v538_v56  ;;  %409 = vadd.xlane.f32.xlu0 %v408_v59  ;;  %v466_v60 = vpop.xlane.xlu2 %465  ;;  %694 = vmatpush.bf16.msra.mxu0 %v902_v58  ;;  %v901_v59 = vld [vmem:[#allocation4] sm:$0xff]  ;;  %v967_v58 = vld [vmem:[%s1266_s6] ss:$0 sm:$0xff] }
 0x227   : > { %v468_v61 = vsub.f32 %v458_v33, %v466_v60 }
 0x229   : > { %v471_v62 = vmul.f32 1.442695, %v468_v61 }
 0x22a   : > { %695 = vmatpush.bf16.msra.mxu0 %v901_v59 }
 0x22b   : > { %v975_v63 = vpop.eup %974  ;;  %978 = vpow2.f32 %v471_v62 }
 0x22c   : > { %v1216_v0 = vpop.eup %976  ;;  %v473_v1 = vsel %vm392_vm2, %v975_v63, 0.0 }
 0x22d   : > { %474 = vadd.xlane.f32.xlu2 %v473_v1  ;;  %v543_v2 = vsel %vm392_vm2, %v1216_v0, 0.0 }
 0x22e   : > { %544 = vadd.xlane.f32.xlu0 %v543_v2  ;;  %v597_v3 = vpop.xlane.xlu1 %596 }
 0x22f   : > { %v601_v4 = vsub.f32 %v590_v35, %v597_v3 }
 0x231   : > { %v603_v5 = vmul.f32 1.442695, %v601_v4  ;;  %v979_v6 = vpop.eup %978 }
 0x232   : > { %v476_v7 = vsel %vm392_vm2, %v979_v6, 0.0 }
 0x233   : > { %980 = vpow2.f32 %v603_v5 }
 0x236   : > { %477 = vadd.xlane.f32.xlu0 %v476_v7  ;;  %v600_v8 = vpop.xlane.xlu2 %599 }
 0x237   : > { %v602_v9 = vsub.f32 %v592_v37, %v600_v8 }
 0x239   : > { %v605_v11 = vmul.f32 1.442695, %v602_v9  ;;  %v981_v12 = vpop.eup %980 }
 0x23a   : > { %v607_v13 = vsel %vm392_vm2, %v981_v12, 0.0 }
 0x23b   : > { %982 = vpow2.f32 %v605_v11 }
 0x23e   : > { %608 = vadd.xlane.f32.xlu0 %v607_v13  ;;  %v485_v17 = vpop.permute.xlu2 %484  ;;  %v314_v13 = vld [vmem:[%s1176_s19] sm:$0xff]  }
 0x241   : > { %v983_v14 = vpop.eup %982 }
 0x242   : > { %v610_v15 = vsel %vm392_vm2, %v983_v14, 0.0 }
 0x245   : > { %618 = vrot.lane.b32.xlu2 %v1183_v10, %s1095_s10 }
 0x246   : > { %611 = vadd.xlane.f32.xlu0 %v610_v15  ;;  %v417_v16 = vpop.permute.xlu1 %416  ;;  %v702_v15 = vunpack.c.l.bf16 %v314_v13 }
 0x247   : > { %429 = vmatpush.bf16.msra.mxu2 %v417_v16 }
 0x24b   : > { %497 = vmatpush.bf16.msrb.mxu2 %v485_v17 }
 0x25a   : > { %551 = vrot.lane.b32.xlu0 %v1183_v10, %s1096_s11 }
 0x290   : > { %v407_v18 = vpop.xlane.xlu2 %406 }
 0x291   : > { %984 = vrcp.f32 %v407_v18 }
 0x297   : > { %v985_v20 = vpop.eup %984 }
 0x298   : > { %v413_v24 = vmul.f32 %v985_v20, %v1207_v46  ;;  %v542_v37 = vpop.xlane.xlu1 %541  ;;  %v703_v20 = vunpack.c.h.bf16 %v314_v13 }
 0x299   : > { %v410_v19 = vpop.xlane.xlu0 %409 }
 0x29a   : > { %986 = vrcp.f32 %v410_v19 }
 0x2a0   : > { %v987_v21 = vpop.eup %986  ;;  %v475_v22 = vpop.xlane.xlu2 %474 }
 0x2a1   : > { %v545_v23 = vpop.xlane.xlu0 %544  ;;  %v414_v25 = vmul.f32 %v987_v21, %v973_v57  ;;  %988 = vrcp.f32 %v475_v22 }
 0x2a3   : > { %v415_v26 = vpack.c.bf16 %v414_v25, %v413_v24  ;;  %v1100_v25 = vmov 32.0  }
 0x2a5   : > { %878 = vmatmul.msk.bf16.vlgmr.msra.gmra.mxu2 %vm392_vm2, %v415_v26 }
 0x2a7   : > { %v989_v10 = vpop.eup %988 }
 0x2a8   : > { %v619_v27 = vpop.permute.xlu2 %618  ;;  %v481_v30 = vmul.f32 %v989_v10, %v975_v63 }
 0x2a9   : > { %v478_v28 = vpop.xlane.xlu0 %477  ;;  %631 = vmatpush.bf16.msra.mxu2 %v619_v27 }
 0x2aa   : > { %990 = vrcp.f32 %v478_v28 }
 0x2b0   : > { %v991_v29 = vpop.eup %990 }
 0x2b1   : > { %v482_v31 = vmul.f32 %v991_v29, %v979_v6  ;;  %v609_v32 = vpop.xlane.xlu0 %608 }
 0x2b2   : > { %992 = vrcp.f32 %v609_v32 }
 0x2b3   : > { %v483_v33 = vpack.c.bf16 %v482_v31, %v481_v30 }
 0x2b5   : > { %880 = vmatmul.msk.bf16.vlgmr.msrb.gmra.mxu2 %vm392_vm2, %v483_v33 }
 0x2b8   : > { %v993_v35 = vpop.eup %992 }
 0x2b9   : > { %v612_v34 = vpop.xlane.xlu0 %611  ;;  %v615_v38 = vmul.f32 %v993_v35, %v981_v12 }
 0x2ba   : > { %994 = vrcp.f32 %v612_v34 }
 0x2bb   : > { %996 = vrcp.f32 %v545_v23 }
 0x2bc   : > { %998 = vrcp.f32 %v542_v37 }
 0x2bd   : > { %1000 = vrcp.f32 %v1100_v25 }
 0x2c0   : > { %v995_v36 = vpop.eup %994 }
 0x2c1   : > { %v616_v39 = vmul.f32 %v995_v36, %v983_v14  ;;  %v997_v41 = vpop.eup %996  ;;  %v965_v14 = vld [vmem:[%s1264_s4] ss:$0 sm:$0xff] }
 0x2c2   : > { %v999_v42 = vpop.eup %998  ;;  %v549_v43 = vmul.f32 %v997_v41, %v1216_v0 }
 0x2c3   : > { %v617_v40 = vpack.c.bf16 %v616_v39, %v615_v38  ;;  %v548_v44 = vmul.f32 %v999_v42, %v1211_v54  ;;  %v1001_v26 = vpop.eup %1000 }
 0x2c4   : > { %v715_v27 = vmul.f32 32.0, %v1001_v26  ;;  %vm719_vm4 = vweird.f32 %v1001_v26 }
 0x2c5   : > { %884 = vmatmul.msk.bf16.vlgmr.msra.gmra.mxu2 %vm392_vm2, %v617_v40  ;;  %v550_v46 = vpack.c.bf16 %v549_v43, %v548_v44 }
 0x2c6   : > { %v716_v28 = vsub.f32 1.0, %v715_v27 }
 0x2c8   : > { %v717_v10 = vmul.f32 %v1001_v26, %v716_v28 }
 0x2ca   : > { %v718_v29 = vadd.f32 %v1001_v26, %v717_v10 }
 0x2cc   : > { %v552_v45 = vpop.permute.xlu0 %551  ;;  %v720_v30 = vsel %vm719_vm4, %v1001_v26, %v718_v29 }
 0x2cd   : > { %564 = vmatpush.bf16.msrb.mxu1 %v552_v45 }
 0x2d0   : > { %882 = vmatmul.msk.bf16.vlgmr.msrb.gmra.mxu1 %vm392_vm2, %v550_v46 }
 0x328   : > { %v431_v47 = vpop.f32.mrf.mxu2 }
 0x330   : > { %v433_v48 = vpop.f32.mrf.mxu2 }
 0x338   : > { %v499_v49 = vpop.f32.mrf.mxu2 }
 0x340   : > { %v501_v50 = vpop.f32.mrf.mxu2 }
 0x341   : > { %v949_v51 = vpack.i.bf16 %v501_v50, %v499_v49 }
 0x343   : > { %950 = vrot.lane.b32.xlu2 %v949_v51, %s1097_s12 }
 0x348   : > { %v633_v52 = vpop.f32.mrf.mxu2 }
 0x34d   : > { %v566_v53 = vpop.f32.mrf.mxu1 }
 0x350   : > { %v635_v55 = vpop.f32.mrf.mxu2 }
 0x351   : > { %v959_v56 = vpack.i.bf16 %v635_v55, %v633_v52 }
 0x353   : > { %960 = vrot.lane.b32.xlu0 %v959_v56, %s1098_s13  ;;  %v966_v56 = vld [vmem:[%s1265_s5] ss:$0 sm:$0xff] }
 0x355   : > { %v568_v57 = vpop.f32.mrf.mxu1 }
 0x356   : > { %v954_v54 = vpack.i.bf16 %v568_v57, %v566_v53 }
 0x358   : > { %955 = vrot.lane.b32.xlu2 %v954_v54, %s1099_s14 }
 0x39d   : > { %v951_v60 = vpop.permute.xlu2 %950 }
 0x39e   : > { %v953_v62 = vunpack.i.h.bf16 %v951_v60  ;;  %v952_v63 = vunpack.i.l.bf16 %v951_v60 }
 0x3a0   : > { %v663_v3 = vsel %vm371_vm1, %v433_v48, %v953_v62  ;;  %v662_v4 = vsel %vm371_vm1, %v431_v47, %v952_v63 }
 0x3b2   : > { %v956_v61 = vpop.permute.xlu2 %955 }
 0x3b3   : > { %v958_v0 = vunpack.i.h.bf16 %v956_v61  ;;  %v957_v1 = vunpack.i.l.bf16 %v956_v61 }
 0x3b5   : > { %v664_v7 = vsel %vm392_vm2, %v662_v4, %v957_v1  ;;  %v665_v8 = vsel %vm392_vm2, %v663_v3, %v958_v0 }
 0x3c5   : > { %v961_v2 = vpop.permute.xlu0 %960 }
 0x3c6   : > { %v963_v5 = vunpack.i.h.bf16 %v961_v2  ;;  %v962_v6 = vunpack.i.l.bf16 %v961_v2 }
 0x3c8   : > { %v667_v9 = vsel %vm666_vm3, %v664_v7, %v962_v6  ;;  %v668_v11 = vsel %vm666_vm3, %v665_v8, %v963_v5 }
 0x3c9   : > { %v669_v12 = vpack.c.bf16 %v668_v11, %v667_v9 }
 0x3cb   : > { %893 = vmatmul.msk.bf16.vlgmr.msra.gmra.mxu0 %vm341_vm0, %v669_v12 }
 0x448   : > { %v697_v16 = vpop.f32.mrf.mxu0 }
 0x449   : > { %v698_v17 = vadd.f32 %v965_v14, %v697_v16 }
 0x44b   : > { %v704_v18 = vadd.f32 %v702_v15, %v698_v17 }
 0x44d   : > { %v708_v19 = vsel %vm341_vm0, %v704_v18, 0.0 }
 0x44e   : > { %709 = vadd.xlane.f32.xlu2 %v708_v19 }
 0x450   : > { %v699_v21 = vpop.f32.mrf.mxu0 }
 0x451   : > { %v700_v22 = vadd.f32 %v965_v14, %v699_v21 }
 0x453   : > { %v705_v23 = vadd.f32 %v703_v20, %v700_v22 }
 0x455   : > { %v711_v24 = vsel %vm341_vm0, %v705_v23, 0.0 }
 0x456   : > { %712 = vadd.xlane.f32.xlu1 %v711_v24 }
 0x4c1   : > { %v710_v31 = vpop.xlane.xlu2 %709 }
 0x4c2   : > { %v721_v32 = vmul.f32 %v720_v30, %v710_v31 }
 0x4c4   : > { %v723_v33 = vsub.f32 %v704_v18, %v721_v32 }
 0x4c6   : > { %v725_v34 = vmul.f32 %v723_v33, %v723_v33 }
 0x4c8   : > { %v727_v35 = vsel %vm341_vm0, %v725_v34, 0.0 }
 0x4c9   : > { %v713_v36 = vpop.xlane.xlu1 %712  ;;  %728 = vadd.xlane.f32.xlu0 %v727_v35 }
 0x4ca   : > { %v722_v37 = vmul.f32 %v720_v30, %v713_v36 }
 0x4cc   : > { %v724_v38 = vsub.f32 %v705_v23, %v722_v37 }
 0x4ce   : > { %v726_v39 = vmul.f32 %v724_v38, %v724_v38 }
 0x4d0   : > { %v730_v40 = vsel %vm341_vm0, %v726_v39, 0.0 }
 0x4d1   : > { %731 = vadd.xlane.f32.xlu1 %v730_v40 }
 0x53c   : > { %v729_v41 = vpop.xlane.xlu0 %728 }
 0x53d   : > { %v733_v42 = vmul.f32 %v729_v41, %v720_v30 }
 0x53f   : > { %v735_v43 = vadd.f32 1e-05, %v733_v42 }
 0x541   : > { %1002 = vrsqrt.f32 %v735_v43  ;;  %vm743_vm6 = vweird.f32 %v735_v43 }
 0x544   : > { %v732_v44 = vpop.xlane.xlu1 %731 }
 0x545   : > { %v734_v45 = vmul.f32 %v732_v44, %v720_v30 }
 0x547   : > { %v1003_v46 = vpop.eup %1002  ;;  %v736_v47 = vadd.f32 1e-05, %v734_v45 }
 0x548   : > { %v738_v48 = vmul.f32 %v1003_v46, %v735_v43  ;;  %vm744_vm5 = vweird.f32 %v1003_v46 }
 0x549   : > { %1004 = vrsqrt.f32 %v736_v47  ;;  %vm745_vm7 = vmor %vm743_vm6, %vm744_vm5  ;;  %vm753_vm10 = vweird.f32 %v736_v47 }
 0x54a   : > { %v739_v49 = vmul.f32 %v1003_v46, %v738_v48 }
 0x54c   : > { %v740_v50 = vmul.f32 0.5, %v739_v49 }
 0x54e   : > { %v741_v51 = vsub.f32 1.5, %v740_v50 }
 0x54f   : > { %v1005_v52 = vpop.eup %1004 }
 0x550   : > { %v742_v53 = vmul.f32 %v1003_v46, %v741_v51  ;;  %v748_v55 = vmul.f32 %v1005_v52, %v736_v47  ;;  %vm754_vm8 = vweird.f32 %v1005_v52 }
 0x551   : > { %vm755_vm11 = vmor %vm753_vm10, %vm754_vm8 }
 0x552   : > { %v746_v57 = vsel %vm745_vm7, %v1003_v46, %v742_v53  ;;  %v749_v54 = vmul.f32 %v1005_v52, %v748_v55 }
 0x553   : > { %v757_v59 = vmul.f32 %v746_v57, %v723_v33 }
 0x554   : > { %v750_v60 = vmul.f32 0.5, %v749_v54 }
 0x555   : > { %v762_v61 = vmul.f32 %v966_v56, %v757_v59 }
 0x556   : > { %v751_v62 = vsub.f32 1.5, %v750_v60 }
 0x557   : > { %v767_v63 = vadd.f32 %v967_v58, %v762_v61 }
 0x558   : > { %v752_v0 = vmul.f32 %v1005_v52, %v751_v62 }
 0x559   : > { %v769_v1 = vpack.c.bf16 %v767_v63, %v767_v63 }
 0x55a   : > { %v756_v2 = vsel %vm755_vm11, %v1005_v52, %v752_v0 }
 0x55b   : > { %772 = vst.msk [vmem:[%s312_s25] sm:$0xf] %vm771_vm9, %v769_v1  ;;  %v758_v3 = vmul.f32 %v756_v2, %v724_v38 }
 0x55d   : > { %v763_v4 = vmul.f32 %v966_v56, %v758_v3 }
 0x55f   : > { %v768_v5 = vadd.f32 %v967_v58, %v763_v4 }
 0x561   : > { %v770_v6 = vpack.c.bf16 %v768_v5, %v768_v5 }
 0x563   : > { %773 = vst.msk [vmem:[%s312_s25 + $0x4] sm:$0xf] %vm771_vm9, %v770_v6 }
 0x564 PF: > { %s19_s24 = sadd.s32 1, %s1080_s24  }
 0x565   : > { %p16_p7 = scmp.ge.s32.totalorder %s19_s24, 4  }
 0x567   :  { %18 = sbr.rel (!%p16_p7) target bundleno = 2 (0x2), region = 87 }
 0x56c   :  { %795 = vsyncpa [#allocation3], 1 }
 0x56d   :  { %797 = vsyncpa [#allocation3 + $0x1], 1 }
 0x56e   :  { %798 = vsyncpa [#allocation5], 1 }

// kernel: _lambda_.15
= control target key start
LH: loop header
LB: loop body
LE: loop exit
PB: predicated region body
PF: predicated region fallthrough
CT: control target
= control target key end

     0   :  { %12 = vsyncpa [#allocation3], 0  ;;  %s558_s0 = inlined_call_operand.vmem [shape: bf16[32,32], index: 0, kind: input, shape index: {}]   ;;  %s559_s1 = inlined_call_operand.hbm [shape: bf16[32,64], index: 1, kind: input, shape index: {}]   ;;  %s560_s2 = inlined_call_operand.vmem [shape: f32[1,64], index: 2, kind: input, shape index: {}]   ;;  %s561_s3 = inlined_call_operand.hbm [shape: bf16[64,32], index: 3, kind: input, shape index: {}]   ;;  %s562_s4 = inlined_call_operand.vmem [shape: f32[1,32], index: 4, kind: input, shape index: {}, may-alias: {4,6}]   ;;  %s563_s5 = inlined_call_operand.vmem [shape: f32[1,32], index: 5, kind: input, shape index: {}]   ;;  %s564_s6 = inlined_call_operand.vmem [shape: f32[1,32], index: 6, kind: input, shape index: {}, may-alias: {4,6}]   ;;  %s565_s7 = inlined_call_operand.vmem [shape: bf16[32,32], index: 7, kind: output, shape index: {}]  }
   0x1   :  { %s20_s26 = sshll.u32 %s559_s1, 4  ;;  %s21_s26 = int_to_ptr.hbm [resolvable:$true] %s20_s26 }
   0x2   :  { %13 = vsyncpa [#allocation5], 0  ;;  %s442_s27 = smov [#allocation2]   ;;  %s35_s8 = sshll.u32 %s561_s3, 4  ;;  %s36_s8 = int_to_ptr.hbm [resolvable:$true] %s35_s8 }
   0x3   :  { %s22_s28 = sshll.u32 %s442_s27, 4  ;;  %s443_s9 = smov 64   ;;  %s23_s28 = int_to_ptr.vmem [resolvable:$true] %s22_s28 }
   0x4   :  { %s444_s10 = smov 4   ;;  %s445_s11 = smov [#allocation4]  }
   0x5   :  { %28 = dma.hbm_to_vmem [thread:$0]  %s21_s26, 256, %s23_s28, [#allocation3], %s443_s9, %s443_s9, %s444_s10  }
   0x6   :  { %s37_s12 = sshll.u32 %s445_s11, 4  ;;  %s38_s12 = int_to_ptr.vmem [resolvable:$true] %s37_s12 }
   0x7   :  { %43 = dma.hbm_to_vmem [thread:$0]  %s36_s8, 512, %s38_s12, [#allocation5], %s443_s9, %s443_s9, %s444_s10  }
   0x8   :  { %438 = dma.done.wait [#allocation3], 256  }
   0x9   :  { %439 = vsyncadd [#allocation3], 4294967040 }
   0xa   :  { %440 = dma.done.wait [#allocation5], 512  }
   0xb   :  { %441 = vsyncadd [#allocation5], 4294966784  ;;  %v360_v0 = vld [vmem:[#allocation2 + $0x8] sm:$0xff]  ;;  %v359_v1 = vld [vmem:[#allocation2] sm:$0xff]  ;;  %vm93_vm0 = vcmask 261120   ;;  %vm161_vm1 = vcmask 523264  }
   0xc   :  { %106 = vmatpush.bf16.msra.mxu0 %v360_v0  ;;  %365 = vmatpush.bf16.msra.mxu3 %v360_v0  ;;  %v357_v2 = vld [vmem:[%s558_s0] sm:$0xff]  ;;  %v358_v3 = vld [vmem:[%s558_s0 + $0x8] sm:$0xff]  ;;  %v362_v6 = vld [vmem:[#allocation4 + $0x8] sm:$0xff]  ;;  %v446_v46 = vmov 32.0   ;;  %vm310_vm7 = vcmask 257024  }
   0xd   :  { %v364_v4 = vld [vmem:[#allocation4 + $0x18] sm:$0xff]  ;;  %v363_v5 = vld [vmem:[#allocation4 + $0x10] sm:$0xff]  ;;  %v361_v7 = vld [vmem:[#allocation4] sm:$0xff]  ;;  %380 = vrcp.f32 %v446_v46 }
   0xe   :  { %172 = vmatpush.bf16.msra.mxu1 %v364_v4  ;;  %367 = vmatpush.bf16.msra.mxu2 %v364_v4  ;;  %v376_v9 = vld [vmem:[%s560_s2] ss:$0 sm:$0xff]  ;;  %v61_v32 = vld [vmem:[%s558_s0 + $0x8] sm:$0xff]  }
   0xf   :  { %v59_v23 = vld [vmem:[%s558_s0] sm:$0xff]   ;;  %v189_v35 = vunpack.c.l.bf16 %v61_v32  ;;  %v190_v41 = vunpack.c.h.bf16 %v61_v32 }
  0x10   :  { %107 = vmatpush.bf16.msra.mxu0 %v359_v1  ;;  %366 = vmatpush.bf16.msra.mxu3 %v359_v1  ;;  %v377_v24 = vld [vmem:[%s562_s4] ss:$0 sm:$0xff]  ;;  %v187_v25 = vunpack.c.l.bf16 %v59_v23  ;;  %v188_v30 = vunpack.c.h.bf16 %v59_v23 }
  0x11   :  { %v379_v32 = vld [vmem:[%s564_s6] ss:$0 sm:$0xff] }
  0x12   :  { %173 = vmatpush.bf16.msra.mxu1 %v363_v5  ;;  %368 = vmatpush.bf16.msra.mxu2 %v363_v5 }
  0x13   :  { %337 = vmatmul.msk.bf16.vlgmr.msra.gmra.mxu0 %vm93_vm0, %v357_v2  ;;  %338 = vmatmul.msk.bf16.vlgmr.msra.gmra.mxu3 %vm93_vm0, %v358_v3  ;;  %v381_v47 = vpop.eup %380 }
  0x14   :  { %v210_v48 = vmul.f32 32.0, %v381_v47  ;;  %vm214_vm2 = vweird.f32 %v381_v47 }
  0x16   :  { %174 = vmatpush.bf16.msra.mxu1 %v362_v6  ;;  %369 = vmatpush.bf16.msra.mxu2 %v362_v6  ;;  %v211_v49 = vsub.f32 1.0, %v210_v48 }
  0x18   :  { %v212_v50 = vmul.f32 %v381_v47, %v211_v49 }
  0x1a   :  { %175 = vmatpush.bf16.msra.mxu1 %v361_v7  ;;  %370 = vmatpush.bf16.msra.mxu2 %v361_v7  ;;  %v213_v51 = vadd.f32 %v381_v47, %v212_v50 }
  0x1c   :  { %v215_v52 = vsel %vm214_vm2, %v381_v47, %v213_v51 }
  0x90   :  { %v109_v8 = vpop.f32.mrf.mxu0 }
  0x91   :  { %v110_v10 = vadd.f32 %v376_v9, %v109_v8 }
  0x93   :  { %v119_v13 = vmax.f32 %v110_v10, 0.0 }
  0x96   :  { %v114_v11 = vpop.f32.mrf.mxu3 }
  0x97   :  { %v115_v16 = vadd.f32 %v376_v9, %v114_v11 }
  0x98   :  { %v111_v12 = vpop.f32.mrf.mxu0 }
  0x99   :  { %v112_v14 = vadd.f32 %v376_v9, %v111_v12  ;;  %v121_v20 = vmax.f32 %v115_v16, 0.0 }
  0x9b   :  { %v120_v15 = vmax.f32 %v112_v14, 0.0 }
  0x9d   :  { %v131_v17 = vpack.c.bf16 %v120_v15, %v119_v13 }
  0x9e   :  { %v116_v18 = vpop.f32.mrf.mxu3 }
  0x9f   :  { %v117_v19 = vadd.f32 %v376_v9, %v116_v18  ;;  %355 = vmatmul.msk.bf16.vlgmr.msra.gmra.mxu1 %vm161_vm1, %v131_v17 }
  0xa1   :  { %v122_v21 = vmax.f32 %v117_v19, 0.0 }
  0xa3   :  { %v132_v22 = vpack.c.bf16 %v122_v21, %v121_v20 }
  0xa5   :  { %356 = vmatmul.msk.bf16.vlgmr.msra.gmra.mxu2 %vm161_vm1, %v132_v22 }
 0x11c   :  { %v177_v26 = vpop.f32.mrf.mxu1 }
 0x11d   :  { %v178_v27 = vadd.f32 %v377_v24, %v177_v26 }
 0x11f   :  { %v191_v28 = vadd.f32 %v187_v25, %v178_v27  ;;  %v378_v27 = vld [vmem:[%s563_s5] ss:$0 sm:$0xff] }
 0x121   :  { %v197_v29 = vsel %vm93_vm0, %v191_v28, 0.0 }
 0x122   :  { %198 = vadd.xlane.f32.xlu0 %v197_v29 }
 0x124   :  { %v179_v31 = vpop.f32.mrf.mxu1 }
 0x125   :  { %v180_v33 = vadd.f32 %v377_v24, %v179_v31 }
 0x127   :  { %v192_v34 = vadd.f32 %v188_v30, %v180_v33 }
 0x128   :  { %v182_v36 = vpop.f32.mrf.mxu2 }
 0x129   :  { %v183_v37 = vadd.f32 %v377_v24, %v182_v36  ;;  %v200_v38 = vsel %vm93_vm0, %v192_v34, 0.0 }
 0x12a   :  { %201 = vadd.xlane.f32.xlu0 %v200_v38 }
 0x12b   :  { %v193_v39 = vadd.f32 %v189_v35, %v183_v37 }
 0x12d   :  { %v203_v40 = vsel %vm93_vm0, %v193_v39, 0.0 }
 0x12e   :  { %204 = vadd.xlane.f32.xlu1 %v203_v40 }
 0x130   :  { %v184_v42 = vpop.f32.mrf.mxu2 }
 0x131   :  { %v185_v43 = vadd.f32 %v377_v24, %v184_v42 }
 0x133   :  { %v194_v44 = vadd.f32 %v190_v41, %v185_v43 }
 0x135   :  { %v206_v45 = vsel %vm93_vm0, %v194_v44, 0.0 }
 0x136   :  { %207 = vadd.xlane.f32.xlu1 %v206_v45 }
 0x195   :  { %v199_v53 = vpop.xlane.xlu0 %198 }
 0x196   :  { %v216_v54 = vmul.f32 %v215_v52, %v199_v53 }
 0x198   :  { %v220_v55 = vsub.f32 %v191_v28, %v216_v54 }
 0x19a   :  { %v224_v56 = vmul.f32 %v220_v55, %v220_v55 }
 0x19c   :  { %v228_v57 = vsel %vm93_vm0, %v224_v56, 0.0 }
 0x19d   :  { %229 = vadd.xlane.f32.xlu2 %v228_v57  ;;  %v202_v58 = vpop.xlane.xlu0 %201 }
 0x19e   :  { %v217_v59 = vmul.f32 %v215_v52, %v202_v58 }
 0x1a0   :  { %v518_v60 = vsub.f32 %v192_v34, %v217_v59 }
 0x1a1   :  { %v205_v61 = vpop.xlane.xlu1 %204 }
 0x1a2   :  { %v218_v62 = vmul.f32 %v215_v52, %v205_v61  ;;  %v225_v63 = vmul.f32 %v518_v60, %v518_v60 }
 0x1a4   :  { %v522_v0 = vsub.f32 %v193_v39, %v218_v62  ;;  %v231_v1 = vsel %vm93_vm0, %v225_v63, 0.0 }
 0x1a5   :  { %232 = vadd.xlane.f32.xlu2 %v231_v1 }
 0x1a6   :  { %v226_v2 = vmul.f32 %v522_v0, %v522_v0 }
 0x1a8   :  { %v234_v3 = vsel %vm93_vm0, %v226_v2, 0.0 }
 0x1a9   :  { %v208_v4 = vpop.xlane.xlu1 %207  ;;  %235 = vadd.xlane.f32.xlu0 %v234_v3 }
 0x1aa   :  { %v219_v5 = vmul.f32 %v215_v52, %v208_v4 }
 0x1ac   :  { %v528_v6 = vsub.f32 %v194_v44, %v219_v5 }
 0x1ae   :  { %v227_v7 = vmul.f32 %v528_v6, %v528_v6 }
 0x1b0   :  { %v237_v8 = vsel %vm93_vm0, %v227_v7, 0.0 }
 0x1b1   :  { %238 = vadd.xlane.f32.xlu1 %v237_v8 }
 0x210   :  { %v230_v9 = vpop.xlane.xlu2 %229 }
 0x211   :  { %v240_v10 = vmul.f32 %v230_v9, %v215_v52 }
 0x213   :  { %v244_v11 = vadd.f32 1e-05, %v240_v10 }
 0x215   :  { %382 = vrsqrt.f32 %v244_v11  ;;  %vm254_vm4 = vweird.f32 %v244_v11 }
 0x218   :  { %v233_v12 = vpop.xlane.xlu2 %232 }
 0x219   :  { %v241_v13 = vmul.f32 %v233_v12, %v215_v52 }
 0x21b   :  { %v383_v14 = vpop.eup %382  ;;  %v245_v15 = vadd.f32 1e-05, %v241_v13 }
 0x21c   :  { %v249_v16 = vmul.f32 %v383_v14, %v244_v11  ;;  %v236_v17 = vpop.xlane.xlu0 %235  ;;  %vm255_vm3 = vweird.f32 %v383_v14 }
 0x21d   :  { %384 = vrsqrt.f32 %v245_v15  ;;  %v242_v18 = vmul.f32 %v236_v17, %v215_v52  ;;  %vm256_vm5 = vmor %vm254_vm4, %vm255_vm3  ;;  %vm264_vm8 = vweird.f32 %v245_v15 }
 0x21e   :  { %v250_v19 = vmul.f32 %v383_v14, %v249_v16 }
 0x21f   :  { %v246_v20 = vadd.f32 1e-05, %v242_v18 }
 0x220   :  { %v251_v21 = vmul.f32 0.5, %v250_v19 }
 0x221   :  { %386 = vrsqrt.f32 %v246_v20  ;;  %vm274_vm11 = vweird.f32 %v246_v20 }
 0x222   :  { %v252_v22 = vsub.f32 1.5, %v251_v21 }
 0x223   :  { %v385_v23 = vpop.eup %384 }
 0x224   :  { %v253_v24 = vmul.f32 %v383_v14, %v252_v22  ;;  %v259_v25 = vmul.f32 %v385_v23, %v245_v15  ;;  %v239_v26 = vpop.xlane.xlu1 %238  ;;  %vm265_vm6 = vweird.f32 %v385_v23 }
 0x225   :  { %v243_v28 = vmul.f32 %v239_v26, %v215_v52  ;;  %vm266_vm9 = vmor %vm264_vm8, %vm265_vm6 }
 0x226   :  { %v257_v29 = vsel %vm256_vm5, %v383_v14, %v253_v24  ;;  %v260_v30 = vmul.f32 %v385_v23, %v259_v25 }
 0x227   :  { %v387_v31 = vpop.eup %386  ;;  %v288_v33 = vmul.f32 %v257_v29, %v220_v55  ;;  %v247_v34 = vadd.f32 1e-05, %v243_v28 }
 0x228   :  { %v261_v35 = vmul.f32 0.5, %v260_v30  ;;  %v269_v36 = vmul.f32 %v387_v31, %v246_v20  ;;  %vm275_vm10 = vweird.f32 %v387_v31 }
 0x229   :  { %v295_v37 = vmul.f32 %v378_v27, %v288_v33  ;;  %388 = vrsqrt.f32 %v247_v34  ;;  %vm276_vm12 = vmor %vm274_vm11, %vm275_vm10  ;;  %vm284_vm14 = vweird.f32 %v247_v34 }
 0x22a   :  { %v262_v38 = vsub.f32 1.5, %v261_v35  ;;  %v270_v39 = vmul.f32 %v387_v31, %v269_v36 }
 0x22b   :  { %v302_v40 = vadd.f32 %v379_v32, %v295_v37 }
 0x22c   :  { %v263_v41 = vmul.f32 %v385_v23, %v262_v38  ;;  %v271_v42 = vmul.f32 0.5, %v270_v39 }
 0x22d   :  { %v306_v43 = vpack.c.bf16 %v302_v40, %v302_v40 }
 0x22e   :  { %v267_v44 = vsel %vm266_vm9, %v385_v23, %v263_v41  ;;  %v272_v45 = vsub.f32 1.5, %v271_v42 }
 0x22f   :  { %v389_v46 = vpop.eup %388  ;;  %311 = vst.msk [vmem:[%s565_s7] sm:$0xf] %vm310_vm7, %v306_v43  ;;  %v289_v47 = vmul.f32 %v267_v44, %v518_v60 }
 0x230   :  { %v273_v48 = vmul.f32 %v387_v31, %v272_v45  ;;  %v279_v49 = vmul.f32 %v389_v46, %v247_v34  ;;  %vm285_vm13 = vweird.f32 %v389_v46 }
 0x231   :  { %v296_v50 = vmul.f32 %v378_v27, %v289_v47  ;;  %vm286_vm15 = vmor %vm284_vm14, %vm285_vm13 }
 0x232   :  { %v277_v51 = vsel %vm276_vm12, %v387_v31, %v273_v48  ;;  %v280_v52 = vmul.f32 %v389_v46, %v279_v49 }
 0x233   :  { %v303_v53 = vadd.f32 %v379_v32, %v296_v50  ;;  %v290_v54 = vmul.f32 %v277_v51, %v522_v0 }
 0x234   :  { %v281_v55 = vmul.f32 0.5, %v280_v52 }
 0x235   :  { %v307_v56 = vpack.c.bf16 %v303_v53, %v303_v53  ;;  %v297_v57 = vmul.f32 %v378_v27, %v290_v54 }
 0x236   :  { %v282_v58 = vsub.f32 1.5, %v281_v55 }
 0x237   :  { %312 = vst.msk [vmem:[%s565_s7 + $0x4] sm:$0xf] %vm310_vm7, %v307_v56  ;;  %v304_v59 = vadd.f32 %v379_v32, %v297_v57 }
 0x238   :  { %v283_v60 = vmul.f32 %v389_v46, %v282_v58 }
 0x239   :  { %v308_v61 = vpack.c.bf16 %v304_v59, %v304_v59 }
 0x23a   :  { %v287_v62 = vsel %vm286_vm15, %v389_v46, %v283_v60 }
 0x23b   :  { %313 = vst.msk [vmem:[%s565_s7 + $0x8] sm:$0xf] %vm310_vm7, %v308_v61  ;;  %v291_v63 = vmul.f32 %v287_v62, %v528_v6 }
 0x23d   :  { %v298_v0 = vmul.f32 %v378_v27, %v291_v63 }
 0x23f   :  { %v305_v1 = vadd.f32 %v379_v32, %v298_v0 }
 0x241   :  { %v309_v2 = vpack.c.bf16 %v305_v1, %v305_v1 }
 0x243   :  { %314 = vst.msk [vmem:[%s565_s7 + $0xc] sm:$0xf] %vm310_vm7, %v309_v2 }
 0x244   :  { %319 = vsyncpa [#allocation3], 1 }
 0x245   :  { %320 = vsyncpa [#allocation5], 1 }

// kernel: _lambda_.19
= control target key start
LH: loop header
LB: loop body
LE: loop exit
PB: predicated region body
PF: predicated region fallthrough
CT: control target
= control target key end

     0   :  { %12 = vsyncpa [#allocation3], 0  ;;  %s423_s0 = inlined_call_operand.vmem [shape: bf16[16,32], index: 0, kind: input, shape index: {}]   ;;  %s424_s1 = inlined_call_operand.hbm [shape: bf16[32,64], index: 1, kind: input, shape index: {}]   ;;  %s425_s2 = inlined_call_operand.vmem [shape: f32[1,64], index: 2, kind: input, shape index: {}]   ;;  %s426_s3 = inlined_call_operand.hbm [shape: bf16[64,32], index: 3, kind: input, shape index: {}]   ;;  %s427_s4 = inlined_call_operand.vmem [shape: f32[1,32], index: 4, kind: input, shape index: {}, may-alias: {4,6}]   ;;  %s428_s5 = inlined_call_operand.vmem [shape: f32[1,32], index: 5, kind: input, shape index: {}]   ;;  %s429_s6 = inlined_call_operand.vmem [shape: f32[1,32], index: 6, kind: input, shape index: {}, may-alias: {4,6}]   ;;  %s430_s7 = inlined_call_operand.vmem [shape: bf16[16,32], index: 7, kind: output, shape index: {}]  }
   0x1   :  { %s20_s26 = sshll.u32 %s424_s1, 4  ;;  %s21_s26 = int_to_ptr.hbm [resolvable:$true] %s20_s26 }
   0x2   :  { %13 = vsyncpa [#allocation5], 0  ;;  %s343_s27 = smov [#allocation2]   ;;  %s35_s8 = sshll.u32 %s426_s3, 4  ;;  %s36_s8 = int_to_ptr.hbm [resolvable:$true] %s35_s8 }
   0x3   :  { %s22_s28 = sshll.u32 %s343_s27, 4  ;;  %s344_s9 = smov 64   ;;  %s23_s28 = int_to_ptr.vmem [resolvable:$true] %s22_s28 }
   0x4   :  { %s345_s10 = smov 4   ;;  %s346_s11 = smov [#allocation4]  }
   0x5   :  { %28 = dma.hbm_to_vmem [thread:$0]  %s21_s26, 256, %s23_s28, [#allocation3], %s344_s9, %s344_s9, %s345_s10  }
   0x6   :  { %s37_s12 = sshll.u32 %s346_s11, 4  ;;  %s38_s12 = int_to_ptr.vmem [resolvable:$true] %s37_s12 }
   0x7   :  { %43 = dma.hbm_to_vmem [thread:$0]  %s36_s8, 512, %s38_s12, [#allocation5], %s344_s9, %s344_s9, %s345_s10  }
   0x8   :  { %339 = dma.done.wait [#allocation3], 256  }
   0x9   :  { %340 = vsyncadd [#allocation3], 4294967040 }
   0xa   :  { %341 = dma.done.wait [#allocation5], 512  }
   0xb   :  { %342 = vsyncadd [#allocation5], 4294966784  ;;  %v271_v0 = vld [vmem:[#allocation2 + $0x8] sm:$0xff]  ;;  %v270_v1 = vld [vmem:[#allocation2] sm:$0xff]  ;;  %vm86_vm0 = vcmask 261120   ;;  %vm143_vm1 = vcmask 523264  }
   0xc   :  { %96 = vmatpush.bf16.msra.mxu0 %v271_v0  ;;  %v269_v2 = vld [vmem:[%s423_s0] sm:$0xff]  ;;  %v275_v3 = vld [vmem:[#allocation4 + $0x18] sm:$0xff]  ;;  %v273_v5 = vld [vmem:[#allocation4 + $0x8] sm:$0xff]  ;;  %v347_v27 = vmov 32.0   ;;  %vm230_vm7 = vcmask 257024  }
   0xd   :  { %151 = vmatpush.bf16.msra.mxu1 %v275_v3  ;;  %v274_v4 = vld [vmem:[#allocation4 + $0x10] sm:$0xff]  ;;  %v272_v6 = vld [vmem:[#allocation4] sm:$0xff]  ;;  %285 = vrcp.f32 %v347_v27 }
   0xe   :  { %v281_v8 = vld [vmem:[%s425_s2] ss:$0 sm:$0xff] }
   0xf   :  { %v59_v15 = vld [vmem:[%s423_s0] sm:$0xff]  }
  0x10   :  { %97 = vmatpush.bf16.msra.mxu0 %v270_v1  ;;  %v282_v16 = vld [vmem:[%s427_s4] ss:$0 sm:$0xff]  ;;  %v161_v17 = vunpack.c.l.bf16 %v59_v15  ;;  %v162_v22 = vunpack.c.h.bf16 %v59_v15 }
  0x11   :  { %152 = vmatpush.bf16.msra.mxu1 %v274_v4  ;;  %v283_v58 = vld [vmem:[%s428_s5] ss:$0 sm:$0xff] }
  0x12   :  { %v284_v61 = vld [vmem:[%s429_s6] ss:$0 sm:$0xff] }
  0x13   :  { %251 = vmatmul.msk.bf16.vlgmr.msra.gmra.mxu0 %vm86_vm0, %v269_v2  ;;  %v286_v28 = vpop.eup %285 }
  0x14   :  { %v174_v29 = vmul.f32 32.0, %v286_v28  ;;  %vm178_vm2 = vweird.f32 %v286_v28 }
  0x15   :  { %153 = vmatpush.bf16.msra.mxu1 %v273_v5 }
  0x16   :  { %v175_v30 = vsub.f32 1.0, %v174_v29 }
  0x18   :  { %v176_v31 = vmul.f32 %v286_v28, %v175_v30 }
  0x19   :  { %154 = vmatpush.bf16.msra.mxu1 %v272_v6 }
  0x1a   :  { %v177_v32 = vadd.f32 %v286_v28, %v176_v31 }
  0x1c   :  { %v179_v33 = vsel %vm178_vm2, %v286_v28, %v177_v32 }
  0x90   :  { %v99_v7 = vpop.f32.mrf.mxu0 }
  0x91   :  { %v100_v9 = vadd.f32 %v281_v8, %v99_v7 }
  0x93   :  { %v104_v12 = vmax.f32 %v100_v9, 0.0 }
  0x98   :  { %v101_v10 = vpop.f32.mrf.mxu0 }
  0x99   :  { %v102_v11 = vadd.f32 %v281_v8, %v101_v10 }
  0x9b   :  { %v105_v13 = vmax.f32 %v102_v11, 0.0 }
  0x9d   :  { %v114_v14 = vpack.c.bf16 %v105_v13, %v104_v12 }
  0x9f   :  { %268 = vmatmul.msk.bf16.vlgmr.msra.gmra.mxu1 %vm143_vm1, %v114_v14 }
 0x11c   :  { %v156_v18 = vpop.f32.mrf.mxu1 }
 0x11d   :  { %v157_v19 = vadd.f32 %v282_v16, %v156_v18 }
 0x11f   :  { %v163_v20 = vadd.f32 %v161_v17, %v157_v19 }
 0x121   :  { %v167_v21 = vsel %vm86_vm0, %v163_v20, 0.0 }
 0x122   :  { %168 = vadd.xlane.f32.xlu0 %v167_v21 }
 0x124   :  { %v158_v23 = vpop.f32.mrf.mxu1 }
 0x125   :  { %v159_v24 = vadd.f32 %v282_v16, %v158_v23 }
 0x127   :  { %v164_v25 = vadd.f32 %v162_v22, %v159_v24 }
 0x129   :  { %v170_v26 = vsel %vm86_vm0, %v164_v25, 0.0 }
 0x12a   :  { %171 = vadd.xlane.f32.xlu0 %v170_v26 }
 0x195   :  { %v169_v34 = vpop.xlane.xlu0 %168 }
 0x196   :  { %v180_v35 = vmul.f32 %v179_v33, %v169_v34 }
 0x198   :  { %v182_v36 = vsub.f32 %v163_v20, %v180_v35 }
 0x19a   :  { %v184_v37 = vmul.f32 %v182_v36, %v182_v36 }
 0x19c   :  { %v186_v38 = vsel %vm86_vm0, %v184_v37, 0.0 }
 0x19d   :  { %187 = vadd.xlane.f32.xlu1 %v186_v38  ;;  %v172_v39 = vpop.xlane.xlu0 %171 }
 0x19e   :  { %v181_v40 = vmul.f32 %v179_v33, %v172_v39 }
 0x1a0   :  { %v183_v41 = vsub.f32 %v164_v25, %v181_v40 }
 0x1a2   :  { %v185_v42 = vmul.f32 %v183_v41, %v183_v41 }
 0x1a4   :  { %v189_v43 = vsel %vm86_vm0, %v185_v42, 0.0 }
 0x1a5   :  { %190 = vadd.xlane.f32.xlu1 %v189_v43 }
 0x210   :  { %v188_v44 = vpop.xlane.xlu1 %187 }
 0x211   :  { %v192_v45 = vmul.f32 %v188_v44, %v179_v33 }
 0x213   :  { %v194_v46 = vadd.f32 1e-05, %v192_v45 }
 0x215   :  { %287 = vrsqrt.f32 %v194_v46  ;;  %vm202_vm4 = vweird.f32 %v194_v46 }
 0x218   :  { %v191_v47 = vpop.xlane.xlu1 %190 }
 0x219   :  { %v193_v48 = vmul.f32 %v191_v47, %v179_v33 }
 0x21b   :  { %v288_v49 = vpop.eup %287  ;;  %v195_v50 = vadd.f32 1e-05, %v193_v48 }
 0x21c   :  { %v197_v51 = vmul.f32 %v288_v49, %v194_v46  ;;  %vm203_vm3 = vweird.f32 %v288_v49 }
 0x21d   :  { %289 = vrsqrt.f32 %v195_v50  ;;  %vm204_vm5 = vmor %vm202_vm4, %vm203_vm3  ;;  %vm212_vm8 = vweird.f32 %v195_v50 }
 0x21e   :  { %v198_v52 = vmul.f32 %v288_v49, %v197_v51 }
 0x220   :  { %v199_v53 = vmul.f32 0.5, %v198_v52 }
 0x222   :  { %v200_v54 = vsub.f32 1.5, %v199_v53 }
 0x223   :  { %v290_v55 = vpop.eup %289 }
 0x224   :  { %v201_v56 = vmul.f32 %v288_v49, %v200_v54  ;;  %v207_v57 = vmul.f32 %v290_v55, %v195_v50  ;;  %vm213_vm6 = vweird.f32 %v290_v55 }
 0x225   :  { %vm214_vm9 = vmor %vm212_vm8, %vm213_vm6 }
 0x226   :  { %v205_v59 = vsel %vm204_vm5, %v288_v49, %v201_v56  ;;  %v208_v60 = vmul.f32 %v290_v55, %v207_v57 }
 0x227   :  { %v216_v62 = vmul.f32 %v205_v59, %v182_v36 }
 0x228   :  { %v209_v63 = vmul.f32 0.5, %v208_v60 }
 0x229   :  { %v221_v0 = vmul.f32 %v283_v58, %v216_v62 }
 0x22a   :  { %v210_v1 = vsub.f32 1.5, %v209_v63 }
 0x22b   :  { %v226_v2 = vadd.f32 %v284_v61, %v221_v0 }
 0x22c   :  { %v211_v3 = vmul.f32 %v290_v55, %v210_v1 }
 0x22d   :  { %v228_v4 = vpack.c.bf16 %v226_v2, %v226_v2 }
 0x22e   :  { %v215_v5 = vsel %vm214_vm9, %v290_v55, %v211_v3 }
 0x22f   :  { %231 = vst.msk [vmem:[%s430_s7] sm:$0xf] %vm230_vm7, %v228_v4  ;;  %v217_v6 = vmul.f32 %v215_v5, %v183_v41 }
 0x231   :  { %v222_v7 = vmul.f32 %v283_v58, %v217_v6 }
 0x233   :  { %v227_v8 = vadd.f32 %v284_v61, %v222_v7 }
 0x235   :  { %v229_v9 = vpack.c.bf16 %v227_v8, %v227_v8 }
 0x237   :  { %232 = vst.msk [vmem:[%s430_s7 + $0x4] sm:$0xf] %vm230_vm7, %v229_v9 }
 0x238   :  { %237 = vsyncpa [#allocation3], 1 }
 0x239   :  { %238 = vsyncpa [#allocation5], 1 }

// kernel: _lambda_.18
= control target key start
LH: loop header
LB: loop body
LE: loop exit
PB: predicated region body
PF: predicated region fallthrough
CT: control target
= control target key end

     0   :  { %12 = vsyncpa [#allocation3], 0  ;;  %s1095_s0 = inlined_call_operand.vmem [shape: bf16[2,8,32], index: 0, kind: input, shape index: {}]   ;;  %s1096_s1 = inlined_call_operand.hbm [shape: bf16[32,96], index: 1, kind: input, shape index: {}]   ;;  %s1097_s2 = inlined_call_operand.vmem [shape: f32[1,96], index: 2, kind: input, shape index: {}]   ;;  %s1098_s3 = inlined_call_operand.hbm [shape: bf16[32,32], index: 3, kind: input, shape index: {}]   ;;  %s1099_s4 = inlined_call_operand.vmem [shape: f32[1,32], index: 4, kind: input, shape index: {}, may-alias: {4,6}]   ;;  %s1100_s5 = inlined_call_operand.vmem [shape: f32[1,32], index: 5, kind: input, shape index: {}]   ;;  %s1101_s6 = inlined_call_operand.vmem [shape: f32[1,32], index: 6, kind: input, shape index: {}, may-alias: {4,6}]   ;;  %s1102_s7 = inlined_call_operand.vmem [shape: bf16[2,8,32], index: 7, kind: output, shape index: {}]  }
   0x1   :  { %13 = vsyncpa [#allocation5], 0  ;;  %s997_s24 = smov 0  }
   0x2 LB: > { %s213_s27 = sshll.u32 %s1096_s1, 4  ;;  %s749_s28 = sadd.s32 4294967295, %s936_s24   ;;  %s936_s24 = sphi %s997_s24, %s19_s24   ;;  %s214_s27 = int_to_ptr.hbm [resolvable:$true] %s213_s27 }
   0x3   : > { %p751_p0 = scmp.ge.s32.totalorder %s936_s24, 1  ;;  %p202_p1 = scmp.lt.s32.totalorder %s936_s24, 3 }
   0x4   : > { %p807_p2 = scmp.eq.s32.totalorder %s749_s28, 0  ;;  %s938_s30 = smov [#allocation2]  }
   0x5   : > { %p1008_p3 = pnand %p751_p0, %p202_p1  ;;  %s215_s8 = sshll.u32 %s938_s30, 4  ;;  %s216_s8 = int_to_ptr.vmem [resolvable:$true] %s215_s8 }
   0x6   : > { %s230_s11 = sshll.u32 %s1098_s3, 4  ;;  %s939_s12 = smov [#allocation4]   ;;  %s231_s11 = int_to_ptr.hbm [resolvable:$true] %s230_s11 }
   0x7   : > { %p800_p4 = pneg %p1008_p3  ;;  %s232_s13 = sshll.u32 %s939_s12, 4  ;;  %s233_s13 = int_to_ptr.vmem [resolvable:$true] %s232_s13 }
   0x8   : > { %s940_s14 = smov 64   ;;  %s941_s15 = smov 4  }
   0x9   : > { %p801_p5 = pnand %p807_p2, %p800_p4  ;;  %264 = sbr.rel (%p1008_p3) target bundleno = 1357 (0x54d), region = 48 }
   0xb   : > { %803 = dma.hbm_to_vmem [thread:$0]  (!%p801_p5), %s214_s27, 256, %s216_s8, [#allocation3], %s940_s14, %s940_s14, %s941_s15  }
   0xc   : > { %806 = dma.hbm_to_vmem [thread:$0]  (!%p801_p5), %s231_s11, 256, %s233_s13, [#allocation5], %s940_s14, %s940_s14, %s941_s15  }
   0xe   : > { %927 = dma.done.wait (%p807_p2), [#allocation3], 256  }
   0xf   : > { %929 = vsyncadd (%p807_p2), [#allocation3], 4294967040 }
  0x10   : > { %931 = dma.done.wait (%p807_p2), [#allocation5], 256  }
  0x11   : > { %933 = vsyncadd (%p807_p2), [#allocation5], 4294967040  ;;  %p300_p6 = scmp.lt.s32.totalorder %s749_s28, 1  ;;  %v789_v0 = vld [vmem:[#allocation2 + $0x8] sm:$0xff]  ;;  %v788_v1 = vld [vmem:[#allocation2] sm:$0xff]  ;;  %vm330_vm0 = vcmask 261120  }
  0x12   : > { %340 = vmatpush.bf16.msra.mxu0 %v789_v0  ;;  %v838_v3 = vld [vmem:[%s1097_s2] ss:$0 sm:$0xff]  ;;  %s942_s22 = smov 96   ;;  %s943_s23 = smov 104   ;;  %vm358_vm1 = vcmask 64512   ;;  %vm395_vm2 = vcmask 1043456  }
  0x13   : > { %s1105_s28 = smov (!%p300_p6, %s749_s28), 1  ;;  %s944_s25 = smov 120   ;;  %vm594_vm3 = vcmask 130048   ;;  %vm596_vm4 = vcmask 195584   ;;  %vm672_vm9 = vcmask 257024  }
  0x14   : > { %s758_s16 = sshll.u32 %s1105_s28, 2  ;;  %s945_s26 = smov 88  }
  0x15   : > { %s303_s19 = scalar_lea.vmem %s1095_s0, %s758_s16  ;;  %s946_s27 = smov 80  }
  0x16   : > { %341 = vmatpush.bf16.msra.mxu0 %v788_v1  ;;  %v1032_v2 = vld [vmem:[%s303_s19] sm:$0xf]  ;;  %s947_s29 = smov 72   ;;  %s948_s30 = smov 112  }
  0x17   : > { %s949_s8 = smov 64   ;;  %s950_s9 = smov 40  }
  0x18   : > { %s951_s10 = smov 56   ;;  %s952_s11 = smov 48  }
  0x19   : > { %768 = vmatmul.msk.bf16.vlgmr.msra.gmra.mxu0 %vm330_vm0, %v1032_v2  ;;  %s953_s12 = smov 8   ;;  %s954_s13 = smov 16  }
  0x1a   : > { %s955_s14 = smov 24  }
  0x96   : > { %v343_v4 = vpop.f32.mrf.mxu0 }
  0x97   : > { %v344_v5 = vadd.f32 %v838_v3, %v343_v4 }
  0x99   : > { %v347_v6 = vmul.f32 0.35355338, %v344_v5  ;;  %v1039_v7 = vpack.c.bf16 %v344_v5, %v344_v5 }
  0x9b   : > { %v353_v8 = vpack.c.bf16 %v347_v6, %v347_v6  ;;  %356 = vrot.lane.b32.xlu0 %v1039_v7, %s942_s22 }
  0x9d   : > { %525 = vrot.lane.b32.xlu2 %v353_v8, %s943_s23  ;;  %413 = vrot.lane.b32.xlu1 %v353_v8, %s944_s25  ;;  %s307_s25 = scalar_lea.vmem %s1102_s7, %s758_s16 }
  0x9e   : > { %v345_v9 = vpop.f32.mrf.mxu0 }
  0xa3   : > { %415 = vrot.lane.b32.xlu0 %v1039_v7, %s945_s26 }
  0xa5   : > { %471 = vrot.lane.b32.xlu2 %v1039_v7, %s946_s27  ;;  %527 = vrot.lane.b32.xlu1 %v1039_v7, %s947_s29 }
  0xab   : > { %469 = vrot.lane.b32.xlu0 %v353_v8, %s948_s30 }
  0xf7   : > { %v526_v10 = vpop.permute.xlu2 %525 }
  0xff   : > { %v472_v11 = vpop.permute.xlu2 %471 }
 0x100   : > { %v477_v12 = vsel %vm358_vm1, %v472_v11, 0 }
 0x101   : > { %486 = vmatpush.bf16.xpose.msrb.mxu0 %v477_v12 }
 0x10d   : > { %v357_v13 = vpop.permute.xlu0 %356 }
 0x10e   : > { %v363_v14 = vsel %vm358_vm1, %v357_v13, 0 }
 0x10f   : > { %372 = vmatpush.bf16.xpose.msra.mxu1 %v363_v14  ;;  %v414_v15 = vpop.permute.xlu1 %413 }
 0x115   : > { %v416_v16 = vpop.permute.xlu0 %415 }
 0x116   : > { %769 = vmatmul.msk.bf16.vlgmr.msra.gmra.mxu1 %vm358_vm1, %v353_v8  ;;  %v421_v17 = vsel %vm358_vm1, %v416_v16, 0 }
 0x117   : > { %430 = vmatpush.bf16.xpose.msra.mxu3 %v421_v17  ;;  %v528_v18 = vpop.permute.xlu1 %527 }
 0x118   : > { %v533_v19 = vsel %vm358_vm1, %v528_v18, 0 }
 0x11d   : > { %v470_v20 = vpop.permute.xlu0 %469 }
 0x11e   : > { %771 = vmatmul.msk.bf16.vlgmr.msra.gmra.mxu3 %vm358_vm1, %v414_v15  ;;  %773 = vmatmul.msk.bf16.vlgmr.msrb.gmra.mxu0 %vm358_vm1, %v470_v20 }
 0x11f   : > { %542 = vmatpush.bf16.xpose.msrb.mxu3 %v533_v19 }
 0x12e   : > { %775 = vmatmul.msk.bf16.vlgmr.msrb.gmra.mxu3 %vm358_vm1, %v526_v10 }
 0x193   : > { %v374_v21 = vpop.f32.mrf.mxu1 }
 0x194   : > { %v378_v22 = vsel %vm358_vm1, %v374_v21, -inf }
 0x195   : > { %379 = vmax.xlane.f32.xlu1 %v378_v22  ;;  %v791_v22 = vld [vmem:[#allocation4 + $0x8] sm:$0xff] }
 0x196   : > { %623 = vmatpush.bf16.msra.mxu0 %v791_v22 }
 0x19b   : > { %v376_v23 = vpop.f32.mrf.mxu1  ;;  %v488_v24 = vpop.f32.mrf.mxu0 }
 0x19c   : > { %v492_v29 = vsel %vm358_vm1, %v488_v24, -inf  ;;  %v790_v23 = vld [vmem:[#allocation4] sm:$0xff] }
 0x19d   : > { %624 = vmatpush.bf16.msra.mxu0 %v790_v23 }
 0x1a1   : > { %v432_v25 = vpop.f32.mrf.mxu3 }
 0x1a2   : > { %v436_v26 = vsel %vm358_vm1, %v432_v25, -inf }
 0x1a3   : > { %v490_v27 = vpop.f32.mrf.mxu0  ;;  %437 = vmax.xlane.f32.xlu2 %v436_v26 }
 0x1a9   : > { %v434_v28 = vpop.f32.mrf.mxu3 }
 0x1ab   : > { %493 = vmax.xlane.f32.xlu2 %v492_v29 }
 0x1b1   : > { %v544_v30 = vpop.f32.mrf.mxu3 }
 0x1b2   : > { %v548_v31 = vsel %vm358_vm1, %v544_v30, -inf }
 0x1b3   : > { %549 = vmax.xlane.f32.xlu0 %v548_v31  ;;  %v839_v31 = vld [vmem:[%s1099_s4] ss:$0 sm:$0xff] }
 0x1b9   : > { %v546_v32 = vpop.f32.mrf.mxu3 }
 0x1ba   : > { %v630_v32 = vunpack.c.l.bf16 %v1032_v2 }
 0x1c3   : > { %390 = vrot.lane.b32.xlu2 %v1039_v7, %s949_s8 }
 0x1cb   : > { %560 = vrot.lane.b32.xlu2 %v1039_v7, %s950_s9 }
 0x208   : > { %v380_v33 = vpop.xlane.xlu1 %379 }
 0x209   : > { %v381_v34 = vsub.f32 %v374_v21, %v380_v33 }
 0x20b   : > { %v382_v35 = vmul.f32 1.442695, %v381_v34 }
 0x20d   : > { %842 = vpow2.f32 %v382_v35 }
 0x213   : > { %v843_v36 = vpop.eup %842 }
 0x214   : > { %v384_v37 = vsel %vm358_vm1, %v843_v36, 0.0 }
 0x215   : > { %385 = vadd.xlane.f32.xlu1 %v384_v37 }
 0x216   : > { %v438_v38 = vpop.xlane.xlu2 %437 }
 0x217   : > { %v439_v41 = vsub.f32 %v432_v25, %v438_v38  ;;  %v956_v38 = vmov 32.0  }
 0x219   : > { %v440_v43 = vmul.f32 1.442695, %v439_v41 }
 0x21e   : > { %v494_v39 = vpop.xlane.xlu2 %493 }
 0x21f   : > { %v495_v40 = vsub.f32 %v488_v24, %v494_v39 }
 0x221   : > { %v496_v42 = vmul.f32 1.442695, %v495_v40 }
 0x223   : > { %844 = vpow2.f32 %v496_v42 }
 0x224   : > { %846 = vpow2.f32 %v440_v43 }
 0x226   : > { %v391_v44 = vpop.permute.xlu2 %390  ;;  %v550_v45 = vpop.xlane.xlu0 %549 }
 0x227   : > { %v397_v46 = vsel %vm395_vm2, %v391_v44, 0  ;;  %v551_v48 = vsub.f32 %v544_v30, %v550_v45 }
 0x228   : > { %406 = vmatpush.bf16.msra.mxu2 %v397_v46 }
 0x229   : > { %v845_v47 = vpop.eup %844  ;;  %v552_v50 = vmul.f32 1.442695, %v551_v48 }
 0x22a   : > { %v498_v49 = vsel %vm358_vm1, %v845_v47, 0.0  ;;  %v847_v51 = vpop.eup %846 }
 0x22b   : > { %499 = vadd.xlane.f32.xlu0 %v498_v49  ;;  %848 = vpow2.f32 %v552_v50  ;;  %v442_v52 = vsel %vm358_vm1, %v847_v51, 0.0 }
 0x22e   : > { %448 = vrot.lane.b32.xlu1 %v1039_v7, %s951_s10  ;;  %v561_v60 = vpop.permute.xlu2 %560 }
 0x22f   : > { %v566_v63 = vsel %vm395_vm2, %v561_v60, 0  ;;  %v841_v60 = vld [vmem:[%s1101_s6] ss:$0 sm:$0xff] }
 0x231   : > { %v849_v53 = vpop.eup %848 }
 0x232   : > { %v554_v54 = vsel %vm358_vm1, %v849_v53, 0.0 }
 0x233   : > { %443 = vadd.xlane.f32.xlu0 %v442_v52 }
 0x23b   : > { %555 = vadd.xlane.f32.xlu0 %v554_v54 }
 0x24f   : > { %504 = vrot.lane.b32.xlu0 %v1039_v7, %s952_s11 }
 0x288   : > { %v386_v55 = vpop.xlane.xlu1 %385 }
 0x289   : > { %850 = vrcp.f32 %v386_v55 }
 0x28f   : > { %v851_v56 = vpop.eup %850 }
 0x290   : > { %v388_v57 = vmul.f32 %v851_v56, %v843_v36 }
 0x292   : > { %v389_v58 = vpack.c.bf16 %v388_v57, %v388_v57 }
 0x294   : > { %770 = vmatmul.msk.bf16.vlgmr.msra.gmra.mxu2 %vm358_vm1, %v389_v58  ;;  %v840_v58 = vld [vmem:[%s1100_s5] ss:$0 sm:$0xff] }
 0x29e   : > { %v500_v59 = vpop.xlane.xlu0 %499 }
 0x2a0   : > { %v449_v61 = vpop.permute.xlu1 %448 }
 0x2a1   : > { %v454_v62 = vsel %vm395_vm2, %v449_v61, 0 }
 0x2a2   : > { %463 = vmatpush.bf16.msrb.mxu2 %v454_v62 }
 0x2a6   : > { %575 = vmatpush.bf16.msra.mxu2 %v566_v63  ;;  %v444_v0 = vpop.xlane.xlu0 %443 }
 0x2a7   : > { %852 = vrcp.f32 %v444_v0 }
 0x2ad   : > { %v853_v1 = vpop.eup %852 }
 0x2ae   : > { %v446_v3 = vmul.f32 %v853_v1, %v847_v51  ;;  %v556_v4 = vpop.xlane.xlu0 %555 }
 0x2af   : > { %854 = vrcp.f32 %v556_v4 }
 0x2b0   : > { %v447_v5 = vpack.c.bf16 %v446_v3, %v446_v3  ;;  %856 = vrcp.f32 %v500_v59 }
 0x2b1   : > { %858 = vrcp.f32 %v956_v38 }
 0x2b2   : > { %772 = vmatmul.msk.bf16.vlgmr.msrb.gmra.mxu2 %vm358_vm1, %v447_v5 }
 0x2b5   : > { %v855_v6 = vpop.eup %854 }
 0x2b6   : > { %v558_v7 = vmul.f32 %v855_v6, %v849_v53  ;;  %v857_v8 = vpop.eup %856 }
 0x2b7   : > { %v502_v9 = vmul.f32 %v857_v8, %v845_v47  ;;  %v859_v39 = vpop.eup %858 }
 0x2b8   : > { %v559_v10 = vpack.c.bf16 %v558_v7, %v558_v7  ;;  %v638_v40 = vmul.f32 32.0, %v859_v39  ;;  %vm642_vm5 = vweird.f32 %v859_v39 }
 0x2b9   : > { %v503_v13 = vpack.c.bf16 %v502_v9, %v502_v9 }
 0x2ba   : > { %v639_v41 = vsub.f32 1.0, %v638_v40 }
 0x2bc   : > { %v640_v42 = vmul.f32 %v859_v39, %v639_v41 }
 0x2be   : > { %v641_v43 = vadd.f32 %v859_v39, %v640_v42 }
 0x2c0   : > { %v643_v44 = vsel %vm642_vm5, %v859_v39, %v641_v43 }
 0x2c1   : > { %v505_v11 = vpop.permute.xlu0 %504 }
 0x2c2   : > { %776 = vmatmul.msk.bf16.vlgmr.msra.gmra.mxu2 %vm358_vm1, %v559_v10  ;;  %v510_v12 = vsel %vm395_vm2, %v505_v11, 0 }
 0x2c3   : > { %519 = vmatpush.bf16.msrb.mxu1 %v510_v12 }
 0x2c6   : > { %774 = vmatmul.msk.bf16.vlgmr.msrb.gmra.mxu1 %vm358_vm1, %v503_v13 }
 0x317   : > { %v408_v14 = vpop.f32.mrf.mxu2 }
 0x31f   : > { %v410_v15 = vpop.f32.mrf.mxu2 }
 0x335   : > { %v465_v16 = vpop.f32.mrf.mxu2 }
 0x336   : > { %582 = vrot.lane.b32.xlu1 %v465_v16, %s953_s12 }
 0x33d   : > { %v467_v17 = vpop.f32.mrf.mxu2 }
 0x343   : > { %v521_v18 = vpop.f32.mrf.mxu1 }
 0x344   : > { %586 = vrot.lane.b32.xlu2 %v521_v18, %s954_s13 }
 0x345   : > { %v577_v19 = vpop.f32.mrf.mxu2 }
 0x346   : > { %590 = vrot.lane.b32.xlu1 %v577_v19, %s955_s14 }
 0x34b   : > { %v523_v20 = vpop.f32.mrf.mxu1 }
 0x34d   : > { %v579_v21 = vpop.f32.mrf.mxu2 }
 0x39e   : > { %v587_v26 = vpop.permute.xlu2 %586 }
 0x3a8   : > { %v583_v24 = vpop.permute.xlu1 %582 }
 0x3a9   : > { %v593_v25 = vsel %vm358_vm1, %v408_v14, %v583_v24 }
 0x3aa   : > { %v595_v28 = vsel %vm594_vm3, %v593_v25, %v587_v26 }
 0x3b8   : > { %v591_v27 = vpop.permute.xlu1 %590 }
 0x3b9   : > { %v597_v29 = vsel %vm596_vm4, %v595_v28, %v591_v27 }
 0x3ba   : > { %v598_v30 = vpack.c.bf16 %v597_v29, %v597_v29 }
 0x3bc   : > { %785 = vmatmul.msk.bf16.vlgmr.msra.gmra.mxu0 %vm330_vm0, %v598_v30 }
 0x439   : > { %v626_v33 = vpop.f32.mrf.mxu0 }
 0x43a   : > { %v627_v34 = vadd.f32 %v839_v31, %v626_v33 }
 0x43c   : > { %v631_v35 = vadd.f32 %v630_v32, %v627_v34 }
 0x43e   : > { %v634_v36 = vsel %vm330_vm0, %v631_v35, 0.0 }
 0x43f   : > { %635 = vadd.xlane.f32.xlu2 %v634_v36 }
 0x441   : > { %v628_v37 = vpop.f32.mrf.mxu0 }
 0x4b2   : > { %v636_v45 = vpop.xlane.xlu2 %635 }
 0x4b3   : > { %v644_v46 = vmul.f32 %v643_v44, %v636_v45 }
 0x4b5   : > { %v645_v47 = vsub.f32 %v631_v35, %v644_v46 }
 0x4b7   : > { %v646_v2 = vmul.f32 %v645_v47, %v645_v47 }
 0x4b9   : > { %v647_v48 = vsel %vm330_vm0, %v646_v2, 0.0 }
 0x4ba   : > { %648 = vadd.xlane.f32.xlu1 %v647_v48 }
 0x52d   : > { %v649_v49 = vpop.xlane.xlu1 %648 }
 0x52e   : > { %v650_v50 = vmul.f32 %v649_v49, %v643_v44 }
 0x530   : > { %v651_v51 = vadd.f32 1e-05, %v650_v50 }
 0x532   : > { %860 = vrsqrt.f32 %v651_v51  ;;  %vm658_vm7 = vweird.f32 %v651_v51 }
 0x538   : > { %v861_v52 = vpop.eup %860 }
 0x539   : > { %v653_v53 = vmul.f32 %v861_v52, %v651_v51  ;;  %vm659_vm6 = vweird.f32 %v861_v52 }
 0x53a   : > { %vm660_vm8 = vmor %vm658_vm7, %vm659_vm6 }
 0x53b   : > { %v654_v54 = vmul.f32 %v861_v52, %v653_v53 }
 0x53d   : > { %v655_v55 = vmul.f32 0.5, %v654_v54 }
 0x53f   : > { %v656_v56 = vsub.f32 1.5, %v655_v55 }
 0x541   : > { %v657_v57 = vmul.f32 %v861_v52, %v656_v56 }
 0x543   : > { %v661_v59 = vsel %vm660_vm8, %v861_v52, %v657_v57 }
 0x544   : > { %v662_v61 = vmul.f32 %v661_v59, %v645_v47 }
 0x546   : > { %v666_v62 = vmul.f32 %v840_v58, %v662_v61 }
 0x548   : > { %v670_v63 = vadd.f32 %v841_v60, %v666_v62 }
 0x54a   : > { %v671_v0 = vpack.c.bf16 %v670_v63, %v670_v63 }
 0x54c   : > { %673 = vst.msk [vmem:[%s307_s25] sm:$0xf] %vm672_vm9, %v671_v0 }
 0x54d PF: > { %s19_s24 = sadd.s32 1, %s936_s24  }
 0x54e   : > { %p16_p7 = scmp.ge.s32.totalorder %s19_s24, 4  }
 0x550   :  { %18 = sbr.rel (!%p16_p7) target bundleno = 2 (0x2), region = 87 }
 0x555   :  { %693 = vsyncpa [#allocation3], 1 }
 0x556   :  { %695 = vsyncpa [#allocation3 + $0x1], 1 }
 0x557   :  { %696 = vsyncpa [#allocation5], 1 }

// kernel: _lambda_.20
= control target key start
LH: loop header
LB: loop body
LE: loop exit
PB: predicated region body
PF: predicated region fallthrough
CT: control target
= control target key end

     0   :  { %8 = vsyncpa [#allocation3], 0  ;;  %s132_s15 = smov [#allocation2]   ;;  %s133_s17 = smov 64   ;;  %s170_s0 = inlined_call_operand.vmem [shape: bf16[16,32], index: 0, kind: input, shape index: {}]   ;;  %s171_s1 = inlined_call_operand.hbm [shape: bf16[32,32], index: 1, kind: input, shape index: {}]   ;;  %s172_s2 = inlined_call_operand.vmem [shape: f32[1,32], index: 2, kind: input, shape index: {}]   ;;  %s173_s3 = inlined_call_operand.vmem [shape: bf16[16,32], index: 3, kind: output, shape index: {}]  }
   0x1   :  { %s15_s14 = sshll.u32 %s171_s1, 4  ;;  %s17_s16 = sshll.u32 %s132_s15, 4  ;;  %s16_s14 = int_to_ptr.hbm [resolvable:$true] %s15_s14  ;;  %s18_s16 = int_to_ptr.vmem [resolvable:$true] %s17_s16 }
   0x2   :  { %s134_s18 = smov 4  }
   0x3   :  { %23 = dma.hbm_to_vmem [thread:$0]  %s16_s14, 256, %s18_s16, [#allocation3], %s133_s17, %s133_s17, %s134_s18  }
   0x4   :  { %130 = dma.done.wait [#allocation3], 256  }
   0x5   :  { %131 = vsyncadd [#allocation3], 4294967040  ;;  %v101_v0 = vld [vmem:[#allocation2 + $0x8] sm:$0xff]  ;;  %v100_v1 = vld [vmem:[#allocation2] sm:$0xff]  ;;  %vm58_vm0 = vcmask 261120   ;;  %vm78_vm1 = vcmask 257024  }
   0x6   :  { %68 = vmatpush.bf16.msra.mxu0 %v101_v0  ;;  %v99_v2 = vld [vmem:[%s170_s0] sm:$0xff] }
   0x7   :  { %v105_v3 = vld [vmem:[%s172_s2] ss:$0 sm:$0xff] }
   0xa   :  { %69 = vmatpush.bf16.msra.mxu0 %v100_v1 }
   0xd   :  { %98 = vmatmul.msk.bf16.vlgmr.msra.gmra.mxu0 %vm58_vm0, %v99_v2 }
  0x8a   :  { %v71_v4 = vpop.f32.mrf.mxu0 }
  0x8b   :  { %v72_v5 = vadd.f32 %v105_v3, %v71_v4 }
  0x8d   :  { %v76_v6 = vpack.c.bf16 %v72_v5, %v72_v5 }
  0x8f   :  { %79 = vst.msk [vmem:[%s173_s3] sm:$0xf] %vm78_vm1, %v76_v6 }
  0x92   :  { %v73_v7 = vpop.f32.mrf.mxu0 }
  0x93   :  { %v74_v8 = vadd.f32 %v105_v3, %v73_v7 }
  0x95   :  { %v77_v9 = vpack.c.bf16 %v74_v8, %v74_v8 }
  0x97   :  { %80 = vst.msk [vmem:[%s173_s3 + $0x4] sm:$0xf] %vm78_vm1, %v77_v9 }
  0x98   :  { %85 = vsyncpa [#allocation3], 1 }

// kernel: _lambda_.17
= control target key start
LH: loop header
LB: loop body
LE: loop exit
PB: predicated region body
PF: predicated region fallthrough
CT: control target
= control target key end

     0   :  { %11 = vsyncpa [#allocation3], 0  ;;  %s1042_s0 = inlined_call_operand.vmem [shape: bf16[8,32], index: 0, kind: input, shape index: {}]   ;;  %s1043_s1 = inlined_call_operand.vmem [shape: bf16[2,16,32], index: 1, kind: input, shape index: {}]   ;;  %s1044_s2 = inlined_call_operand.hbm [shape: bf16[32,96], index: 2, kind: input, shape index: {}]   ;;  %s1045_s3 = inlined_call_operand.vmem [shape: f32[1,96], index: 3, kind: input, shape index: {}]   ;;  %s1046_s4 = inlined_call_operand.hbm [shape: bf16[32,32], index: 4, kind: input, shape index: {}]   ;;  %s1047_s5 = inlined_call_operand.vmem [shape: f32[1,32], index: 5, kind: input, shape index: {}]   ;;  %s1048_s6 = inlined_call_operand.vmem [shape: bf16[2,8,32], index: 6, kind: output, shape index: {}]  }
   0x1   :  { %12 = vsyncpa [#allocation5], 0  ;;  %s941_s21 = smov 0  }
   0x2 LB: > { %s194_s24 = sshll.u32 %s1044_s2, 4  ;;  %s950_s25 = sadd.s32 4294967295, %s890_s21   ;;  %s890_s21 = sphi %s941_s21, %s18_s21   ;;  %s195_s24 = int_to_ptr.hbm [resolvable:$true] %s194_s24 }
   0x3   : > { %p708_p0 = scmp.ge.s32.totalorder %s890_s21, 1  ;;  %p180_p1 = scmp.lt.s32.totalorder %s890_s21, 3 }
   0x4   : > { %p772_p2 = scmp.eq.s32.totalorder %s950_s25, 0  ;;  %s892_s27 = smov [#allocation2]  }
   0x5   : > { %p955_p3 = pnand %p708_p0, %p180_p1  ;;  %s196_s28 = sshll.u32 %s892_s27, 4  ;;  %s197_s28 = int_to_ptr.vmem [resolvable:$true] %s196_s28 }
   0x6   : > { %s211_s7 = sshll.u32 %s1046_s4, 4  ;;  %s893_s8 = smov [#allocation4]   ;;  %s212_s7 = int_to_ptr.hbm [resolvable:$true] %s211_s7 }
   0x7   : > { %p765_p4 = pneg %p955_p3  ;;  %s213_s9 = sshll.u32 %s893_s8, 4  ;;  %s214_s9 = int_to_ptr.vmem [resolvable:$true] %s213_s9 }
   0x8   : > { %s894_s10 = smov 64   ;;  %s895_s11 = smov 4  }
   0x9   : > { %p766_p5 = pnand %p772_p2, %p765_p4  ;;  %240 = sbr.rel (%p955_p3) target bundleno = 1490 (0x5d2), region = 44 }
   0xb   : > { %768 = dma.hbm_to_vmem [thread:$0]  (!%p766_p5), %s195_s24, 256, %s197_s28, [#allocation3], %s894_s10, %s894_s10, %s895_s11  }
   0xc   : > { %771 = dma.hbm_to_vmem [thread:$0]  (!%p766_p5), %s212_s7, 256, %s214_s9, [#allocation5], %s894_s10, %s894_s10, %s895_s11  }
   0xe   : > { %881 = dma.done.wait (%p772_p2), [#allocation3], 256  }
   0xf   : > { %883 = vsyncadd (%p772_p2), [#allocation3], 4294967040 }
  0x10   : > { %885 = dma.done.wait (%p772_p2), [#allocation5], 256  }
  0x11   : > { %887 = vsyncadd (%p772_p2), [#allocation5], 4294967040  ;;  %v754_v0 = vld [vmem:[#allocation2 + $0x8] sm:$0xff]  ;;  %s896_s12 = smov 96   ;;  %v753_v1 = vld [vmem:[#allocation2] sm:$0xff]  ;;  %vm308_vm0 = vcmask 261120  }
  0x12   : > { %333 = vrot.lane.b32.xlu0 %v754_v0, %s896_s12  ;;  %318 = vmatpush.bf16.msra.mxu0 %v754_v0  ;;  %v285_v2 = vld [vmem:[%s1042_s0] sm:$0xf]  ;;  %p275_p6 = scmp.lt.s32.totalorder %s950_s25, 1  ;;  %vm364_vm1 = vcmask 64512   ;;  %s897_s22 = smov 120   ;;  %vm384_vm2 = vcmask 130048  }
  0x13   : > { %v798_v3 = vld [vmem:[%s1045_s3] ss:$0 sm:$0xff]  ;;  %s898_s23 = smov 112   ;;  %s899_s24 = smov 104   ;;  %vm594_vm3 = vcmask 195584   ;;  %vm629_vm4 = vcmask 257024  }
  0x14   : > { %337 = vrot.lane.b32.xlu1 %v798_v3, %s896_s12  ;;  %s1051_s25 = smov (!%p275_p6, %s950_s25), 1  ;;  %s900_s26 = smov 72  }
  0x15   : > { %s751_s17 = sshll.u32 %s1051_s25, 3  ;;  %s901_s27 = smov 88  }
  0x16   : > { %319 = vmatpush.bf16.msra.mxu0 %v753_v1  ;;  %s279_s20 = scalar_lea.vmem %s1043_s1, %s751_s17  ;;  %s902_s28 = smov 80  }
  0x17   : > { %v752_v6 = vld [vmem:[%s279_s20] sm:$0xff]  ;;  %s903_s29 = smov 8   ;;  %s904_s30 = smov 16  }
  0x18   : > { %s905_s7 = smov 24   ;;  %s717_s10 = sshll.u32 %s1051_s25, 2 }
  0x19   : > { %726 = vmatmul.msk.bf16.vlgmr.msra.gmra.mxu0 %vm308_vm0, %v285_v2  ;;  %s283_s13 = scalar_lea.vmem %s1048_s6, %s717_s10 }
  0x1a   : > { %331 = vrot.lane.b32.xlu0 %v753_v1, %s896_s12 }
  0x84   : > { %v334_v4 = vpop.permute.xlu0 %333 }
  0x85   : > { %349 = vmatpush.bf16.msra.mxu1 %v334_v4 }
  0x86   : > { %v338_v10 = vpop.permute.xlu1 %337 }
  0x8c   : > { %v332_v5 = vpop.permute.xlu0 %331 }
  0x8d   : > { %350 = vmatpush.bf16.msra.mxu1 %v332_v5 }
  0x90   : > { %731 = vmatmul.msk.bf16.vlgmr.msra.gmra.mxu1 %vm308_vm0, %v752_v6 }
  0x96   : > { %v321_v7 = vpop.f32.mrf.mxu0 }
  0x97   : > { %v322_v13 = vadd.f32 %v798_v3, %v321_v7 }
  0x99   : > { %v325_v16 = vmul.f32 0.35355338, %v322_v13 }
  0x9b   : > { %v362_v18 = vpack.c.bf16 %v325_v16, %v325_v16 }
  0x9e   : > { %v323_v8 = vpop.f32.mrf.mxu0 }
 0x10d   : > { %v352_v9 = vpop.f32.mrf.mxu1 }
 0x10e   : > { %v353_v12 = vadd.f32 %v352_v9, %v338_v10 }
 0x115   : > { %v354_v11 = vpop.f32.mrf.mxu1 }
 0x116   : > { %v355_v14 = vadd.f32 %v354_v11, %v338_v10 }
 0x118   : > { %v995_v15 = vpack.c.bf16 %v355_v14, %v353_v12 }
 0x11a   : > { %420 = vrot.lane.b32.xlu0 %v995_v15, %s897_s22  ;;  %398 = vrot.lane.b32.xlu2 %v995_v15, %s896_s12  ;;  %v369_v17 = vsel %vm364_vm1, %v995_v15, 0 }
 0x11b   : > { %378 = vmatpush.bf16.xpose.msra.mxu2 %v369_v17 }
 0x122   : > { %418 = vrot.lane.b32.xlu0 %v362_v18, %s897_s22  ;;  %732 = vmatmul.msk.bf16.vlgmr.msra.gmra.mxu2 %vm364_vm1, %v362_v18 }
 0x12a   : > { %474 = vrot.lane.b32.xlu0 %v995_v15, %s898_s23 }
 0x132   : > { %472 = vrot.lane.b32.xlu0 %v362_v18, %s898_s23 }
 0x174   : > { %v399_v19 = vpop.permute.xlu2 %398 }
 0x175   : > { %411 = vmatpush.bf16.msra.mxu3 %v399_v19 }
 0x18c   : > { %v421_v20 = vpop.permute.xlu0 %420 }
 0x18d   : > { %v426_v21 = vsel %vm364_vm1, %v421_v20, 0 }
 0x18e   : > { %435 = vmatpush.bf16.xpose.msrb.mxu3 %v426_v21 }
 0x194   : > { %v419_v22 = vpop.permute.xlu0 %418 }
 0x19c   : > { %v475_v23 = vpop.permute.xlu0 %474 }
 0x19d   : > { %v480_v24 = vsel %vm364_vm1, %v475_v23, 0 }
 0x19e   : > { %489 = vmatpush.bf16.xpose.msrb.mxu1 %v480_v24  ;;  %v756_v24 = vld [vmem:[#allocation4 + $0x8] sm:$0xff] }
 0x1a4   : > { %v473_v25 = vpop.permute.xlu0 %472 }
 0x1a5   : > { %v380_v26 = vpop.f32.mrf.mxu2  ;;  %736 = vmatmul.msk.bf16.vlgmr.msrb.gmra.mxu1 %vm364_vm1, %v473_v25  ;;  %v755_v25 = vld [vmem:[#allocation4] sm:$0xff] }
 0x1a6   : > { %v385_v27 = vsel %vm384_vm2, %v380_v26, -inf  ;;  %621 = vmatpush.bf16.msra.mxu1 %v756_v24 }
 0x1a7   : > { %386 = vmax.xlane.f32.xlu1 %v385_v27 }
 0x1aa   : > { %622 = vmatpush.bf16.msra.mxu1 %v755_v25 }
 0x1ad   : > { %v382_v28 = vpop.f32.mrf.mxu2 }
 0x21a   : > { %v387_v29 = vpop.xlane.xlu1 %386 }
 0x21b   : > { %v388_v30 = vsub.f32 %v380_v26, %v387_v29 }
 0x21d   : > { %v389_v31 = vmul.f32 1.442695, %v388_v30 }
 0x21f   : > { %800 = vpow2.f32 %v389_v31 }
 0x222   : > { %v491_v32 = vpop.f32.mrf.mxu1 }
 0x223   : > { %v495_v36 = vsel %vm384_vm2, %v491_v32, -inf }
 0x225   : > { %v801_v33 = vpop.eup %800 }
 0x226   : > { %v391_v34 = vsel %vm384_vm2, %v801_v33, 0.0 }
 0x227   : > { %392 = vadd.xlane.f32.xlu2 %v391_v34 }
 0x22a   : > { %v493_v35 = vpop.f32.mrf.mxu1 }
 0x23f   : > { %528 = vrot.lane.b32.xlu2 %v995_v15, %s899_s24 }
 0x247   : > { %526 = vrot.lane.b32.xlu2 %v362_v18, %s899_s24 }
 0x270   : > { %496 = vmax.xlane.f32.xlu2 %v495_v36 }
 0x29a   : > { %v393_v37 = vpop.xlane.xlu2 %392 }
 0x29b   : > { %802 = vrcp.f32 %v393_v37 }
 0x2a1   : > { %v803_v38 = vpop.eup %802 }
 0x2a2   : > { %v395_v39 = vmul.f32 %v803_v38, %v801_v33  ;;  %v529_v40 = vpop.permute.xlu2 %528  ;;  %v799_v33 = vld [vmem:[%s1047_s5] ss:$0 sm:$0xff] }
 0x2a3   : > { %v534_v42 = vsel %vm364_vm1, %v529_v40, 0 }
 0x2a4   : > { %v396_v41 = vpack.c.bf16 %v395_v39, %v395_v39 }
 0x2a6   : > { %733 = vmatmul.msk.bf16.vlgmr.msra.gmra.mxu3 %vm384_vm2, %v396_v41 }
 0x2a7   : > { %543 = vmatpush.bf16.xpose.msra.mxu3 %v534_v42 }
 0x2aa   : > { %v527_v43 = vpop.permute.xlu2 %526 }
 0x2b6   : > { %734 = vmatmul.msk.bf16.vlgmr.msrb.gmra.mxu3 %vm364_vm1, %v419_v22 }
 0x2c6   : > { %738 = vmatmul.msk.bf16.vlgmr.msra.gmra.mxu3 %vm364_vm1, %v527_v43 }
 0x2e3   : > { %v497_v44 = vpop.xlane.xlu2 %496 }
 0x2e4   : > { %v498_v45 = vsub.f32 %v491_v32, %v497_v44 }
 0x2e6   : > { %v499_v46 = vmul.f32 1.442695, %v498_v45 }
 0x2e8   : > { %804 = vpow2.f32 %v499_v46 }
 0x2ee   : > { %v805_v47 = vpop.eup %804 }
 0x2ef   : > { %v501_v48 = vsel %vm384_vm2, %v805_v47, 0.0 }
 0x2f0   : > { %502 = vadd.xlane.f32.xlu2 %v501_v48 }
 0x308   : > { %561 = vrot.lane.b32.xlu2 %v995_v15, %s900_s26 }
 0x329   : > { %v1017_v49 = vpop.f32.mrf.mxu3 }
 0x331   : > { %v415_v50 = vpop.f32.mrf.mxu3 }
 0x339   : > { %v437_v51 = vpop.f32.mrf.mxu3 }
 0x33a   : > { %v441_v52 = vsel %vm384_vm2, %v437_v51, -inf }
 0x33b   : > { %442 = vmax.xlane.f32.xlu0 %v441_v52 }
 0x341   : > { %v439_v53 = vpop.f32.mrf.mxu3 }
 0x349   : > { %v545_v54 = vpop.f32.mrf.mxu3 }
 0x34a   : > { %v549_v55 = vsel %vm384_vm2, %v545_v54, -inf }
 0x34b   : > { %550 = vmax.xlane.f32.xlu1 %v549_v55 }
 0x351   : > { %v547_v56 = vpop.f32.mrf.mxu3 }
 0x363   : > { %v503_v3 = vpop.xlane.xlu2 %502 }
 0x364   : > { %453 = vrot.lane.b32.xlu1 %v995_v15, %s901_s27 }
 0x36b   : > { %v562_v5 = vpop.permute.xlu2 %561 }
 0x3ae   : > { %v443_v57 = vpop.xlane.xlu0 %442 }
 0x3af   : > { %v444_v58 = vsub.f32 %v437_v51, %v443_v57 }
 0x3b1   : > { %v445_v59 = vmul.f32 1.442695, %v444_v58 }
 0x3b3   : > { %806 = vpow2.f32 %v445_v59 }
 0x3b9   : > { %v807_v60 = vpop.eup %806 }
 0x3ba   : > { %v447_v61 = vsel %vm384_vm2, %v807_v60, 0.0 }
 0x3bb   : > { %448 = vadd.xlane.f32.xlu1 %v447_v61 }
 0x3be   : > { %v551_v62 = vpop.xlane.xlu1 %550 }
 0x3bf   : > { %v552_v63 = vsub.f32 %v545_v54, %v551_v62 }
 0x3c1   : > { %v553_v0 = vmul.f32 1.442695, %v552_v63 }
 0x3c3   : > { %808 = vpow2.f32 %v553_v0 }
 0x3c9   : > { %v809_v1 = vpop.eup %808 }
 0x3ca   : > { %v555_v2 = vsel %vm384_vm2, %v809_v1, 0.0 }
 0x3cb   : > { %556 = vadd.xlane.f32.xlu0 %v555_v2 }
 0x3d4   : > { %507 = vrot.lane.b32.xlu1 %v995_v15, %s902_s28 }
 0x3d6   : > { %v454_v4 = vpop.permute.xlu1 %453 }
 0x3d7   : > { %466 = vmatpush.bf16.msrb.mxu0 %v454_v4 }
 0x3db   : > { %574 = vmatpush.bf16.msra.mxu0 %v562_v5 }
 0x42e   : > { %v449_v6 = vpop.xlane.xlu1 %448 }
 0x42f   : > { %810 = vrcp.f32 %v449_v6 }
 0x430   : > { %812 = vrcp.f32 %v503_v3 }
 0x435   : > { %v811_v7 = vpop.eup %810 }
 0x436   : > { %v451_v8 = vmul.f32 %v811_v7, %v807_v60  ;;  %v813_v11 = vpop.eup %812 }
 0x437   : > { %v505_v12 = vmul.f32 %v813_v11, %v805_v47 }
 0x438   : > { %v452_v9 = vpack.c.bf16 %v451_v8, %v451_v8 }
 0x439   : > { %v506_v17 = vpack.c.bf16 %v505_v12, %v505_v12 }
 0x43a   : > { %735 = vmatmul.msk.bf16.vlgmr.msrb.gmra.mxu0 %vm384_vm2, %v452_v9 }
 0x43e   : > { %v557_v10 = vpop.xlane.xlu0 %556 }
 0x43f   : > { %814 = vrcp.f32 %v557_v10 }
 0x445   : > { %v815_v13 = vpop.eup %814 }
 0x446   : > { %v559_v14 = vmul.f32 %v815_v13, %v809_v1  ;;  %v508_v16 = vpop.permute.xlu1 %507 }
 0x447   : > { %520 = vmatpush.bf16.msrb.mxu2 %v508_v16 }
 0x448   : > { %v560_v15 = vpack.c.bf16 %v559_v14, %v559_v14 }
 0x44a   : > { %737 = vmatmul.msk.bf16.vlgmr.msrb.gmra.mxu2 %vm384_vm2, %v506_v17  ;;  %739 = vmatmul.msk.bf16.vlgmr.msra.gmra.mxu0 %vm384_vm2, %v560_v15 }
 0x4b7   : > { %v468_v18 = vpop.f32.mrf.mxu0 }
 0x4b8   : > { %581 = vrot.lane.b32.xlu0 %v468_v18, %s903_s29 }
 0x4bf   : > { %v470_v19 = vpop.f32.mrf.mxu0 }
 0x4c7   : > { %v576_v20 = vpop.f32.mrf.mxu0 }
 0x4cd   : > { %v522_v21 = vpop.f32.mrf.mxu2 }
 0x4ce   : > { %585 = vrot.lane.b32.xlu1 %v522_v21, %s904_s30 }
 0x4cf   : > { %v578_v22 = vpop.f32.mrf.mxu0 }
 0x4d5   : > { %v524_v23 = vpop.f32.mrf.mxu2 }
 0x4d6   : > { %589 = vrot.lane.b32.xlu1 %v576_v20, %s905_s7 }
 0x52a   : > { %v582_v27 = vpop.permute.xlu0 %581 }
 0x52b   : > { %v592_v28 = vsel %vm364_vm1, %v1017_v49, %v582_v27 }
 0x540   : > { %v586_v26 = vpop.permute.xlu1 %585 }
 0x541   : > { %v593_v29 = vsel %vm384_vm2, %v592_v28, %v586_v26 }
 0x548   : > { %v590_v30 = vpop.permute.xlu1 %589 }
 0x549   : > { %v595_v31 = vsel %vm594_vm3, %v593_v29, %v590_v30 }
 0x54a   : > { %v596_v32 = vpack.c.bf16 %v595_v31, %v595_v31 }
 0x54c   : > { %748 = vmatmul.msk.bf16.vlgmr.msra.gmra.mxu1 %vm308_vm0, %v596_v32 }
 0x5c9   : > { %v624_v34 = vpop.f32.mrf.mxu1 }
 0x5ca   : > { %v625_v35 = vadd.f32 %v799_v33, %v624_v34 }
 0x5cc   : > { %v628_v36 = vpack.c.bf16 %v625_v35, %v625_v35 }
 0x5ce   : > { %630 = vst.msk [vmem:[%s283_s13] sm:$0xf] %vm629_vm4, %v628_v36 }
 0x5d1   : > { %v626_v37 = vpop.f32.mrf.mxu1 }
 0x5d2 PF: > { %s18_s21 = sadd.s32 1, %s890_s21  }
 0x5d3   : > { %p15_p7 = scmp.ge.s32.totalorder %s18_s21, 4  }
 0x5d5   :  { %17 = sbr.rel (!%p15_p7) target bundleno = 2 (0x2), region = 83 }
 0x5da   :  { %650 = vsyncpa [#allocation3], 1 }
 0x5db   :  { %652 = vsyncpa [#allocation3 + $0x1], 1 }
 0x5dc   :  { %653 = vsyncpa [#allocation5], 1 }

// kernel: _lambda_.21
= control target key start
LH: loop header
LB: loop body
LE: loop exit
PB: predicated region body
PF: predicated region fallthrough
CT: control target
= control target key end

     0   :  { %10 = vsyncpa [#allocation3], 0  ;;  %s586_s0 = inlined_call_operand.vmem [shape: bf16[2,8,32], index: 0, kind: input, shape index: {}]   ;;  %s587_s1 = inlined_call_operand.hbm [shape: bf16[8,32], index: 1, kind: input, shape index: {}]   ;;  %s588_s2 = inlined_call_operand.hbm [shape: bf16[1,32], index: 2, kind: input, shape index: {}]   ;;  %s589_s3 = inlined_call_operand.vmem [shape: f32[1,32], index: 3, kind: input, shape index: {}]   ;;  %s590_s4 = inlined_call_operand.vmem [shape: f32[1,32], index: 4, kind: input, shape index: {}]   ;;  %s591_s5 = inlined_call_operand.vmem [shape: bf16[2,8,32], index: 5, kind: output, shape index: {}]  }
   0x1   :  { %11 = vsyncpa [#allocation5], 0  ;;  %s535_s18 = smov 0  }
   0x2 LB: > { %s170_s21 = sshll.u32 %s587_s1, 4  ;;  %s377_s22 = sadd.s32 4294967295, %s500_s18   ;;  %s500_s18 = sphi %s535_s18, %s17_s18   ;;  %s171_s21 = int_to_ptr.hbm [resolvable:$true] %s170_s21 }
   0x3   : > { %p379_p0 = scmp.ge.s32.totalorder %s500_s18, 1  ;;  %p158_p1 = scmp.lt.s32.totalorder %s500_s18, 3 }
   0x4   : > { %p405_p2 = scmp.eq.s32.totalorder %s377_s22, 0  ;;  %s502_s24 = smov [#allocation2]  }
   0x5   : > { %p546_p3 = pnand %p379_p0, %p158_p1  ;;  %s172_s25 = sshll.u32 %s502_s24, 4  ;;  %s173_s25 = int_to_ptr.vmem [resolvable:$true] %s172_s25 }
   0x6   : > { %s182_s28 = sshll.u32 %s588_s2, 4  ;;  %s503_s29 = smov [#allocation4]   ;;  %s183_s28 = int_to_ptr.hbm [resolvable:$true] %s182_s28 }
   0x7   : > { %p398_p4 = pneg %p546_p3  ;;  %s184_s30 = sshll.u32 %s503_s29, 4  ;;  %s185_s30 = int_to_ptr.vmem [resolvable:$true] %s184_s30 }
   0x8   : > { %210 = sbr.rel (%p546_p3) target bundleno = 299 (0x12b), region = 40 }
   0x9   : > { %p399_p5 = pnand %p405_p2, %p398_p4 }
   0xb   : > { %401 = dma.hbm_to_vmem [thread:$0]  (!%p399_p5), %s171_s21, 64, %s173_s25, [#allocation3]  }
   0xc   : > { %404 = dma.hbm_to_vmem [thread:$0]  (!%p399_p5), %s183_s28, 16, %s185_s30, [#allocation5]  }
   0xd   : > { %491 = dma.done.wait (%p405_p2), [#allocation3], 64  }
   0xe   : > { %493 = vsyncadd (%p405_p2), [#allocation3], 4294967232 }
   0xf   : > { %495 = dma.done.wait (%p405_p2), [#allocation5], 16  }
  0x10   : > { %497 = vsyncadd (%p405_p2), [#allocation5], 4294967280  ;;  %p242_p6 = scmp.lt.s32.totalorder %s377_s22, 1  ;;  %v252_v1 = vld [vmem:[#allocation2] sm:$0xf]  ;;  %vm261_vm0 = vcmask 261120  }
  0x11   : > { %v255_v2 = vld [vmem:[#allocation4] sm:$0x1]  ;;  %v253_v4 = vunpack.c.l.bf16 %v252_v1  ;;  %v504_v10 = vmov 32.0   ;;  %v420_v31 = vld [vmem:[%s589_s3] ss:$0 sm:$0xff]  ;;  %vm300_vm5 = vcmask 257024  }
  0x12   : > { %s594_s22 = smov (!%p242_p6, %s377_s22), 1  ;;  %v256_v5 = vunpack.c.l.bf16 %v255_v2  ;;  %422 = vrcp.f32 %v504_v10  ;;  %v421_v33 = vld [vmem:[%s590_s4] ss:$0 sm:$0xff] }
  0x13   : > { %s386_s6 = sshll.u32 %s594_s22, 2 }
  0x14   : > { %s245_s9 = scalar_lea.vmem %s586_s0, %s386_s6  ;;  %v257_v7 = vperm.slane %v256_v5, 0  ;;  %s249_s16 = scalar_lea.vmem %s591_s5, %s386_s6 }
  0x15   : > { %v250_v0 = vld [vmem:[%s245_s9] sm:$0xf] }
  0x16   : > { %v251_v3 = vunpack.c.l.bf16 %v250_v0 }
  0x18   : > { %v254_v6 = vadd.f32 %v253_v4, %v251_v3  ;;  %v423_v11 = vpop.eup %422 }
  0x19   : > { %v266_v12 = vmul.f32 32.0, %v423_v11  ;;  %vm270_vm1 = vweird.f32 %v423_v11 }
  0x1a   : > { %v258_v8 = vadd.f32 %v257_v7, %v254_v6 }
  0x1b   : > { %v267_v13 = vsub.f32 1.0, %v266_v12 }
  0x1c   : > { %v262_v9 = vsel %vm261_vm0, %v258_v8, 0.0 }
  0x1d   : > { %263 = vadd.xlane.f32.xlu0 %v262_v9  ;;  %v268_v14 = vmul.f32 %v423_v11, %v267_v13 }
  0x1f   : > { %v269_v15 = vadd.f32 %v423_v11, %v268_v14 }
  0x21   : > { %v271_v16 = vsel %vm270_vm1, %v423_v11, %v269_v15 }
  0x90   : > { %v264_v17 = vpop.xlane.xlu0 %263 }
  0x91   : > { %v272_v18 = vmul.f32 %v271_v16, %v264_v17 }
  0x93   : > { %v273_v19 = vsub.f32 %v258_v8, %v272_v18 }
  0x95   : > { %v274_v20 = vmul.f32 %v273_v19, %v273_v19 }
  0x97   : > { %v275_v21 = vsel %vm261_vm0, %v274_v20, 0.0 }
  0x98   : > { %276 = vadd.xlane.f32.xlu0 %v275_v21 }
 0x10b   : > { %v277_v22 = vpop.xlane.xlu0 %276 }
 0x10c   : > { %v278_v23 = vmul.f32 %v277_v22, %v271_v16 }
 0x10e   : > { %v279_v24 = vadd.f32 1e-12, %v278_v23 }
 0x110   : > { %424 = vrsqrt.f32 %v279_v24  ;;  %vm286_vm3 = vweird.f32 %v279_v24 }
 0x116   : > { %v425_v25 = vpop.eup %424 }
 0x117   : > { %v281_v26 = vmul.f32 %v425_v25, %v279_v24  ;;  %vm287_vm2 = vweird.f32 %v425_v25 }
 0x118   : > { %vm288_vm4 = vmor %vm286_vm3, %vm287_vm2 }
 0x119   : > { %v282_v27 = vmul.f32 %v425_v25, %v281_v26 }
 0x11b   : > { %v283_v28 = vmul.f32 0.5, %v282_v27 }
 0x11d   : > { %v284_v29 = vsub.f32 1.5, %v283_v28 }
 0x11f   : > { %v285_v30 = vmul.f32 %v425_v25, %v284_v29 }
 0x121   : > { %v289_v32 = vsel %vm288_vm4, %v425_v25, %v285_v30 }
 0x122   : > { %v290_v34 = vmul.f32 %v289_v32, %v273_v19 }
 0x124   : > { %v294_v35 = vmul.f32 %v420_v31, %v290_v34 }
 0x126   : > { %v298_v36 = vadd.f32 %v421_v33, %v294_v35 }
 0x128   : > { %v299_v37 = vpack.c.bf16 %v298_v36, %v298_v36 }
 0x12a   : > { %301 = vst.msk [vmem:[%s249_s16] sm:$0xf] %vm300_vm5, %v299_v37 }
 0x12b PF: > { %s17_s18 = sadd.s32 1, %s500_s18  }
 0x12c   : > { %p14_p7 = scmp.ge.s32.totalorder %s17_s18, 4  }
 0x12e   :  { %16 = sbr.rel (!%p14_p7) target bundleno = 2 (0x2), region = 79 }
 0x133   :  { %321 = vsyncpa [#allocation3], 1 }
 0x134   :  { %323 = vsyncpa [#allocation3 + $0x1], 1 }
 0x135   :  { %324 = vsyncpa [#allocation5], 1 }

// kernel: _lambda_.24
= control target key start
LH: loop header
LB: loop body
LE: loop exit
PB: predicated region body
PF: predicated region fallthrough
CT: control target
= control target key end

     0   :  { %10 = vsyncpa [#allocation3], 0  ;;  %s232_s21 = smov [#allocation2]   ;;  %s233_s23 = smov 64   ;;  %s292_s0 = inlined_call_operand.vmem [shape: bf16[16,32], index: 0, kind: input, shape index: {}]   ;;  %s293_s1 = inlined_call_operand.hbm [shape: bf16[32,32], index: 1, kind: input, shape index: {}]   ;;  %s294_s2 = inlined_call_operand.vmem [shape: f32[1,32], index: 2, kind: input, shape index: {}, may-alias: {2,4}]   ;;  %s295_s3 = inlined_call_operand.vmem [shape: f32[1,32], index: 3, kind: input, shape index: {}]   ;;  %s296_s4 = inlined_call_operand.vmem [shape: f32[1,32], index: 4, kind: input, shape index: {}, may-alias: {2,4}]   ;;  %s297_s5 = inlined_call_operand.vmem [shape: bf16[16,32], index: 5, kind: output, shape index: {}]  }
   0x1   :  { %s17_s20 = sshll.u32 %s293_s1, 4  ;;  %s19_s22 = sshll.u32 %s232_s21, 4  ;;  %s18_s20 = int_to_ptr.hbm [resolvable:$true] %s17_s20  ;;  %s20_s22 = int_to_ptr.vmem [resolvable:$true] %s19_s22 }
   0x2   :  { %s234_s24 = smov 4  }
   0x3   :  { %25 = dma.hbm_to_vmem [thread:$0]  %s18_s20, 256, %s20_s22, [#allocation3], %s233_s23, %s233_s23, %s234_s24  }
   0x4   :  { %230 = dma.done.wait [#allocation3], 256  }
   0x5   :  { %231 = vsyncadd [#allocation3], 4294967040  ;;  %v188_v0 = vld [vmem:[#allocation2 + $0x8] sm:$0xff]  ;;  %v187_v1 = vld [vmem:[#allocation2] sm:$0xff]  ;;  %vm64_vm0 = vcmask 261120   ;;  %v235_v28 = vmov 32.0  }
   0x6   :  { %74 = vmatpush.bf16.msra.mxu0 %v188_v0  ;;  %v186_v2 = vld [vmem:[%s292_s0] sm:$0xff]  ;;  %vm165_vm6 = vcmask 257024  }
   0x7   :  { %v193_v3 = vld [vmem:[%s294_s2] ss:$0 sm:$0xff] }
   0x8   :  { %v194_v59 = vld [vmem:[%s295_s3] ss:$0 sm:$0xff] }
   0x9   :  { %v195_v62 = vld [vmem:[%s296_s4] ss:$0 sm:$0xff] }
   0xa   :  { %75 = vmatpush.bf16.msra.mxu0 %v187_v1 }
   0xd   :  { %185 = vmatmul.msk.bf16.vlgmr.msra.gmra.mxu0 %vm64_vm0, %v186_v2 }
  0x8a   :  { %v77_v4 = vpop.f32.mrf.mxu0 }
  0x8b   :  { %v78_v5 = vadd.f32 %v193_v3, %v77_v4 }
  0x8d   :  { %v82_v6 = vmul.f32 %v78_v5, %v78_v5 }
  0x8f   :  { %v84_v7 = vmul.f32 %v82_v6, %v78_v5 }
  0x91   :  { %v86_v8 = vmul.f32 0.044715, %v84_v7 }
  0x92   :  { %v79_v9 = vpop.f32.mrf.mxu0 }
  0x93   :  { %v80_v10 = vadd.f32 %v193_v3, %v79_v9  ;;  %v88_v11 = vadd.f32 %v86_v8, %v78_v5 }
  0x95   :  { %v83_v12 = vmul.f32 %v80_v10, %v80_v10  ;;  %v90_v13 = vmul.f32 0.7978846, %v88_v11 }
  0x97   :  { %v85_v14 = vmul.f32 %v83_v12, %v80_v10  ;;  %196 = vtanh.f32 %v90_v13 }
  0x99   :  { %v87_v15 = vmul.f32 0.044715, %v85_v14 }
  0x9b   :  { %v89_v16 = vadd.f32 %v87_v15, %v80_v10 }
  0x9d   :  { %v197_v17 = vpop.eup %196  ;;  %v91_v18 = vmul.f32 0.7978846, %v89_v16 }
  0x9e   :  { %v94_v19 = vadd.f32 1.0, %v197_v17 }
  0x9f   :  { %198 = vtanh.f32 %v91_v18 }
  0xa0   :  { %v96_v20 = vmul.f32 0.5, %v94_v19  ;;  %200 = vrcp.f32 %v235_v28 }
  0xa2   :  { %v98_v21 = vmul.f32 %v96_v20, %v78_v5 }
  0xa4   :  { %v102_v22 = vsel %vm64_vm0, %v98_v21, 0.0 }
  0xa5   :  { %v199_v23 = vpop.eup %198  ;;  %103 = vadd.xlane.f32.xlu0 %v102_v22 }
  0xa6   :  { %v95_v24 = vadd.f32 1.0, %v199_v23  ;;  %v201_v29 = vpop.eup %200 }
  0xa7   :  { %v109_v30 = vmul.f32 32.0, %v201_v29  ;;  %vm113_vm1 = vweird.f32 %v201_v29 }
  0xa8   :  { %v97_v25 = vmul.f32 0.5, %v95_v24 }
  0xa9   :  { %v110_v31 = vsub.f32 1.0, %v109_v30 }
  0xaa   :  { %v99_v26 = vmul.f32 %v97_v25, %v80_v10 }
  0xab   :  { %v111_v32 = vmul.f32 %v201_v29, %v110_v31 }
  0xac   :  { %v105_v27 = vsel %vm64_vm0, %v99_v26, 0.0 }
  0xad   :  { %106 = vadd.xlane.f32.xlu0 %v105_v27  ;;  %v112_v33 = vadd.f32 %v201_v29, %v111_v32 }
  0xaf   :  { %v114_v34 = vsel %vm113_vm1, %v201_v29, %v112_v33 }
 0x118   :  { %v104_v35 = vpop.xlane.xlu0 %103 }
 0x119   :  { %v115_v36 = vmul.f32 %v114_v34, %v104_v35 }
 0x11b   :  { %v117_v37 = vsub.f32 %v98_v21, %v115_v36 }
 0x11d   :  { %v119_v38 = vmul.f32 %v117_v37, %v117_v37 }
 0x11f   :  { %v121_v39 = vsel %vm64_vm0, %v119_v38, 0.0 }
 0x120   :  { %122 = vadd.xlane.f32.xlu1 %v121_v39  ;;  %v107_v40 = vpop.xlane.xlu0 %106 }
 0x121   :  { %v116_v41 = vmul.f32 %v114_v34, %v107_v40 }
 0x123   :  { %v118_v42 = vsub.f32 %v99_v26, %v116_v41 }
 0x125   :  { %v120_v43 = vmul.f32 %v118_v42, %v118_v42 }
 0x127   :  { %v124_v44 = vsel %vm64_vm0, %v120_v43, 0.0 }
 0x128   :  { %125 = vadd.xlane.f32.xlu1 %v124_v44 }
 0x193   :  { %v123_v45 = vpop.xlane.xlu1 %122 }
 0x194   :  { %v127_v46 = vmul.f32 %v123_v45, %v114_v34 }
 0x196   :  { %v129_v47 = vadd.f32 1e-12, %v127_v46 }
 0x198   :  { %202 = vrsqrt.f32 %v129_v47  ;;  %vm137_vm3 = vweird.f32 %v129_v47 }
 0x19b   :  { %v126_v48 = vpop.xlane.xlu1 %125 }
 0x19c   :  { %v128_v49 = vmul.f32 %v126_v48, %v114_v34 }
 0x19e   :  { %v203_v50 = vpop.eup %202  ;;  %v130_v51 = vadd.f32 1e-12, %v128_v49 }
 0x19f   :  { %v132_v52 = vmul.f32 %v203_v50, %v129_v47  ;;  %vm138_vm2 = vweird.f32 %v203_v50 }
 0x1a0   :  { %204 = vrsqrt.f32 %v130_v51  ;;  %vm139_vm4 = vmor %vm137_vm3, %vm138_vm2  ;;  %vm147_vm7 = vweird.f32 %v130_v51 }
 0x1a1   :  { %v133_v53 = vmul.f32 %v203_v50, %v132_v52 }
 0x1a3   :  { %v134_v54 = vmul.f32 0.5, %v133_v53 }
 0x1a5   :  { %v135_v55 = vsub.f32 1.5, %v134_v54 }
 0x1a6   :  { %v205_v56 = vpop.eup %204 }
 0x1a7   :  { %v136_v57 = vmul.f32 %v203_v50, %v135_v55  ;;  %v142_v58 = vmul.f32 %v205_v56, %v130_v51  ;;  %vm148_vm5 = vweird.f32 %v205_v56 }
 0x1a8   :  { %vm149_vm8 = vmor %vm147_vm7, %vm148_vm5 }
 0x1a9   :  { %v140_v60 = vsel %vm139_vm4, %v203_v50, %v136_v57  ;;  %v143_v61 = vmul.f32 %v205_v56, %v142_v58 }
 0x1aa   :  { %v151_v63 = vmul.f32 %v140_v60, %v117_v37 }
 0x1ab   :  { %v144_v0 = vmul.f32 0.5, %v143_v61 }
 0x1ac   :  { %v156_v1 = vmul.f32 %v194_v59, %v151_v63 }
 0x1ad   :  { %v145_v2 = vsub.f32 1.5, %v144_v0 }
 0x1ae   :  { %v161_v3 = vadd.f32 %v195_v62, %v156_v1 }
 0x1af   :  { %v146_v4 = vmul.f32 %v205_v56, %v145_v2 }
 0x1b0   :  { %v163_v5 = vpack.c.bf16 %v161_v3, %v161_v3 }
 0x1b1   :  { %v150_v6 = vsel %vm149_vm8, %v205_v56, %v146_v4 }
 0x1b2   :  { %166 = vst.msk [vmem:[%s297_s5] sm:$0xf] %vm165_vm6, %v163_v5  ;;  %v152_v7 = vmul.f32 %v150_v6, %v118_v42 }
 0x1b4   :  { %v157_v8 = vmul.f32 %v194_v59, %v152_v7 }
 0x1b6   :  { %v162_v9 = vadd.f32 %v195_v62, %v157_v8 }
 0x1b8   :  { %v164_v10 = vpack.c.bf16 %v162_v9, %v162_v9 }
 0x1ba   :  { %167 = vst.msk [vmem:[%s297_s5 + $0x4] sm:$0xf] %vm165_vm6, %v164_v10 }
 0x1bb   :  { %172 = vsyncpa [#allocation3], 1 }

// kernel: _lambda_.23
= control target key start
LH: loop header
LB: loop body
LE: loop exit
PB: predicated region body
PF: predicated region fallthrough
CT: control target
= control target key end

     0   :  { %12 = vsyncpa [#allocation3], 0  ;;  %s366_s27 = smov [#allocation2]   ;;  %s367_s29 = smov 64   ;;  %s466_s0 = inlined_call_operand.vmem [shape: bf16[16,32], index: 0, kind: input, shape index: {}]   ;;  %s467_s1 = inlined_call_operand.hbm [shape: bf16[32,128], index: 1, kind: input, shape index: {}]   ;;  %s468_s2 = inlined_call_operand.vmem [shape: f32[1,128], index: 2, kind: input, shape index: {}]   ;;  %s469_s3 = inlined_call_operand.vmem [shape: bf16[128,32], index: 3, kind: input, shape index: {}]   ;;  %s470_s4 = inlined_call_operand.vmem [shape: f32[1,32], index: 4, kind: input, shape index: {}, may-alias: {4,6}]   ;;  %s471_s5 = inlined_call_operand.vmem [shape: f32[1,32], index: 5, kind: input, shape index: {}]   ;;  %s472_s6 = inlined_call_operand.vmem [shape: f32[1,32], index: 6, kind: input, shape index: {}, may-alias: {4,6}]   ;;  %s473_s7 = inlined_call_operand.vmem [shape: bf16[16,32], index: 7, kind: output, shape index: {}]  }
   0x1   :  { %s19_s26 = sshll.u32 %s467_s1, 4  ;;  %s21_s28 = sshll.u32 %s366_s27, 4  ;;  %s20_s26 = int_to_ptr.hbm [resolvable:$true] %s19_s26  ;;  %s22_s28 = int_to_ptr.vmem [resolvable:$true] %s21_s28 }
   0x2   :  { %s368_s30 = smov 4  }
   0x3   :  { %27 = dma.hbm_to_vmem [thread:$0]  %s20_s26, 256, %s22_s28, [#allocation3], %s367_s29, %s367_s29, %s368_s30  }
   0x4   :  { %364 = dma.done.wait [#allocation3], 256  }
   0x5   :  { %365 = vsyncadd [#allocation3], 4294967040  ;;  %v313_v0 = vld [vmem:[#allocation2 + $0x8] sm:$0xff]  ;;  %v312_v1 = vld [vmem:[#allocation2] sm:$0xff]  ;;  %vm70_vm0 = vcmask 261120   ;;  %v369_v47 = vmov 32.0  }
   0x6   :  { %80 = vmatpush.bf16.msra.mxu0 %v313_v0  ;;  %v311_v2 = vld [vmem:[%s466_s0] sm:$0xff]  ;;  %v321_v3 = vld [vmem:[%s469_s3 + $0x38] sm:$0xff]  ;;  %v320_v4 = vld [vmem:[%s469_s3 + $0x30] sm:$0xff]  ;;  %vm258_vm6 = vcmask 257024  }
   0x7   :  { %175 = vmatpush.bf16.msra.mxu1 %v321_v3  ;;  %v319_v5 = vld [vmem:[%s469_s3 + $0x28] sm:$0xff]  ;;  %v318_v6 = vld [vmem:[%s469_s3 + $0x20] sm:$0xff]  ;;  %v317_v7 = vld [vmem:[%s469_s3 + $0x18] sm:$0xff] }
   0x8   :  { %v316_v8 = vld [vmem:[%s469_s3 + $0x10] sm:$0xff]  ;;  %v315_v9 = vld [vmem:[%s469_s3 + $0x8] sm:$0xff]  ;;  %v326_v10 = vld [vmem:[%s468_s2] ss:$0 sm:$0xff] }
   0x9   :  { %v314_v11 = vld [vmem:[%s469_s3] sm:$0xff] }
   0xa   :  { %81 = vmatpush.bf16.msra.mxu0 %v312_v1  ;;  %v43_v35 = vld [vmem:[%s466_s0] sm:$0xff]  }
   0xb   :  { %176 = vmatpush.bf16.msra.mxu1 %v320_v4  ;;  %v327_v36 = vld [vmem:[%s470_s4] ss:$0 sm:$0xff]  ;;  %v189_v37 = vunpack.c.l.bf16 %v43_v35  ;;  %v190_v42 = vunpack.c.h.bf16 %v43_v35 }
   0xd   :  { %278 = vmatmul.msk.bf16.vlgmr.msra.gmra.mxu0 %vm70_vm0, %v311_v2 }
   0xf   :  { %177 = vmatpush.bf16.msra.mxu1 %v319_v5 }
  0x13   :  { %178 = vmatpush.bf16.msra.mxu1 %v318_v6 }
  0x17   :  { %179 = vmatpush.bf16.msra.mxu1 %v317_v7 }
  0x1b   :  { %180 = vmatpush.bf16.msra.mxu1 %v316_v8 }
  0x1f   :  { %181 = vmatpush.bf16.msra.mxu1 %v315_v9 }
  0x23   :  { %182 = vmatpush.bf16.msra.mxu1 %v314_v11 }
  0x8a   :  { %v83_v12 = vpop.f32.mrf.mxu0 }
  0x8b   :  { %v84_v13 = vadd.f32 %v326_v10, %v83_v12 }
  0x8d   :  { %v88_v14 = vmul.f32 %v84_v13, %v84_v13 }
  0x8f   :  { %v90_v15 = vmul.f32 %v88_v14, %v84_v13  ;;  %v328_v14 = vld [vmem:[%s471_s5] ss:$0 sm:$0xff] }
  0x91   :  { %v92_v16 = vmul.f32 0.044715, %v90_v15 }
  0x92   :  { %v85_v17 = vpop.f32.mrf.mxu0 }
  0x93   :  { %v94_v18 = vadd.f32 %v92_v16, %v84_v13  ;;  %v86_v19 = vadd.f32 %v326_v10, %v85_v17  ;;  %v329_v17 = vld [vmem:[%s472_s6] ss:$0 sm:$0xff] }
  0x95   :  { %v89_v20 = vmul.f32 %v86_v19, %v86_v19  ;;  %v96_v21 = vmul.f32 0.7978846, %v94_v18 }
  0x97   :  { %v91_v22 = vmul.f32 %v89_v20, %v86_v19  ;;  %330 = vtanh.f32 %v96_v21 }
  0x99   :  { %v93_v23 = vmul.f32 0.044715, %v91_v22 }
  0x9b   :  { %v95_v24 = vadd.f32 %v93_v23, %v86_v19 }
  0x9d   :  { %v97_v25 = vmul.f32 0.7978846, %v95_v24  ;;  %v331_v26 = vpop.eup %330 }
  0x9e   :  { %v100_v27 = vadd.f32 1.0, %v331_v26 }
  0x9f   :  { %332 = vtanh.f32 %v97_v25 }
  0xa0   :  { %v102_v30 = vmul.f32 0.5, %v100_v27  ;;  %334 = vrcp.f32 %v369_v47 }
  0xa2   :  { %v104_v32 = vmul.f32 %v102_v30, %v84_v13 }
  0xa5   :  { %v333_v28 = vpop.eup %332 }
  0xa6   :  { %v101_v29 = vadd.f32 1.0, %v333_v28  ;;  %v335_v48 = vpop.eup %334 }
  0xa7   :  { %v202_v49 = vmul.f32 32.0, %v335_v48  ;;  %vm206_vm1 = vweird.f32 %v335_v48 }
  0xa8   :  { %v103_v31 = vmul.f32 0.5, %v101_v29 }
  0xa9   :  { %v203_v50 = vsub.f32 1.0, %v202_v49 }
  0xaa   :  { %v105_v33 = vmul.f32 %v103_v31, %v86_v19 }
  0xab   :  { %v204_v51 = vmul.f32 %v335_v48, %v203_v50 }
  0xac   :  { %v122_v34 = vpack.c.bf16 %v105_v33, %v104_v32 }
  0xad   :  { %v205_v52 = vadd.f32 %v335_v48, %v204_v51 }
  0xae   :  { %183 = vmatmul.bf16.vlgmr.msra.gmra.mxu1 %v122_v34 }
  0xaf   :  { %v207_v53 = vsel %vm206_vm1, %v335_v48, %v205_v52 }
 0x12b   :  { %v184_v38 = vpop.f32.mrf.mxu1 }
 0x12c   :  { %v185_v39 = vadd.f32 %v327_v36, %v184_v38 }
 0x12e   :  { %v191_v40 = vadd.f32 %v189_v37, %v185_v39 }
 0x130   :  { %v195_v41 = vsel %vm70_vm0, %v191_v40, 0.0 }
 0x131   :  { %196 = vadd.xlane.f32.xlu0 %v195_v41 }
 0x133   :  { %v186_v43 = vpop.f32.mrf.mxu1 }
 0x134   :  { %v187_v44 = vadd.f32 %v327_v36, %v186_v43 }
 0x136   :  { %v192_v45 = vadd.f32 %v190_v42, %v187_v44 }
 0x138   :  { %v198_v46 = vsel %vm70_vm0, %v192_v45, 0.0 }
 0x139   :  { %199 = vadd.xlane.f32.xlu0 %v198_v46 }
 0x1a4   :  { %v197_v54 = vpop.xlane.xlu0 %196 }
 0x1a5   :  { %v208_v55 = vmul.f32 %v207_v53, %v197_v54 }
 0x1a7   :  { %v210_v56 = vsub.f32 %v191_v40, %v208_v55 }
 0x1a9   :  { %v212_v57 = vmul.f32 %v210_v56, %v210_v56 }
 0x1ab   :  { %v214_v58 = vsel %vm70_vm0, %v212_v57, 0.0 }
 0x1ac   :  { %215 = vadd.xlane.f32.xlu1 %v214_v58  ;;  %v200_v59 = vpop.xlane.xlu0 %199 }
 0x1ad   :  { %v209_v60 = vmul.f32 %v207_v53, %v200_v59 }
 0x1af   :  { %v211_v61 = vsub.f32 %v192_v45, %v209_v60 }
 0x1b1   :  { %v213_v62 = vmul.f32 %v211_v61, %v211_v61 }
 0x1b3   :  { %v217_v63 = vsel %vm70_vm0, %v213_v62, 0.0 }
 0x1b4   :  { %218 = vadd.xlane.f32.xlu1 %v217_v63 }
 0x21f   :  { %v216_v0 = vpop.xlane.xlu1 %215 }
 0x220   :  { %v220_v1 = vmul.f32 %v216_v0, %v207_v53 }
 0x222   :  { %v222_v2 = vadd.f32 1e-12, %v220_v1 }
 0x224   :  { %336 = vrsqrt.f32 %v222_v2  ;;  %vm230_vm3 = vweird.f32 %v222_v2 }
 0x227   :  { %v219_v3 = vpop.xlane.xlu1 %218 }
 0x228   :  { %v221_v4 = vmul.f32 %v219_v3, %v207_v53 }
 0x22a   :  { %v337_v5 = vpop.eup %336  ;;  %v223_v6 = vadd.f32 1e-12, %v221_v4 }
 0x22b   :  { %v225_v7 = vmul.f32 %v337_v5, %v222_v2  ;;  %vm231_vm2 = vweird.f32 %v337_v5 }
 0x22c   :  { %338 = vrsqrt.f32 %v223_v6  ;;  %vm232_vm4 = vmor %vm230_vm3, %vm231_vm2  ;;  %vm240_vm7 = vweird.f32 %v223_v6 }
 0x22d   :  { %v226_v8 = vmul.f32 %v337_v5, %v225_v7 }
 0x22f   :  { %v227_v9 = vmul.f32 0.5, %v226_v8 }
 0x231   :  { %v228_v10 = vsub.f32 1.5, %v227_v9 }
 0x232   :  { %v339_v11 = vpop.eup %338 }
 0x233   :  { %v229_v12 = vmul.f32 %v337_v5, %v228_v10  ;;  %v235_v13 = vmul.f32 %v339_v11, %v223_v6  ;;  %vm241_vm5 = vweird.f32 %v339_v11 }
 0x234   :  { %vm242_vm8 = vmor %vm240_vm7, %vm241_vm5 }
 0x235   :  { %v233_v15 = vsel %vm232_vm4, %v337_v5, %v229_v12  ;;  %v236_v16 = vmul.f32 %v339_v11, %v235_v13 }
 0x236   :  { %v244_v18 = vmul.f32 %v233_v15, %v210_v56 }
 0x237   :  { %v237_v19 = vmul.f32 0.5, %v236_v16 }
 0x238   :  { %v249_v20 = vmul.f32 %v328_v14, %v244_v18 }
 0x239   :  { %v238_v21 = vsub.f32 1.5, %v237_v19 }
 0x23a   :  { %v254_v22 = vadd.f32 %v329_v17, %v249_v20 }
 0x23b   :  { %v239_v23 = vmul.f32 %v339_v11, %v238_v21 }
 0x23c   :  { %v256_v24 = vpack.c.bf16 %v254_v22, %v254_v22 }
 0x23d   :  { %v243_v25 = vsel %vm242_vm8, %v339_v11, %v239_v23 }
 0x23e   :  { %259 = vst.msk [vmem:[%s473_s7] sm:$0xf] %vm258_vm6, %v256_v24  ;;  %v245_v26 = vmul.f32 %v243_v25, %v211_v61 }
 0x240   :  { %v250_v27 = vmul.f32 %v328_v14, %v245_v26 }
 0x242   :  { %v255_v28 = vadd.f32 %v329_v17, %v250_v27 }
 0x244   :  { %v257_v29 = vpack.c.bf16 %v255_v28, %v255_v28 }
 0x246   :  { %260 = vst.msk [vmem:[%s473_s7 + $0x4] sm:$0xf] %vm258_vm6, %v257_v29 }
 0x247   :  { %265 = vsyncpa [#allocation3], 1 }

// kernel: _lambda_.22
= control target key start
LH: loop header
LB: loop body
LE: loop exit
PB: predicated region body
PF: predicated region fallthrough
CT: control target
= control target key end

     0   :  { %12 = vsyncpa [#allocation3], 0  ;;  %s923_s24 = smov 0   ;;  %s1011_s0 = inlined_call_operand.vmem [shape: bf16[2,8,32], index: 0, kind: input, shape index: {}]   ;;  %s1012_s1 = inlined_call_operand.vmem [shape: bf16[32,96], index: 1, kind: input, shape index: {}]   ;;  %s1013_s2 = inlined_call_operand.vmem [shape: f32[1,96], index: 2, kind: input, shape index: {}]   ;;  %s1014_s3 = inlined_call_operand.hbm [shape: bf16[32,32], index: 3, kind: input, shape index: {}]   ;;  %s1015_s4 = inlined_call_operand.vmem [shape: f32[1,32], index: 4, kind: input, shape index: {}, may-alias: {4,6}]   ;;  %s1016_s5 = inlined_call_operand.vmem [shape: f32[1,32], index: 5, kind: input, shape index: {}]   ;;  %s1017_s6 = inlined_call_operand.vmem [shape: f32[1,32], index: 6, kind: input, shape index: {}, may-alias: {4,6}]   ;;  %s1018_s7 = inlined_call_operand.vmem [shape: bf16[2,8,32], index: 7, kind: output, shape index: {}]  }
   0x1 LB: > { %s218_s27 = sshll.u32 %s1014_s3, 4  ;;  %s722_s28 = sadd.s32 4294967295, %s863_s24   ;;  %s863_s24 = sphi %s923_s24, %s18_s24   ;;  %s219_s27 = int_to_ptr.hbm [resolvable:$true] %s218_s27 }
   0x2   : > { %p724_p0 = scmp.ge.s32.totalorder %s863_s24, 1  ;;  %p201_p1 = scmp.lt.s32.totalorder %s863_s24, 3 }
   0x3   : > { %p771_p2 = scmp.eq.s32.totalorder %s722_s28, 0  ;;  %s865_s29 = smov [#allocation2]  }
   0x4   : > { %p202_p3 = pnand %p724_p0, %p201_p1  ;;  %s220_s30 = sshll.u32 %s865_s29, 4  ;;  %s221_s30 = int_to_ptr.vmem [resolvable:$true] %s220_s30 }
   0x5   : > { %s866_s8 = smov 64   ;;  %s867_s9 = smov 4  }
   0x6   : > { %p767_p4 = pneg %p202_p3  ;;  %252 = sbr.rel (%p202_p3) target bundleno = 1352 (0x548), region = 48 }
   0x8   : > { %p768_p5 = pnand %p771_p2, %p767_p4 }
   0xa   : > { %770 = dma.hbm_to_vmem [thread:$0]  (!%p768_p5), %s219_s27, 256, %s221_s30, [#allocation3], %s866_s8, %s866_s8, %s867_s9  }
   0xb   : > { %858 = dma.done.wait (%p771_p2), [#allocation3], 256  }
   0xc   : > { %860 = vsyncadd (%p771_p2), [#allocation3], 4294967040  ;;  %p283_p6 = scmp.lt.s32.totalorder %s722_s28, 1  ;;  %v760_v0 = vld [vmem:[%s1012_s1 + $0x8] sm:$0xff]  ;;  %v759_v1 = vld [vmem:[%s1012_s1] sm:$0xff]  ;;  %vm313_vm0 = vcmask 261120  }
   0xd   : > { %323 = vmatpush.bf16.msra.mxu0 %v760_v0  ;;  %v799_v3 = vld [vmem:[%s1013_s2] ss:$0 sm:$0xff]  ;;  %s868_s20 = smov 96   ;;  %s869_s21 = smov 104   ;;  %vm341_vm1 = vcmask 64512   ;;  %vm378_vm2 = vcmask 1043456  }
   0xe   : > { %s1020_s28 = smov (!%p283_p6, %s722_s28), 1  ;;  %s870_s22 = smov 120   ;;  %vm577_vm3 = vcmask 130048   ;;  %vm579_vm4 = vcmask 195584   ;;  %vm655_vm9 = vcmask 257024  }
   0xf   : > { %s729_s12 = sshll.u32 %s1020_s28, 2  ;;  %s871_s23 = smov 88  }
  0x10   : > { %s286_s17 = scalar_lea.vmem %s1011_s0, %s729_s12  ;;  %s872_s25 = smov 80  }
  0x11   : > { %324 = vmatpush.bf16.msra.mxu0 %v759_v1  ;;  %v948_v2 = vld [vmem:[%s286_s17] sm:$0xf]  ;;  %s873_s26 = smov 72   ;;  %s874_s27 = smov 112  }
  0x12   : > { %s875_s29 = smov 64   ;;  %s876_s30 = smov 40  }
  0x13   : > { %s877_s8 = smov 56   ;;  %s878_s9 = smov 48  }
  0x14   : > { %739 = vmatmul.msk.bf16.vlgmr.msra.gmra.mxu0 %vm313_vm0, %v948_v2  ;;  %s879_s10 = smov 8   ;;  %s880_s11 = smov 16  }
  0x15   : > { %s881_s13 = smov 24  }
  0x91   : > { %v326_v4 = vpop.f32.mrf.mxu0 }
  0x92   : > { %v327_v5 = vadd.f32 %v799_v3, %v326_v4 }
  0x94   : > { %v330_v6 = vmul.f32 0.35355338, %v327_v5  ;;  %v955_v7 = vpack.c.bf16 %v327_v5, %v327_v5 }
  0x96   : > { %v336_v8 = vpack.c.bf16 %v330_v6, %v330_v6  ;;  %339 = vrot.lane.b32.xlu0 %v955_v7, %s868_s20 }
  0x98   : > { %508 = vrot.lane.b32.xlu2 %v336_v8, %s869_s21  ;;  %396 = vrot.lane.b32.xlu1 %v336_v8, %s870_s22  ;;  %s290_s22 = scalar_lea.vmem %s1018_s7, %s729_s12 }
  0x99   : > { %v328_v9 = vpop.f32.mrf.mxu0 }
  0x9e   : > { %398 = vrot.lane.b32.xlu0 %v955_v7, %s871_s23 }
  0xa0   : > { %454 = vrot.lane.b32.xlu2 %v955_v7, %s872_s25  ;;  %510 = vrot.lane.b32.xlu1 %v955_v7, %s873_s26 }
  0xa6   : > { %452 = vrot.lane.b32.xlu0 %v336_v8, %s874_s27 }
  0xf2   : > { %v509_v10 = vpop.permute.xlu2 %508 }
  0xfa   : > { %v455_v11 = vpop.permute.xlu2 %454 }
  0xfb   : > { %v460_v12 = vsel %vm341_vm1, %v455_v11, 0 }
  0xfc   : > { %469 = vmatpush.bf16.xpose.msrb.mxu0 %v460_v12 }
 0x108   : > { %v340_v13 = vpop.permute.xlu0 %339 }
 0x109   : > { %v346_v14 = vsel %vm341_vm1, %v340_v13, 0 }
 0x10a   : > { %355 = vmatpush.bf16.xpose.msra.mxu1 %v346_v14  ;;  %v397_v15 = vpop.permute.xlu1 %396 }
 0x110   : > { %v399_v16 = vpop.permute.xlu0 %398 }
 0x111   : > { %740 = vmatmul.msk.bf16.vlgmr.msra.gmra.mxu1 %vm341_vm1, %v336_v8  ;;  %v404_v17 = vsel %vm341_vm1, %v399_v16, 0 }
 0x112   : > { %413 = vmatpush.bf16.xpose.msra.mxu3 %v404_v17  ;;  %v511_v18 = vpop.permute.xlu1 %510 }
 0x113   : > { %v516_v19 = vsel %vm341_vm1, %v511_v18, 0 }
 0x118   : > { %v453_v20 = vpop.permute.xlu0 %452 }
 0x119   : > { %742 = vmatmul.msk.bf16.vlgmr.msra.gmra.mxu3 %vm341_vm1, %v397_v15  ;;  %744 = vmatmul.msk.bf16.vlgmr.msrb.gmra.mxu0 %vm341_vm1, %v453_v20 }
 0x11a   : > { %525 = vmatpush.bf16.xpose.msrb.mxu3 %v516_v19 }
 0x129   : > { %746 = vmatmul.msk.bf16.vlgmr.msrb.gmra.mxu3 %vm341_vm1, %v509_v10 }
 0x18e   : > { %v357_v21 = vpop.f32.mrf.mxu1 }
 0x18f   : > { %v361_v22 = vsel %vm341_vm1, %v357_v21, -inf }
 0x190   : > { %362 = vmax.xlane.f32.xlu1 %v361_v22  ;;  %v762_v22 = vld [vmem:[#allocation2 + $0x8] sm:$0xff] }
 0x191   : > { %606 = vmatpush.bf16.msra.mxu0 %v762_v22 }
 0x196   : > { %v359_v23 = vpop.f32.mrf.mxu1  ;;  %v471_v24 = vpop.f32.mrf.mxu0 }
 0x197   : > { %v475_v29 = vsel %vm341_vm1, %v471_v24, -inf  ;;  %v761_v23 = vld [vmem:[#allocation2] sm:$0xff] }
 0x198   : > { %607 = vmatpush.bf16.msra.mxu0 %v761_v23 }
 0x19c   : > { %v415_v25 = vpop.f32.mrf.mxu3 }
 0x19d   : > { %v419_v26 = vsel %vm341_vm1, %v415_v25, -inf }
 0x19e   : > { %v473_v27 = vpop.f32.mrf.mxu0  ;;  %420 = vmax.xlane.f32.xlu2 %v419_v26 }
 0x1a4   : > { %v417_v28 = vpop.f32.mrf.mxu3 }
 0x1a6   : > { %476 = vmax.xlane.f32.xlu2 %v475_v29 }
 0x1ac   : > { %v527_v30 = vpop.f32.mrf.mxu3 }
 0x1ad   : > { %v531_v31 = vsel %vm341_vm1, %v527_v30, -inf }
 0x1ae   : > { %532 = vmax.xlane.f32.xlu0 %v531_v31  ;;  %v800_v31 = vld [vmem:[%s1015_s4] ss:$0 sm:$0xff] }
 0x1b4   : > { %v529_v32 = vpop.f32.mrf.mxu3 }
 0x1b5   : > { %v613_v32 = vunpack.c.l.bf16 %v948_v2 }
 0x1be   : > { %373 = vrot.lane.b32.xlu2 %v955_v7, %s875_s29 }
 0x1c6   : > { %543 = vrot.lane.b32.xlu2 %v955_v7, %s876_s30 }
 0x203   : > { %v363_v33 = vpop.xlane.xlu1 %362 }
 0x204   : > { %v364_v34 = vsub.f32 %v357_v21, %v363_v33 }
 0x206   : > { %v365_v35 = vmul.f32 1.442695, %v364_v34 }
 0x208   : > { %803 = vpow2.f32 %v365_v35 }
 0x20e   : > { %v804_v36 = vpop.eup %803 }
 0x20f   : > { %v367_v37 = vsel %vm341_vm1, %v804_v36, 0.0 }
 0x210   : > { %368 = vadd.xlane.f32.xlu1 %v367_v37 }
 0x211   : > { %v421_v38 = vpop.xlane.xlu2 %420 }
 0x212   : > { %v422_v41 = vsub.f32 %v415_v25, %v421_v38  ;;  %v882_v38 = vmov 32.0  }
 0x214   : > { %v423_v43 = vmul.f32 1.442695, %v422_v41 }
 0x219   : > { %v477_v39 = vpop.xlane.xlu2 %476 }
 0x21a   : > { %v478_v40 = vsub.f32 %v471_v24, %v477_v39 }
 0x21c   : > { %v479_v42 = vmul.f32 1.442695, %v478_v40 }
 0x21e   : > { %805 = vpow2.f32 %v479_v42 }
 0x21f   : > { %807 = vpow2.f32 %v423_v43 }
 0x221   : > { %v374_v44 = vpop.permute.xlu2 %373  ;;  %v533_v45 = vpop.xlane.xlu0 %532 }
 0x222   : > { %v380_v46 = vsel %vm378_vm2, %v374_v44, 0  ;;  %v534_v48 = vsub.f32 %v527_v30, %v533_v45 }
 0x223   : > { %389 = vmatpush.bf16.msra.mxu2 %v380_v46 }
 0x224   : > { %v806_v47 = vpop.eup %805  ;;  %v535_v50 = vmul.f32 1.442695, %v534_v48 }
 0x225   : > { %v481_v49 = vsel %vm341_vm1, %v806_v47, 0.0  ;;  %v808_v51 = vpop.eup %807 }
 0x226   : > { %482 = vadd.xlane.f32.xlu0 %v481_v49  ;;  %809 = vpow2.f32 %v535_v50  ;;  %v425_v52 = vsel %vm341_vm1, %v808_v51, 0.0 }
 0x229   : > { %431 = vrot.lane.b32.xlu1 %v955_v7, %s877_s8  ;;  %v544_v60 = vpop.permute.xlu2 %543 }
 0x22a   : > { %v549_v63 = vsel %vm378_vm2, %v544_v60, 0  ;;  %v802_v60 = vld [vmem:[%s1017_s6] ss:$0 sm:$0xff] }
 0x22c   : > { %v810_v53 = vpop.eup %809 }
 0x22d   : > { %v537_v54 = vsel %vm341_vm1, %v810_v53, 0.0 }
 0x22e   : > { %426 = vadd.xlane.f32.xlu0 %v425_v52 }
 0x236   : > { %538 = vadd.xlane.f32.xlu0 %v537_v54 }
 0x24a   : > { %487 = vrot.lane.b32.xlu0 %v955_v7, %s878_s9 }
 0x283   : > { %v369_v55 = vpop.xlane.xlu1 %368 }
 0x284   : > { %811 = vrcp.f32 %v369_v55 }
 0x28a   : > { %v812_v56 = vpop.eup %811 }
 0x28b   : > { %v371_v57 = vmul.f32 %v812_v56, %v804_v36 }
 0x28d   : > { %v372_v58 = vpack.c.bf16 %v371_v57, %v371_v57 }
 0x28f   : > { %741 = vmatmul.msk.bf16.vlgmr.msra.gmra.mxu2 %vm341_vm1, %v372_v58  ;;  %v801_v58 = vld [vmem:[%s1016_s5] ss:$0 sm:$0xff] }
 0x299   : > { %v483_v59 = vpop.xlane.xlu0 %482 }
 0x29b   : > { %v432_v61 = vpop.permute.xlu1 %431 }
 0x29c   : > { %v437_v62 = vsel %vm378_vm2, %v432_v61, 0 }
 0x29d   : > { %446 = vmatpush.bf16.msrb.mxu2 %v437_v62 }
 0x2a1   : > { %558 = vmatpush.bf16.msra.mxu2 %v549_v63  ;;  %v427_v0 = vpop.xlane.xlu0 %426 }
 0x2a2   : > { %813 = vrcp.f32 %v427_v0 }
 0x2a8   : > { %v814_v1 = vpop.eup %813 }
 0x2a9   : > { %v429_v3 = vmul.f32 %v814_v1, %v808_v51  ;;  %v539_v4 = vpop.xlane.xlu0 %538 }
 0x2aa   : > { %815 = vrcp.f32 %v539_v4 }
 0x2ab   : > { %v430_v5 = vpack.c.bf16 %v429_v3, %v429_v3  ;;  %817 = vrcp.f32 %v483_v59 }
 0x2ac   : > { %819 = vrcp.f32 %v882_v38 }
 0x2ad   : > { %743 = vmatmul.msk.bf16.vlgmr.msrb.gmra.mxu2 %vm341_vm1, %v430_v5 }
 0x2b0   : > { %v816_v6 = vpop.eup %815 }
 0x2b1   : > { %v541_v7 = vmul.f32 %v816_v6, %v810_v53  ;;  %v818_v8 = vpop.eup %817 }
 0x2b2   : > { %v485_v9 = vmul.f32 %v818_v8, %v806_v47  ;;  %v820_v39 = vpop.eup %819 }
 0x2b3   : > { %v542_v10 = vpack.c.bf16 %v541_v7, %v541_v7  ;;  %v621_v40 = vmul.f32 32.0, %v820_v39  ;;  %vm625_vm5 = vweird.f32 %v820_v39 }
 0x2b4   : > { %v486_v13 = vpack.c.bf16 %v485_v9, %v485_v9 }
 0x2b5   : > { %v622_v41 = vsub.f32 1.0, %v621_v40 }
 0x2b7   : > { %v623_v42 = vmul.f32 %v820_v39, %v622_v41 }
 0x2b9   : > { %v624_v43 = vadd.f32 %v820_v39, %v623_v42 }
 0x2bb   : > { %v626_v44 = vsel %vm625_vm5, %v820_v39, %v624_v43 }
 0x2bc   : > { %v488_v11 = vpop.permute.xlu0 %487 }
 0x2bd   : > { %747 = vmatmul.msk.bf16.vlgmr.msra.gmra.mxu2 %vm341_vm1, %v542_v10  ;;  %v493_v12 = vsel %vm378_vm2, %v488_v11, 0 }
 0x2be   : > { %502 = vmatpush.bf16.msrb.mxu1 %v493_v12 }
 0x2c1   : > { %745 = vmatmul.msk.bf16.vlgmr.msrb.gmra.mxu1 %vm341_vm1, %v486_v13 }
 0x312   : > { %v391_v14 = vpop.f32.mrf.mxu2 }
 0x31a   : > { %v393_v15 = vpop.f32.mrf.mxu2 }
 0x330   : > { %v448_v16 = vpop.f32.mrf.mxu2 }
 0x331   : > { %565 = vrot.lane.b32.xlu1 %v448_v16, %s879_s10 }
 0x338   : > { %v450_v17 = vpop.f32.mrf.mxu2 }
 0x33e   : > { %v504_v18 = vpop.f32.mrf.mxu1 }
 0x33f   : > { %569 = vrot.lane.b32.xlu2 %v504_v18, %s880_s11 }
 0x340   : > { %v560_v19 = vpop.f32.mrf.mxu2 }
 0x341   : > { %573 = vrot.lane.b32.xlu1 %v560_v19, %s881_s13 }
 0x346   : > { %v506_v20 = vpop.f32.mrf.mxu1 }
 0x348   : > { %v562_v21 = vpop.f32.mrf.mxu2 }
 0x399   : > { %v570_v26 = vpop.permute.xlu2 %569 }
 0x3a3   : > { %v566_v24 = vpop.permute.xlu1 %565 }
 0x3a4   : > { %v576_v25 = vsel %vm341_vm1, %v391_v14, %v566_v24 }
 0x3a5   : > { %v578_v28 = vsel %vm577_vm3, %v576_v25, %v570_v26 }
 0x3b3   : > { %v574_v27 = vpop.permute.xlu1 %573 }
 0x3b4   : > { %v580_v29 = vsel %vm579_vm4, %v578_v28, %v574_v27 }
 0x3b5   : > { %v581_v30 = vpack.c.bf16 %v580_v29, %v580_v29 }
 0x3b7   : > { %756 = vmatmul.msk.bf16.vlgmr.msra.gmra.mxu0 %vm313_vm0, %v581_v30 }
 0x434   : > { %v609_v33 = vpop.f32.mrf.mxu0 }
 0x435   : > { %v610_v34 = vadd.f32 %v800_v31, %v609_v33 }
 0x437   : > { %v614_v35 = vadd.f32 %v613_v32, %v610_v34 }
 0x439   : > { %v617_v36 = vsel %vm313_vm0, %v614_v35, 0.0 }
 0x43a   : > { %618 = vadd.xlane.f32.xlu2 %v617_v36 }
 0x43c   : > { %v611_v37 = vpop.f32.mrf.mxu0 }
 0x4ad   : > { %v619_v45 = vpop.xlane.xlu2 %618 }
 0x4ae   : > { %v627_v46 = vmul.f32 %v626_v44, %v619_v45 }
 0x4b0   : > { %v628_v47 = vsub.f32 %v614_v35, %v627_v46 }
 0x4b2   : > { %v629_v2 = vmul.f32 %v628_v47, %v628_v47 }
 0x4b4   : > { %v630_v48 = vsel %vm313_vm0, %v629_v2, 0.0 }
 0x4b5   : > { %631 = vadd.xlane.f32.xlu1 %v630_v48 }
 0x528   : > { %v632_v49 = vpop.xlane.xlu1 %631 }
 0x529   : > { %v633_v50 = vmul.f32 %v632_v49, %v626_v44 }
 0x52b   : > { %v634_v51 = vadd.f32 1e-12, %v633_v50 }
 0x52d   : > { %821 = vrsqrt.f32 %v634_v51  ;;  %vm641_vm7 = vweird.f32 %v634_v51 }
 0x533   : > { %v822_v52 = vpop.eup %821 }
 0x534   : > { %v636_v53 = vmul.f32 %v822_v52, %v634_v51  ;;  %vm642_vm6 = vweird.f32 %v822_v52 }
 0x535   : > { %vm643_vm8 = vmor %vm641_vm7, %vm642_vm6 }
 0x536   : > { %v637_v54 = vmul.f32 %v822_v52, %v636_v53 }
 0x538   : > { %v638_v55 = vmul.f32 0.5, %v637_v54 }
 0x53a   : > { %v639_v56 = vsub.f32 1.5, %v638_v55 }
 0x53c   : > { %v640_v57 = vmul.f32 %v822_v52, %v639_v56 }
 0x53e   : > { %v644_v59 = vsel %vm643_vm8, %v822_v52, %v640_v57 }
 0x53f   : > { %v645_v61 = vmul.f32 %v644_v59, %v628_v47 }
 0x541   : > { %v649_v62 = vmul.f32 %v801_v58, %v645_v61 }
 0x543   : > { %v653_v63 = vadd.f32 %v802_v60, %v649_v62 }
 0x545   : > { %v654_v0 = vpack.c.bf16 %v653_v63, %v653_v63 }
 0x547   : > { %656 = vst.msk [vmem:[%s290_s22] sm:$0xf] %vm655_vm9, %v654_v0 }
 0x548 PF: > { %s18_s24 = sadd.s32 1, %s863_s24  }
 0x549   : > { %p15_p7 = scmp.ge.s32.totalorder %s18_s24, 4  }
 0x54b   :  { %17 = sbr.rel (!%p15_p7) target bundleno = 1 (0x1), region = 83 }
 0x550   :  { %676 = vsyncpa [#allocation3], 1 }
 0x551   :  { %678 = vsyncpa [#allocation3 + $0x1], 1 }

// kernel: _lambda_.25
= control target key start
LH: loop header
LB: loop body
LE: loop exit
PB: predicated region body
PF: predicated region fallthrough
CT: control target
= control target key end

     0   :  { %8 = vsyncpa [#allocation3], 0  ;;  %s212_s0 = inlined_call_operand.vmem [shape: bf16[16,32], index: 0, kind: input, shape index: {}]   ;;  %s213_s1 = inlined_call_operand.hbm [shape: bf16[32,64], index: 1, kind: input, shape index: {}]   ;;  %s214_s2 = inlined_call_operand.vmem [shape: f32[1,64], index: 2, kind: input, shape index: {}]   ;;  %s215_s3 = inlined_call_operand.hbm [shape: f32[16,64], index: 3, kind: output, shape index: {}]  }
   0x1   :  { %9 = vsyncpa [#allocation4], 0  ;;  %s16_s14 = sshll.u32 %s213_s1, 4  ;;  %s174_s15 = smov [#allocation2]   ;;  %s17_s14 = int_to_ptr.hbm [resolvable:$true] %s16_s14 }
   0x2   :  { %s18_s16 = sshll.u32 %s174_s15, 4  ;;  %s175_s17 = smov 64   ;;  %s19_s16 = int_to_ptr.vmem [resolvable:$true] %s18_s16 }
   0x3   :  { %s176_s18 = smov 4  }
   0x4   :  { %24 = dma.hbm_to_vmem [thread:$0]  %s17_s14, 256, %s19_s16, [#allocation3], %s175_s17, %s175_s17, %s176_s18  }
   0x5   :  { %170 = dma.done.wait [#allocation3], 256  }
   0x6   :  { %171 = vsyncadd [#allocation3], 4294967040  ;;  %v114_v0 = vld [vmem:[#allocation2 + $0x8] sm:$0xff]  ;;  %v113_v1 = vld [vmem:[#allocation2] sm:$0xff]  ;;  %vm59_vm0 = vcmask 261120   ;;  %vm77_vm1 = vcmask 523264  }
   0x7   :  { %69 = vmatpush.bf16.msra.mxu0 %v114_v0  ;;  %v112_v2 = vld [vmem:[%s212_s0] sm:$0xff]  ;;  %s177_s22 = smov [#allocation5]   ;;  %s86_s26 = sshll.u32 %s215_s3, 4  ;;  %s87_s26 = int_to_ptr.hbm [resolvable:$true] %s86_s26 }
   0x8   :  { %v121_v3 = vld [vmem:[%s214_s2] ss:$0 sm:$0xff]  ;;  %s84_s23 = sshll.u32 %s177_s22, 4  ;;  %s178_s0 = smov 128   ;;  %s85_s23 = int_to_ptr.vmem [resolvable:$true] %s84_s23 }
   0x9   :  { %s179_s27 = smov 8  }
   0xb   :  { %70 = vmatpush.bf16.msra.mxu0 %v113_v1 }
   0xe   :  { %111 = vmatmul.msk.bf16.vlgmr.msra.gmra.mxu0 %vm59_vm0, %v112_v2 }
  0x8b   :  { %v72_v4 = vpop.f32.mrf.mxu0 }
  0x8c   :  { %v73_v5 = vadd.f32 %v121_v3, %v72_v4 }
  0x8e   :  { %78 = vst.msk [vmem:[#allocation5] sm:$0xff] %vm77_vm1, %v73_v5 }
  0x93   :  { %v74_v6 = vpop.f32.mrf.mxu0 }
  0x94   :  { %v75_v7 = vadd.f32 %v121_v3, %v74_v6 }
  0x96   :  { %79 = vst.msk [vmem:[#allocation5 + $0x8] sm:$0xff] %vm77_vm1, %v75_v7 }
  0x97   :  { %92 = dma.vmem_to_hbm [thread:$0]  %s85_s23, 256, %s87_s26, [#allocation4], %s178_s0, %s178_s0, %s179_s27  }
  0x98   :  { %172 = dma.done.wait [#allocation4], 256  }
  0x99   :  { %173 = vsyncadd [#allocation4], 4294967040 }
  0x9a   :  { %97 = vsyncpa [#allocation3], 1 }
  0x9b   :  { %98 = vsyncpa [#allocation4], 1 }

</bundles_post_ra>
